<compile_context>
chip_gen: v7x
topology: tpu7x:2x2x1
jax: 0.10.0
libtpu: 0.0.40
codegen_flags: <defaults>
</compile_context>

<pallas_src>
import jax
import jax.numpy as jnp
from jax import lax
from jax.experimental import pallas as pl
from jax.experimental.pallas import tpu as pltpu

KH, KW = 3, 5          # pooling kernel
SH, SW = 2, 1          # stride
PH, PW = 1, 2          # padding
EPS = 1e-5             # nn.LayerNorm default eps
NEG = -1e30            # additive mask value for padded positions (max path)


def _make_kernel(hout, wout):
    """hout/wout are the (width-aligned) pooled output height / width."""
    inv_k = 1.0 / float(KH * KW)

    def kernel(x_ref, mneg_ref, w_ref, b_ref, g_ref, bt_ref, o_ref):
        # x_ref:    (bt, Hp, Wp, C)  zero-padded channels-last images
        # mneg_ref: (1, Hp, Wp, 1)   0 at valid pixels, NEG at pooling pads
        # w_ref:    (C, Cout)        Linear weight, pre-scaled by 0.5
        # b/g/bt:   (1, Cout)        Linear bias, LayerNorm gamma / beta
        # o_ref:    (bt, hout, wout, Cout)
        bt = x_ref.shape[0]
        cin = x_ref.shape[3]
        cout = o_ref.shape[3]

        xp = x_ref[...]                         # zero padded     (avg path)
        xm = xp + mneg_ref[...]                 # pads -> -1e30   (max path)

        # W-direction pooling (kernel 5, stride 1): 5 static taps along W.
        s = xp[:, :, 0:wout, :]
        m = xm[:, :, 0:wout, :]
        for kw in range(1, KW):
            s = s + xp[:, :, kw:kw + wout, :]
            m = jnp.maximum(m, xm[:, :, kw:kw + wout, :])

        # H-direction pooling (kernel 3, stride 2): rows (2h, 2h+1, 2h+2).
        # Hp == 2*hout + 2 by construction -> free leading-dim reshape.
        rs = s.reshape(bt, hout + 1, 2, wout, cin)
        rm = m.reshape(bt, hout + 1, 2, wout, cin)
        ss = rs[:, :hout, 0] + rs[:, :hout, 1] + rs[:, 1:, 0]
        mm = jnp.maximum(jnp.maximum(rm[:, :hout, 0], rm[:, :hout, 1]),
                         rm[:, 1:, 0])
        pooled = ss * inv_k + mm                # avg + max  (the *0.5 lives in W)

        # nn.Linear: one big MXU matmul over all bt*hout*wout positions.
        w = w_ref[...]
        seq = pooled.reshape(bt * hout * wout, cin).astype(w.dtype)
        y = jnp.dot(seq, w, preferred_element_type=jnp.float32) + b_ref[...]

        # nn.LayerNorm over Cout (two-pass variance: robust, var >= 0).
        mu = jnp.mean(y, axis=-1, keepdims=True)
        d = y - mu
        var = jnp.mean(d * d, axis=-1, keepdims=True)
        out = d * lax.rsqrt(var + EPS) * g_ref[...] + bt_ref[...]
        o_ref[...] = out.reshape(bt, hout, wout, cout).astype(o_ref.dtype)

    return kernel


def subsample_pool(x_nchw, w_proj, b_proj, gamma, beta, *,
                   block_b=None, matmul_dtype=jnp.float32):
    """SVTRNet SubSample(types='Pool'): (B, C, H, W) -> (B, Hout*Wout, Cout)."""
    B, C, H, W = x_nchw.shape
    Cout = w_proj.shape[1]
    Hout = (H + 2 * PH - KH) // SH + 1
    Wout = (W + 2 * PW - KW) // SW + 1          # == W for these params
    N = Hout * Wout

    # Padded geometry seen by the kernel:
    #  * Hp = 2*Hout + 2 so the 3-row / stride-2 combine is a free reshape
    #    (for odd H the single extra bottom row never enters a used window);
    #  * pooled width Wout_p = roundup(Wout, 8) so every in-kernel reshape is
    #    sublane aligned; extra right columns are benign zeros, sliced away.
    Hp = 2 * Hout + 2
    Wout_p = -(-Wout // 8) * 8
    Wp = Wout_p + (KW - 1)

    # Images per grid step: amortize per-step overhead and feed the MXU with
    # >= ~256 rows, while keeping >= 2 grid steps (both v7x TensorCores busy).
    if block_b is None:
        bt = max(1, min(B, pl.cdiv(256, Hout * Wout_p)))
        if B > 1:
            bt = max(1, min(bt, pl.cdiv(B, 2)))
    else:
        bt = max(1, min(block_b, B))
    Bp = pl.cdiv(B, bt) * bt

    x = jnp.transpose(x_nchw, (0, 2, 3, 1)).astype(jnp.float32)       # NHWC
    x_pad = jnp.pad(x, ((0, Bp - B), (PH, Hp - H - PH),
                        (PW, Wp - W - PW), (0, 0)))                   # zero pad

    # Tiny additive mask for the max path: NEG only at the true pooling pads;
    # alignment-only rows/cols stay 0 (their unused outputs remain finite).
    r = jnp.arange(Hp)
    c = jnp.arange(Wp)
    row_pad = (r < PH) | ((r >= H + PH) & (r < H + 2 * PH))
    col_pad = (c < PW) | ((c >= W + PW) & (c < W + 2 * PW))
    mneg = jnp.where(row_pad[:, None] | col_pad[None, :], NEG, 0.0)
    mneg = mneg.astype(jnp.float32)[None, :, :, None]                 # (1,Hp,Wp,1)

    w_s = (w_proj * 0.5).astype(matmul_dtype)    # fold the *0.5 of (avg+max)*0.5

    out = pl.pallas_call(
        _make_kernel(Hout, Wout_p),
        out_shape=jax.ShapeDtypeStruct((Bp, Hout, Wout_p, Cout), jnp.float32),
        grid=(Bp // bt,),
        in_specs=[
            pl.BlockSpec((bt, Hp, Wp, C), lambda b: (b, 0, 0, 0)),    # per-step images
            pl.BlockSpec((1, Hp, Wp, 1), lambda b: (0, 0, 0, 0)),     # resident mask
            pl.BlockSpec((C, Cout), lambda b: (0, 0)),                # resident weight
            pl.BlockSpec((1, Cout), lambda b: (0, 0)),                # bias
            pl.BlockSpec((1, Cout), lambda b: (0, 0)),                # gamma
            pl.BlockSpec((1, Cout), lambda b: (0, 0)),                # beta
        ],
        out_specs=pl.BlockSpec((bt, Hout, Wout_p, Cout), lambda b: (b, 0, 0, 0)),
        compiler_params=pltpu.CompilerParams(
            dimension_semantics=("parallel",),
            allow_input_fusion=[True, False, False, False, False, False]),
    )(x_pad, mneg, w_s,
      b_proj.reshape(1, Cout).astype(jnp.float32),
      gamma.reshape(1, Cout).astype(jnp.float32),
      beta.reshape(1, Cout).astype(jnp.float32))

    # Drop batch / width alignment padding; (B, Hout, Wout, Cout) -> (B, N, Cout).
    return out[:B, :, :Wout, :].reshape(B, N, Cout)


def subsample_pool_ref(x_nchw, w_proj, b_proj, gamma, beta):
    """Pure-JAX reference mirroring the PyTorch SubSample('Pool') forward."""
    x = jnp.transpose(x_nchw, (0, 2, 3, 1))  # NHWC
    dims, strides = (1, KH, KW, 1), (1, SH, SW, 1)
    pads = ((0, 0), (PH, PH), (PW, PW), (0, 0))
    avg = lax.reduce_window(x, 0.0, lax.add, dims, strides, pads) / float(KH * KW)
    mx = lax.reduce_window(x, -jnp.inf, lax.max, dims, strides, pads)
    pooled = (avg + mx) * 0.5                                  # (B, H', W', C)
    B, Hout, Wout, C = pooled.shape
    seq = pooled.reshape(B, Hout * Wout, C)                    # flatten(2).permute(0,2,1)
    y = seq @ w_proj + b_proj
    mean = jnp.mean(y, axis=-1, keepdims=True)
    var = jnp.mean((y - mean) ** 2, axis=-1, keepdims=True)
    return (y - mean) / jnp.sqrt(var + EPS) * gamma + beta


if __name__ == "__main__":
    def run_case(key, B, C, H, W, Cout, tag):
        kx, kw, kb = jax.random.split(key, 3)
        x = jax.random.normal(kx, (B, C, H, W), dtype=jnp.float32)
        # nn.Linear(in, out): weight stored pre-transposed as (C, Cout).
        w_proj = jax.random.normal(kw, (C, Cout), dtype=jnp.float32) * 0.02
        b_proj = jax.random.normal(kb, (Cout,), dtype=jnp.float32) * 0.01
        gamma = jnp.ones((Cout,), dtype=jnp.float32)   # nn.LayerNorm affine init
        beta = jnp.zeros((Cout,), dtype=jnp.float32)

        out = jax.block_until_ready(
            jax.jit(subsample_pool)(x, w_proj, b_proj, gamma, beta))
        ref = subsample_pool_ref(x, w_proj, b_proj, gamma, beta)

        Hout = (H + 2 * PH - KH) // SH + 1
        Wout = (W + 2 * PW - KW) // SW + 1
        assert out.shape == (B, Hout * Wout, Cout), (tag, out.shape)
        err = float(jnp.max(jnp.abs(out - ref)))
        assert jnp.allclose(out, ref, atol=1e-4, rtol=1e-4), (tag, err)

    key = jax.random.PRNGKey(0)
    k1, k2 = jax.random.split(key)
    # SubSample(in=16, out=32) on an 8x16 feature map, batch 8
    # (grid of 2 steps x 4 images per step), plus an odd-H / non-aligned-W /
    # ragged-batch case to exercise the padding paths.
    run_case(k1, B=8, C=16, H=8, W=16, Cout=32, tag="even")
    run_case(k2, B=3, C=12, H=7, W=10, Cout=24, tag="odd")
    print("KERNEL_OK")
</pallas_src>

<mosaic_0001>
module attributes {stable_mosaic.version = 11 : i64} {
  func.func @kernel(%arg0: i32, %arg1: memref<4x10x20x16xf32, #tpu.memory_space<vmem>>, %arg2: memref<1x10x20x1xf32, #tpu.memory_space<vmem>>, %arg3: memref<16x32xf32, #tpu.memory_space<vmem>>, %arg4: memref<1x32xf32, #tpu.memory_space<vmem>>, %arg5: memref<1x32xf32, #tpu.memory_space<vmem>>, %arg6: memref<1x32xf32, #tpu.memory_space<vmem>>, %arg7: memref<4x4x16x32xf32, #tpu.memory_space<vmem>>) attributes {dimension_semantics = [#tpu.dimension_semantics<parallel>], iteration_bounds = array<i64: 2>, scalar_prefetch = 0 : i64, scratch_operands = 0 : i64, tpu.core_type = #tpu.core_type<tc>, window_params = [{transform_indices = @transform_0, window_bounds = array<i64: 4, 10, 20, 16>}, {pipeline_mode = #tpu.pipeline_mode<synchronous>, transform_indices = @transform_1, window_bounds = array<i64: 1, 10, 20, 1>}, {pipeline_mode = #tpu.pipeline_mode<synchronous>, transform_indices = @transform_2, window_bounds = array<i64: 16, 32>}, {pipeline_mode = #tpu.pipeline_mode<synchronous>, transform_indices = @transform_3, window_bounds = array<i64: 1, 32>}, {pipeline_mode = #tpu.pipeline_mode<synchronous>, transform_indices = @transform_4, window_bounds = array<i64: 1, 32>}, {pipeline_mode = #tpu.pipeline_mode<synchronous>, transform_indices = @transform_5, window_bounds = array<i64: 1, 32>}, {transform_indices = @transform_6, window_bounds = array<i64: 4, 4, 16, 32>}]} {
    %c0 = arith.constant 0 : index
    %c0_0 = arith.constant 0 : index
    %c0_1 = arith.constant 0 : index
    %c0_2 = arith.constant 0 : index
    %0 = vector.load %arg1[%c0, %c0_0, %c0_1, %c0_2] : memref<4x10x20x16xf32, #tpu.memory_space<vmem>>, vector<4x10x20x16xf32>
    %c0_3 = arith.constant 0 : index
    %c0_4 = arith.constant 0 : index
    %c0_5 = arith.constant 0 : index
    %c0_6 = arith.constant 0 : index
    %1 = vector.load %arg2[%c0_3, %c0_4, %c0_5, %c0_6] : memref<1x10x20x1xf32, #tpu.memory_space<vmem>>, vector<1x10x20x1xf32>
    %2 = vector.broadcast %1 : vector<1x10x20x1xf32> to vector<4x10x20x16xf32>
    %3 = arith.addf %0, %2 : vector<4x10x20x16xf32>
    %4 = vector.extract_strided_slice %0 {offsets = [0, 0, 0, 0], sizes = [4, 10, 16, 16], strides = [1, 1, 1, 1]} : vector<4x10x20x16xf32> to vector<4x10x16x16xf32>
    %5 = vector.extract_strided_slice %3 {offsets = [0, 0, 0, 0], sizes = [4, 10, 16, 16], strides = [1, 1, 1, 1]} : vector<4x10x20x16xf32> to vector<4x10x16x16xf32>
    %6 = vector.extract_strided_slice %0 {offsets = [0, 0, 1, 0], sizes = [4, 10, 16, 16], strides = [1, 1, 1, 1]} : vector<4x10x20x16xf32> to vector<4x10x16x16xf32>
    %7 = arith.addf %4, %6 : vector<4x10x16x16xf32>
    %8 = vector.extract_strided_slice %3 {offsets = [0, 0, 1, 0], sizes = [4, 10, 16, 16], strides = [1, 1, 1, 1]} : vector<4x10x20x16xf32> to vector<4x10x16x16xf32>
    %9 = arith.maximumf %5, %8 : vector<4x10x16x16xf32>
    %10 = vector.extract_strided_slice %0 {offsets = [0, 0, 2, 0], sizes = [4, 10, 16, 16], strides = [1, 1, 1, 1]} : vector<4x10x20x16xf32> to vector<4x10x16x16xf32>
    %11 = arith.addf %7, %10 : vector<4x10x16x16xf32>
    %12 = vector.extract_strided_slice %3 {offsets = [0, 0, 2, 0], sizes = [4, 10, 16, 16], strides = [1, 1, 1, 1]} : vector<4x10x20x16xf32> to vector<4x10x16x16xf32>
    %13 = arith.maximumf %9, %12 : vector<4x10x16x16xf32>
    %14 = vector.extract_strided_slice %0 {offsets = [0, 0, 3, 0], sizes = [4, 10, 16, 16], strides = [1, 1, 1, 1]} : vector<4x10x20x16xf32> to vector<4x10x16x16xf32>
    %15 = arith.addf %11, %14 : vector<4x10x16x16xf32>
    %16 = vector.extract_strided_slice %3 {offsets = [0, 0, 3, 0], sizes = [4, 10, 16, 16], strides = [1, 1, 1, 1]} : vector<4x10x20x16xf32> to vector<4x10x16x16xf32>
    %17 = arith.maximumf %13, %16 : vector<4x10x16x16xf32>
    %18 = vector.extract_strided_slice %0 {offsets = [0, 0, 4, 0], sizes = [4, 10, 16, 16], strides = [1, 1, 1, 1]} : vector<4x10x20x16xf32> to vector<4x10x16x16xf32>
    %19 = arith.addf %15, %18 : vector<4x10x16x16xf32>
    %20 = vector.extract_strided_slice %3 {offsets = [0, 0, 4, 0], sizes = [4, 10, 16, 16], strides = [1, 1, 1, 1]} : vector<4x10x20x16xf32> to vector<4x10x16x16xf32>
    %21 = arith.maximumf %17, %20 : vector<4x10x16x16xf32>
    %22 = vector.shape_cast %19 : vector<4x10x16x16xf32> to vector<4x5x2x16x16xf32>
    %23 = vector.shape_cast %21 : vector<4x10x16x16xf32> to vector<4x5x2x16x16xf32>
    %24 = vector.extract_strided_slice %22 {offsets = [0, 0, 0, 0, 0], sizes = [4, 4, 1, 16, 16], strides = [1, 1, 1, 1, 1]} : vector<4x5x2x16x16xf32> to vector<4x4x1x16x16xf32>
    %25 = vector.shape_cast %24 : vector<4x4x1x16x16xf32> to vector<4x4x16x16xf32>
    %26 = vector.extract_strided_slice %22 {offsets = [0, 0, 1, 0, 0], sizes = [4, 4, 1, 16, 16], strides = [1, 1, 1, 1, 1]} : vector<4x5x2x16x16xf32> to vector<4x4x1x16x16xf32>
    %27 = vector.shape_cast %26 : vector<4x4x1x16x16xf32> to vector<4x4x16x16xf32>
    %28 = arith.addf %25, %27 : vector<4x4x16x16xf32>
    %29 = vector.extract_strided_slice %22 {offsets = [0, 1, 0, 0, 0], sizes = [4, 4, 1, 16, 16], strides = [1, 1, 1, 1, 1]} : vector<4x5x2x16x16xf32> to vector<4x4x1x16x16xf32>
    %30 = vector.shape_cast %29 : vector<4x4x1x16x16xf32> to vector<4x4x16x16xf32>
    %31 = arith.addf %28, %30 : vector<4x4x16x16xf32>
    %32 = vector.extract_strided_slice %23 {offsets = [0, 0, 0, 0, 0], sizes = [4, 4, 1, 16, 16], strides = [1, 1, 1, 1, 1]} : vector<4x5x2x16x16xf32> to vector<4x4x1x16x16xf32>
    %33 = vector.shape_cast %32 : vector<4x4x1x16x16xf32> to vector<4x4x16x16xf32>
    %34 = vector.extract_strided_slice %23 {offsets = [0, 0, 1, 0, 0], sizes = [4, 4, 1, 16, 16], strides = [1, 1, 1, 1, 1]} : vector<4x5x2x16x16xf32> to vector<4x4x1x16x16xf32>
    %35 = vector.shape_cast %34 : vector<4x4x1x16x16xf32> to vector<4x4x16x16xf32>
    %36 = arith.maximumf %33, %35 : vector<4x4x16x16xf32>
    %37 = vector.extract_strided_slice %23 {offsets = [0, 1, 0, 0, 0], sizes = [4, 4, 1, 16, 16], strides = [1, 1, 1, 1, 1]} : vector<4x5x2x16x16xf32> to vector<4x4x1x16x16xf32>
    %38 = vector.shape_cast %37 : vector<4x4x1x16x16xf32> to vector<4x4x16x16xf32>
    %39 = arith.maximumf %36, %38 : vector<4x4x16x16xf32>
    %cst = arith.constant 0.0666666701 : f32
    %40 = vector.broadcast %cst : f32 to vector<4x4x16x16xf32>
    %41 = arith.mulf %31, %40 : vector<4x4x16x16xf32>
    %42 = arith.addf %41, %39 : vector<4x4x16x16xf32>
    %c0_7 = arith.constant 0 : index
    %c0_8 = arith.constant 0 : index
    %43 = vector.load %arg3[%c0_7, %c0_8] : memref<16x32xf32, #tpu.memory_space<vmem>>, vector<16x32xf32>
    %44 = vector.shape_cast %42 : vector<4x4x16x16xf32> to vector<256x16xf32>
    %cst_9 = arith.constant dense<0.000000e+00> : vector<256x32xf32>
    %45 = tpu.matmul %44, %43, %cst_9 {dimension_numbers = #tpu.dot_dimension_numbers<[1], [0], [0], [1], [0, 0, 1, 1], [], []>} : vector<256x16xf32>, vector<16x32xf32>, vector<256x32xf32> -> vector<256x32xf32>
    %c0_10 = arith.constant 0 : index
    %c0_11 = arith.constant 0 : index
    %46 = vector.load %arg4[%c0_10, %c0_11] : memref<1x32xf32, #tpu.memory_space<vmem>>, vector<1x32xf32>
    %47 = vector.broadcast %46 : vector<1x32xf32> to vector<256x32xf32>
    %48 = arith.addf %45, %47 : vector<256x32xf32>
    %cst_12 = arith.constant dense<0.000000e+00> : vector<256xf32>
    %49 = vector.multi_reduction <add>, %48, %cst_12 [1] : vector<256x32xf32> to vector<256xf32>
    %50 = vector.shape_cast %49 : vector<256xf32> to vector<256x1xf32>
    %cst_13 = arith.constant 3.200000e+01 : f32
    %51 = vector.broadcast %cst_13 : f32 to vector<256x1xf32>
    %52 = arith.divf %50, %51 : vector<256x1xf32>
    %53 = vector.broadcast %52 : vector<256x1xf32> to vector<256x32xf32>
    %54 = arith.subf %48, %53 : vector<256x32xf32>
    %55 = arith.mulf %54, %54 : vector<256x32xf32>
    %cst_14 = arith.constant dense<0.000000e+00> : vector<256xf32>
    %56 = vector.multi_reduction <add>, %55, %cst_14 [1] : vector<256x32xf32> to vector<256xf32>
    %57 = vector.shape_cast %56 : vector<256xf32> to vector<256x1xf32>
    %cst_15 = arith.constant 3.200000e+01 : f32
    %58 = vector.broadcast %cst_15 : f32 to vector<256x1xf32>
    %59 = arith.divf %57, %58 : vector<256x1xf32>
    %cst_16 = arith.constant 9.99999974E-6 : f32
    %60 = vector.broadcast %cst_16 : f32 to vector<256x1xf32>
    %61 = arith.addf %59, %60 : vector<256x1xf32>
    %62 = math.rsqrt %61 : vector<256x1xf32>
    %63 = vector.broadcast %62 : vector<256x1xf32> to vector<256x32xf32>
    %64 = arith.mulf %54, %63 : vector<256x32xf32>
    %c0_17 = arith.constant 0 : index
    %c0_18 = arith.constant 0 : index
    %65 = vector.load %arg5[%c0_17, %c0_18] : memref<1x32xf32, #tpu.memory_space<vmem>>, vector<1x32xf32>
    %66 = vector.broadcast %65 : vector<1x32xf32> to vector<256x32xf32>
    %67 = arith.mulf %64, %66 : vector<256x32xf32>
    %c0_19 = arith.constant 0 : index
    %c0_20 = arith.constant 0 : index
    %68 = vector.load %arg6[%c0_19, %c0_20] : memref<1x32xf32, #tpu.memory_space<vmem>>, vector<1x32xf32>
    %69 = vector.broadcast %68 : vector<1x32xf32> to vector<256x32xf32>
    %70 = arith.addf %67, %69 : vector<256x32xf32>
    %71 = vector.shape_cast %70 : vector<256x32xf32> to vector<4x4x16x32xf32>
    %c0_21 = arith.constant 0 : index
    %c0_22 = arith.constant 0 : index
    %c0_23 = arith.constant 0 : index
    %c0_24 = arith.constant 0 : index
    %72 = vector.load %arg7[%c0_21, %c0_22, %c0_23, %c0_24] : memref<4x4x16x32xf32, #tpu.memory_space<vmem>>, vector<4x4x16x32xf32>
    tpu.vector_store %arg7[%c0_21, %c0_22, %c0_23, %c0_24], %71 {strides = array<i32>} : memref<4x4x16x32xf32, #tpu.memory_space<vmem>>, vector<4x4x16x32xf32>,
    return
  }
  func.func @transform_0(%arg0: i32) -> (i32, i32, i32, i32) {
    %c0_i32 = arith.constant 0 : i32
    %c0_i32_0 = arith.constant 0 : i32
    %c0_i32_1 = arith.constant 0 : i32
    %c0_i32_2 = arith.constant 0 : i32
    return %arg0, %c0_i32, %c0_i32_0, %c0_i32_1 : i32, i32, i32, i32
  }
  func.func @transform_1(%arg0: i32) -> (i32, i32, i32, i32) {
    %c0_i32 = arith.constant 0 : i32
    %c0_i32_0 = arith.constant 0 : i32
    %c0_i32_1 = arith.constant 0 : i32
    %c0_i32_2 = arith.constant 0 : i32
    %c0_i32_3 = arith.constant 0 : i32
    return %c0_i32, %c0_i32_0, %c0_i32_1, %c0_i32_2 : i32, i32, i32, i32
  }
  func.func @transform_2(%arg0: i32) -> (i32, i32) {
    %c0_i32 = arith.constant 0 : i32
    %c0_i32_0 = arith.constant 0 : i32
    %c0_i32_1 = arith.constant 0 : i32
    return %c0_i32, %c0_i32_0 : i32, i32
  }
  func.func @transform_3(%arg0: i32) -> (i32, i32) {
    %c0_i32 = arith.constant 0 : i32
    %c0_i32_0 = arith.constant 0 : i32
    %c0_i32_1 = arith.constant 0 : i32
    return %c0_i32, %c0_i32_0 : i32, i32
  }
  func.func @transform_4(%arg0: i32) -> (i32, i32) {
    %c0_i32 = arith.constant 0 : i32
    %c0_i32_0 = arith.constant 0 : i32
    %c0_i32_1 = arith.constant 0 : i32
    return %c0_i32, %c0_i32_0 : i32, i32
  }
  func.func @transform_5(%arg0: i32) -> (i32, i32) {
    %c0_i32 = arith.constant 0 : i32
    %c0_i32_0 = arith.constant 0 : i32
    %c0_i32_1 = arith.constant 0 : i32
    return %c0_i32, %c0_i32_0 : i32, i32
  }
  func.func @transform_6(%arg0: i32) -> (i32, i32, i32, i32) {
    %c0_i32 = arith.constant 0 : i32
    %c0_i32_0 = arith.constant 0 : i32
    %c0_i32_1 = arith.constant 0 : i32
    %c0_i32_2 = arith.constant 0 : i32
    return %arg0, %c0_i32, %c0_i32_0, %c0_i32_1 : i32, i32, i32, i32
  }
}

</mosaic_0001>

<bundles_post_ra>
// kernel: subsample_pool.2
= control target key start
LH: loop header
LB: loop body
LE: loop exit
PB: predicated region body
PF: predicated region fallthrough
CT: control target
= control target key end

     0   :  { %s6260_s26 = smov 0   ;;  %s11659_s0 = inlined_call_operand.vmem [shape: f32[1,10,20,1], index: 0, kind: input, shape index: {}]   ;;  %s11660_s1 = inlined_call_operand.vmem [shape: f32[16,32], index: 1, kind: input, shape index: {}]   ;;  %s11661_s2 = inlined_call_operand.vmem [shape: f32[1,32], index: 2, kind: input, shape index: {}]   ;;  %s11662_s3 = inlined_call_operand.vmem [shape: f32[1,32], index: 3, kind: input, shape index: {}]   ;;  %s11663_s4 = inlined_call_operand.vmem [shape: f32[1,32], index: 4, kind: input, shape index: {}]   ;;  %s11664_s5 = inlined_call_operand.vmem [shape: f32[8,8,16,16], index: 5, kind: input, shape index: {}]   ;;  %s11665_s6 = inlined_call_operand.<no memory space> [shape: f32[], index: 6, kind: input, shape index: {}]   ;;  %s11666_s7 = inlined_call_operand.vmem [shape: f32[8,4,16,32], index: 7, kind: output, shape index: {}]  }
   0x1   :  { %v6258_v0 = vstv %s11665_s6 }
   0x2   :  { %11999 = vst [vmem:[#allocation8_spill] sm:$0xff] %v6258_v0 }
   0x3 LB: > { %s5814_s27 = sadd.s32 4294967295, %s6212_s26   ;;  %p5818_p0 = scmp.ge.s32.totalorder %s6212_s26, 1  ;;  %s6212_s26 = sphi %s6260_s26, %s18_s26  }
   0x4   : > { %p217_p1 = scmp.lt.s32.totalorder %s6212_s26, 3 }
   0x6   : > { %p218_p2 = pnand %p5818_p0, %p217_p1 }
   0x8   : > { %221 = sbr.rel (%p218_p2) target bundleno = 1285 (0x505), region = 44 }
   0x9   : > { %v12000_v0 = vld [vmem:[#allocation8_spill] sm:$0xff] }
   0xf   : > { %v1514_v1 = vld [vmem:[%s11659_s0 + $0x18] sm:$0xff]  ;;  %v1511_v2 = vld [vmem:[%s11659_s0] sm:$0xff]  ;;  %s5819_s8 = sshll.u32 %s5814_s27, 2  ;;  %267 = vst [vmem:[#allocation7] sm:$0xff] %v12000_v0  ;;  %274 = vst [vmem:[#allocation7 + $0x10] sm:$0xff] %v12000_v0  ;;  %v6214_v3 = vmov 0   ;;  %v278_v4 = vlaneseq }
  0x10   : > { %559 = vst [vmem:[#allocation7 + $0x100] sm:$0xff] %v12000_v0  ;;  %844 = vst [vmem:[#allocation7 + $0x1f0] sm:$0xff] %v12000_v0  ;;  %6031 = vset.pattern.permute.xlu1 %v6214_v3  ;;  %6030 = vset.pattern.permute.xlu0 %v6214_v3  ;;  %p251_p3 = scmp.lt.s32.totalorder %s5819_s8, 7  ;;  %v1515_v5 = vld [vmem:[%s11659_s0 + $0x20] sm:$0xff]  ;;  %v1512_v6 = vld [vmem:[%s11659_s0 + $0x8] sm:$0xff]  ;;  %vm283_vm1 = vcmask 1045504  }
  0x11   : > { %1129 = vst [vmem:[#allocation7 + $0x2e0] sm:$0xff] %v12000_v0  ;;  %1555 = vperm.xlu1 %6031, %v1514_v1   ;;  %1540 = vperm.xlu0 %6030, %v1511_v2   ;;  %v6288_v7 = vand.u32 127, %v278_v4  ;;  %v1516_v8 = vld [vmem:[%s11659_s0 + $0x28] sm:$0xf]  ;;  %v1513_v9 = vld [vmem:[%s11659_s0 + $0x10] sm:$0xf] }
  0x12   : > { %s12986_s8 = smov (!%p251_p3, %s5819_s8), 7  ;;  %v1518_v19 = vld [vmem:[%s11659_s0 + $0x38] sm:$0xff]  ;;  %v1517_v20 = vld [vmem:[%s11659_s0 + $0x30] sm:$0xff]  ;;  %v1520_v38 = vld [vmem:[%s11659_s0 + $0x48] sm:$0xff]  ;;  %v6402_v62 = vrot.slane %v12000_v0, 1  ;;  %vm1889_vm2 = vcmask 1046528  }
  0x13   : > { %s5927_s13 = sshll.u32 %s12986_s8, 7  ;;  %12001 = vst [vmem:[#allocation9_spill] sm:$0xff] %v6288_v7  ;;  %vm281_vm0 = vcmp.lt.s32.totalorder %v6288_v7, 16  ;;  %v1519_v39 = vld [vmem:[%s11659_s0 + $0x40] sm:$0xf]  ;;  %v1521_v52 = vld [vmem:[%s11659_s0 + $0x50] sm:$0xff] }
  0x14   : > { %s6299_s20 = scalar_lea.vmem %s11664_s5, %s5927_s13  ;;  %v1522_v51 = vld [vmem:[%s11659_s0 + $0x58] sm:$0xf]  ;;  %v1524_v56 = vld [vmem:[%s11659_s0 + $0x68] sm:$0xff]  ;;  %v1523_v57 = vld [vmem:[%s11659_s0 + $0x60] sm:$0xff]  ;;  %12002 = vst [vmem:[#allocation10_spill] sm:$0xff] %v6402_v62  ;;  %vm3295_vm3 = vcmask 1044480  }
  0x15   : > { %1560 = vperm.xlu1 %6031, %v1515_v5   ;;  %1545 = vperm.xlu0 %6030, %v1512_v6   ;;  %v5826_v10 = vld [vmem:[%s6299_s20] sm:$0xff]  ;;  %v5827_v17 = vld [vmem:[%s6299_s20 + $0x8] sm:$0xff]  ;;  %v1526_v58 = vld [vmem:[%s11659_s0 + $0x78] sm:$0xff]  ;;  %vm3944_vm4 = vcmask 1043456   ;;  %vm4794_vm5 = vcmask 130048   ;;  %vm5116_vm6 = vcmask 261120  }
  0x16   : > { %v5842_v11 = vld [vmem:[%s6299_s20 + $0x80] sm:$0xff]  ;;  %v282_v13 = vsel %vm281_vm0, %v5826_v10, %v12000_v0  ;;  %v5843_v18 = vld [vmem:[%s6299_s20 + $0x88] sm:$0xff]  ;;  %v295_v31 = vsel %vm281_vm0, %v5827_v17, %v12000_v0  ;;  %v5829_v59 = vld [vmem:[%s6299_s20 + $0x18] sm:$0xff]  ;;  %s5928_s29 = sshll.u32 %s12986_s8, 6 }
  0x17   : > { %v5858_v12 = vld [vmem:[%s6299_s20 + $0x100] sm:$0xff]  ;;  %v567_v14 = vsel %vm281_vm0, %v5842_v11, %v12000_v0  ;;  %v284_v21 = vsel %vm283_vm1, %v282_v13, %v12000_v0  ;;  %v5859_v25 = vld [vmem:[%s6299_s20 + $0x108] sm:$0xff]  ;;  %v580_v32 = vsel %vm281_vm0, %v5843_v18, %v12000_v0  ;;  %v297_v35 = vsel %vm283_vm1, %v295_v31, %v282_v13  ;;  %v5845_v60 = vld [vmem:[%s6299_s20 + $0x98] sm:$0xff]  ;;  %s11483_s11 = scalar_lea.vmem %s11666_s7, %s5928_s29 }
  0x18   : > { %v852_v15 = vsel %vm281_vm0, %v5858_v12, %v12000_v0  ;;  %v5874_v16 = vld [vmem:[%s6299_s20 + $0x180] sm:$0xff]  ;;  %v6327_v22 = vsel %vm283_vm1, %v567_v14, %v12000_v0  ;;  %v6335_v26 = vrot.slane %v284_v21, 6  ;;  %v865_v33 = vsel %vm281_vm0, %v5859_v25, %v12000_v0  ;;  %v5875_v34 = vld [vmem:[%s6299_s20 + $0x188] sm:$0xff]  ;;  %v1525_v61 = vld [vmem:[%s11659_s0 + $0x70] sm:$0xf] }
  0x19   : > { %1565 = vperm.xlu1 %6031, %v1516_v8   ;;  %1550 = vperm.xlu0 %6030, %v1513_v9   ;;  %v854_v23 = vsel %vm283_vm1, %v852_v15, %v12000_v0  ;;  %v1137_v24 = vsel %vm281_vm0, %v5874_v16, %v12000_v0  ;;  %v570_v27 = vrot.slane %v6327_v22, 6  ;;  %v582_v36 = vsel %vm283_vm1, %v580_v32, %v567_v14  ;;  %v5861_v63 = vld [vmem:[%s6299_s20 + $0x118] sm:$0xff]  ;;  %v1528_v4 = vld [vmem:[%s11659_s0 + $0x88] sm:$0xf]  ;;  %v1527_v5 = vld [vmem:[%s11659_s0 + $0x80] sm:$0xff] }
  0x1a   : > { %v6338_v28 = vrot.slane %v854_v23, 6  ;;  %v1139_v29 = vsel %vm283_vm1, %v1137_v24, %v12000_v0  ;;  %288 = vst [vmem:[#allocation7 + $0x18] sm:$0xff] %v6335_v26  ;;  %v867_v37 = vsel %vm283_vm1, %v865_v33, %v852_v15  ;;  %v6363_v40 = vrot.slane %v297_v35, 6  ;;  %v5877_v1 = vld [vmem:[%s6299_s20 + $0x198] sm:$0xff]  ;;  %v6420_v9 = vld [vmem:[#allocation7 + $0x100] sm:$0xf] }
  0x1b   : > { %v1140_v30 = vrot.slane %v1139_v29, 6  ;;  %573 = vst [vmem:[#allocation7 + $0x108] sm:$0xff] %v570_v27  ;;  %v583_v41 = vrot.slane %v582_v36, 6  ;;  %v6365_v42 = vrot.slane %v867_v37, 6  ;;  %v1150_v43 = vsel %vm281_vm0, %v5875_v34, %v12000_v0  ;;  %v6418_v8 = vld [vmem:[#allocation7 + $0x10] sm:$0xf] }
  0x1c   : > { %858 = vst [vmem:[#allocation7 + $0x1f8] sm:$0xff] %v6338_v28  ;;  %301 = vst [vmem:[#allocation7 + $0x20] sm:$0xff] %v6363_v40  ;;  %v1152_v44 = vsel %vm283_vm1, %v1150_v43, %v1137_v24  ;;  %v303_v45 = vsel %vm283_vm1, %v12000_v0, %v295_v31  ;;  %v588_v46 = vsel %vm283_vm1, %v12000_v0, %v580_v32  ;;  %v6406_v2 = vrot.slane %v570_v27, 1  ;;  %v6430_v13 = vld [vmem:[#allocation7 + $0x1f0] sm:$0xf]  ;;  %v5828_v21 = vld [vmem:[%s6299_s20 + $0x10] sm:$0xff] }
  0x1d   : > { %1575 = vperm.xlu1 %6031, %v1518_v19   ;;  %1570 = vperm.xlu0 %6030, %v1517_v20   ;;  %1143 = vst [vmem:[#allocation7 + $0x2e8] sm:$0xff] %v1140_v30  ;;  %586 = vst [vmem:[#allocation7 + $0x110] sm:$0xff] %v583_v41  ;;  %v1153_v47 = vrot.slane %v1152_v44, 6  ;;  %v304_v48 = vrot.slane %v303_v45, 6  ;;  %v589_v49 = vrot.slane %v588_v46, 6  ;;  %v873_v50 = vsel %vm283_vm1, %v12000_v0, %v865_v33  ;;  %v5844_v24 = vld [vmem:[%s6299_s20 + $0x90] sm:$0xff] }
  0x1e   : > { %871 = vst [vmem:[#allocation7 + $0x200] sm:$0xff] %v6365_v42  ;;  %v874_v53 = vrot.slane %v873_v50, 6  ;;  %v1158_v54 = vsel %vm283_vm1, %v12000_v0, %v1150_v43  ;;  %12003 = vst [vmem:[#allocation11_spill] sm:$0xff] %v6406_v2  ;;  %v6408_v3 = vrot.slane %v1140_v30, 1  ;;  %v6416_v6 = vrot.slane %v583_v41, 1  ;;  %v5860_v25 = vld [vmem:[%s6299_s20 + $0x110] sm:$0xff] }
  0x1f   : > { %1156 = vst [vmem:[#allocation7 + $0x2f0] sm:$0xff] %v1153_v47  ;;  %307 = vst [vmem:[#allocation7 + $0x28] sm:$0xff] %v304_v48  ;;  %v1159_v55 = vrot.slane %v1158_v54, 6  ;;  %v328_v10 = vsel %vm281_vm0, %v5829_v59, %v12000_v0  ;;  %v613_v11 = vsel %vm281_vm0, %v5845_v60, %v12000_v0  ;;  %v6428_v12 = vrot.slane %v1153_v47, 1  ;;  %v6432_v14 = vld [vmem:[#allocation7 + $0x2e0] sm:$0xf] }
  0x20   : > { %592 = vst [vmem:[#allocation7 + $0x118] sm:$0xff] %v589_v49  ;;  %877 = vst [vmem:[#allocation7 + $0x208] sm:$0xff] %v874_v53  ;;  %v898_v16 = vsel %vm281_vm0, %v5861_v63, %v12000_v0  ;;  %v1183_v17 = vsel %vm281_vm0, %v5877_v1, %v12000_v0  ;;  %v5876_v27 = vld [vmem:[%s6299_s20 + $0x190] sm:$0xff]  ;;  %v336_v29 = vsel %vm283_vm1, %v12000_v0, %v328_v10  ;;  %v1530_v41 = vld [vmem:[%s11659_s0 + $0x98] sm:$0xff] }
  0x21   : > { %1585 = vperm.xlu1 %6031, %v1520_v38   ;;  %1580 = vperm.xlu0 %6030, %v1519_v39   ;;  %1162 = vst [vmem:[#allocation7 + $0x2f8] sm:$0xff] %v1159_v55  ;;  %12004 = vst [vmem:[#allocation12_spill] sm:$0xff] %v6408_v3  ;;  %v6456_v30 = vsel %vm283_vm1, %v12000_v0, %v613_v11  ;;  %v6464_v34 = vsel %vm283_vm1, %v12000_v0, %v898_v16  ;;  %v1529_v43 = vld [vmem:[%s11659_s0 + $0x90] sm:$0xff]  ;;  %v5878_v63 = vld [vmem:[%s6299_s20 + $0x1a0] sm:$0xff]  ;;  %v337_v1 = vrot.slane %v336_v29, 6 }
  0x22   : > { %12005 = vst [vmem:[#allocation13_spill] sm:$0xff] %v6416_v6  ;;  %12006 = vst [vmem:[#allocation14_spill] sm:$0xff] %v6420_v9  ;;  %v6468_v35 = vsel %vm283_vm1, %v12000_v0, %v1183_v17  ;;  %v315_v44 = vsel %vm281_vm0, %v5828_v21, %v12000_v0  ;;  %v600_v45 = vsel %vm281_vm0, %v5844_v24, %v12000_v0  ;;  %v5865_v38 = vld [vmem:[%s6299_s20 + $0x138] sm:$0xff]  ;;  %v5834_v22 = vld [vmem:[%s6299_s20 + $0x40] sm:$0xff] }
  0x23   : > { %12007 = vst [vmem:[#allocation15_spill] sm:$0xff] %v6428_v12  ;;  %12008 = vst [vmem:[#allocation16_spill] sm:$0xff] %v6430_v13  ;;  %v885_v46 = vsel %vm281_vm0, %v5860_v25, %v12000_v0  ;;  %v1170_v47 = vsel %vm281_vm0, %v5876_v27, %v12000_v0  ;;  %v330_v48 = vsel %vm283_vm1, %v328_v10, %v315_v44  ;;  %v6108_v6 = vld [vmem:[#allocation7 + $0x10] sm:$0xf] }
  0x24   : > { %12009 = vst [vmem:[#allocation17_spill] sm:$0xff] %v6432_v14  ;;  %v615_v49 = vsel %vm283_vm1, %v613_v11, %v600_v45  ;;  %v900_v50 = vsel %vm283_vm1, %v898_v16, %v885_v46  ;;  %v6497_v53 = vrot.slane %v330_v48, 6  ;;  %v317_v59 = vsel %vm283_vm1, %v315_v44, %v12000_v0  ;;  %340 = vst [vmem:[#allocation7 + $0x40] sm:$0xff] %v337_v1  ;;  %v1534_v48 = vld [vmem:[%s11659_s0 + $0xb8] sm:$0xf] }
  0x25   : > { %1595 = vperm.xlu1 %6031, %v1522_v51   ;;  %1590 = vperm.xlu0 %6030, %v1521_v52   ;;  %v1185_v51 = vsel %vm283_vm1, %v1183_v17, %v1170_v47  ;;  %v5830_v52 = vld [vmem:[%s6299_s20 + $0x20] sm:$0xff]  ;;  %v616_v54 = vrot.slane %v615_v49, 6  ;;  %v6499_v55 = vrot.slane %v900_v50, 6  ;;  %v602_v60 = vsel %vm283_vm1, %v600_v45, %v12000_v0  ;;  %v5831_v45 = vld [vmem:[%s6299_s20 + $0x28] sm:$0xff] }
  0x26   : > { %v6441_v18 = vld [vmem:[#allocation7 + $0x28] sm:$0xf]  ;;  %334 = vst [vmem:[#allocation7 + $0x38] sm:$0xff] %v6497_v53  ;;  %v6518_v10 = vrot.slane %v317_v59, 6  ;;  %v603_v11 = vrot.slane %v602_v60, 6  ;;  %v1172_v17 = vsel %vm283_vm1, %v1170_v47, %v12000_v0  ;;  %v348_v24 = vsel %vm281_vm0, %v5830_v52, %v12000_v0  ;;  %v5863_v47 = vld [vmem:[%s6299_s20 + $0x128] sm:$0xff] }
  0x27   : > { %v6443_v19 = vld [vmem:[#allocation7 + $0x118] sm:$0xf]  ;;  %v6458_v31 = vld [vmem:[#allocation7 + $0x208] sm:$0xf]  ;;  %12011 = vst [vmem:[#allocation19_spill] sm:$0xff] %v6499_v55  ;;  %619 = vst [vmem:[#allocation7 + $0x128] sm:$0xff] %v616_v54  ;;  %v350_v29 = vsel %vm283_vm1, %v348_v24, %v12000_v0  ;;  %v1203_v44 = vsel %vm281_vm0, %v5878_v63, %v12000_v0  ;;  %v361_v63 = vsel %vm281_vm0, %v5831_v45, %v12000_v0 }
  0x28   : > { %12010 = vst [vmem:[#allocation18_spill] sm:$0xff] %v6443_v19  ;;  %904 = vst [vmem:[#allocation7 + $0x218] sm:$0xff] %v6499_v55  ;;  %v1173_v21 = vrot.slane %v1172_v17, 6  ;;  %v6552_v49 = vrot.slane %v350_v29, 6  ;;  %v6559_v52 = vsel %vm283_vm1, %v1203_v44, %v12000_v0  ;;  %v1533_v54 = vld [vmem:[%s11659_s0 + $0xb0] sm:$0xff]  ;;  %v1192_v59 = vrot.slane %v6468_v35, 6 }
  0x29   : > { %1605 = vperm.xlu1 %6031, %v1524_v56   ;;  %1600 = vperm.xlu0 %6030, %v1523_v57   ;;  %v1186_v56 = vrot.slane %v1185_v51, 6  ;;  %v5846_v57 = vld [vmem:[%s6299_s20 + $0xa0] sm:$0xff]  ;;  %321 = vst [vmem:[#allocation7 + $0x30] sm:$0xff] %v6518_v10  ;;  %606 = vst [vmem:[#allocation7 + $0x120] sm:$0xff] %v603_v11  ;;  %v5879_v60 = vld [vmem:[%s6299_s20 + $0x1a8] sm:$0xff]  ;;  %v369_v1 = vsel %vm283_vm1, %v12000_v0, %v361_v63  ;;  %v3301_v14 = vrot.slane %v6335_v26, 3 }
  0x2a   : > { %v633_v25 = vsel %vm281_vm0, %v5846_v57, %v12000_v0  ;;  %1176 = vst [vmem:[#allocation7 + $0x300] sm:$0xff] %v1173_v21  ;;  %v622_v57 = vrot.slane %v6456_v30, 6  ;;  %354 = vst [vmem:[#allocation7 + $0x48] sm:$0xff] %v6552_v49  ;;  %v370_v11 = vrot.slane %v369_v1, 6  ;;  %v1216_v29 = vsel %vm281_vm0, %v5879_v60, %v12000_v0  ;;  %v1535_v45 = vld [vmem:[%s11659_s0 + $0xc0] sm:$0xff]  ;;  %v5848_v35 = vld [vmem:[%s6299_s20 + $0xb0] sm:$0xff] }
  0x2b   : > { %1189 = vst [vmem:[#allocation7 + $0x308] sm:$0xff] %v1186_v56  ;;  %v1206_v56 = vrot.slane %v6559_v52, 6  ;;  %1195 = vst [vmem:[#allocation7 + $0x310] sm:$0xff] %v1192_v59  ;;  %v666_v20 = vsel %vm281_vm0, %v5848_v35, %v12000_v0  ;;  %v5864_v59 = vld [vmem:[%s6299_s20 + $0x130] sm:$0xff]  ;;  %v3950_v19 = vrot.slane %v6335_v26, 4 }
  0x2c   : > { %625 = vst [vmem:[#allocation7 + $0x130] sm:$0xff] %v622_v57  ;;  %373 = vst [vmem:[#allocation7 + $0x58] sm:$0xff] %v370_v11  ;;  %v5880_v60 = vld [vmem:[%s6299_s20 + $0x1b0] sm:$0xff]  ;;  %v951_v36 = vsel %vm281_vm0, %v5864_v59, %v12000_v0  ;;  %v668_v59 = vsel %vm283_vm1, %v666_v20, %v12000_v0 }
  0x2d   : > { %1615 = vperm.xlu1 %6031, %v1526_v58   ;;  %1610 = vperm.xlu0 %6030, %v1525_v61   ;;  %v5862_v58 = vld [vmem:[%s6299_s20 + $0x120] sm:$0xff]  ;;  %v887_v61 = vsel %vm283_vm1, %v885_v46, %v12000_v0  ;;  %v5847_v46 = vld [vmem:[%s6299_s20 + $0xa8] sm:$0xff]  ;;  %1209 = vst [vmem:[#allocation7 + $0x318] sm:$0xff] %v1206_v56 }
  0x2e   : > { %v6520_v16 = vrot.slane %v887_v61, 6  ;;  %v918_v27 = vsel %vm281_vm0, %v5862_v58, %v12000_v0  ;;  %v907_v58 = vrot.slane %v6464_v34, 6  ;;  %v646_v30 = vsel %vm281_vm0, %v5847_v46, %v12000_v0  ;;  %v6601_v46 = vld [vmem:[#allocation7 + $0x2f8] sm:$0xf] }
  0x2f   : > { %v931_v34 = vsel %vm281_vm0, %v5863_v47, %v12000_v0  ;;  %12012 = vst [vmem:[#allocation20_spill] sm:$0xff] %v6601_v46  ;;  %v1224_v47 = vsel %vm283_vm1, %v12000_v0, %v1216_v29 }
  0x30   : > { %891 = vst [vmem:[#allocation7 + $0x210] sm:$0xff] %v6520_v16  ;;  %910 = vst [vmem:[#allocation7 + $0x220] sm:$0xff] %v907_v58  ;;  %v933_v57 = vsel %vm283_vm1, %v931_v34, %v918_v27  ;;  %v1225_v1 = vrot.slane %v1224_v47, 6  ;;  %v5849_v47 = vld [vmem:[%s6299_s20 + $0xb8] sm:$0xff] }
  0x31   : > { %1625 = vperm.xlu1 %6031, %v1528_v4   ;;  %1620 = vperm.xlu0 %6030, %v1527_v5   ;;  %v1532_v4 = vld [vmem:[%s11659_s0 + $0xa8] sm:$0xff]  ;;  %v1531_v5 = vld [vmem:[%s11659_s0 + $0xa0] sm:$0xf]  ;;  %v6613_v23 = vrot.slane %v933_v57, 6  ;;  %v6655_v57 = vrot.slane %v1206_v56, 1  ;;  %v679_v11 = vsel %vm281_vm0, %v5849_v47, %v12000_v0 }
  0x32   : > { %1228 = vst [vmem:[#allocation7 + $0x328] sm:$0xff] %v1225_v1 }
  0x33   : > { %12014 = vst [vmem:[#allocation22_spill] sm:$0xff] %v6613_v23  ;;  %937 = vst [vmem:[#allocation7 + $0x230] sm:$0xff] %v6613_v23 }
  0x34   : > { %12016 = vst [vmem:[#allocation24_spill] sm:$0xff] %v6655_v57 }
  0x35   : > { %1635 = vperm.xlu1 %6031, %v1530_v41   ;;  %1630 = vperm.xlu0 %6030, %v1529_v43   ;;  %v6539_v41 = vsel %vm283_vm1, %v633_v25, %v12000_v0  ;;  %v920_v43 = vsel %vm283_vm1, %v918_v27, %v12000_v0  ;;  %v5850_v27 = vld [vmem:[%s6299_s20 + $0xc0] sm:$0xff] }
  0x36   : > { %v636_v50 = vrot.slane %v6539_v41, 6  ;;  %v6555_v51 = vrot.slane %v920_v43, 6  ;;  %v1536_v43 = vld [vmem:[%s11659_s0 + $0xc8] sm:$0xff]  ;;  %v6664_v41 = vld [vmem:[#allocation7 + $0x310] sm:$0xf] }
  0x37   : > { %12019 = vst [vmem:[#allocation27_spill] sm:$0xff] %v6664_v41 }
  0x38   : > { %639 = vst [vmem:[#allocation7 + $0x138] sm:$0xff] %v636_v50  ;;  %924 = vst [vmem:[#allocation7 + $0x228] sm:$0xff] %v6555_v51  ;;  %v6648_v58 = vrot.slane %v636_v50, 1  ;;  %v953_v50 = vsel %vm283_vm1, %v951_v36, %v12000_v0 }
  0x39   : > { %1645 = vperm.xlu1 %6031, %v1532_v4   ;;  %1640 = vperm.xlu0 %6030, %v1531_v5   ;;  %v654_v4 = vsel %vm283_vm1, %v12000_v0, %v646_v30  ;;  %v939_v5 = vsel %vm283_vm1, %v12000_v0, %v931_v34  ;;  %v1537_v34 = vld [vmem:[%s11659_s0 + $0xd0] sm:$0xf] }
  0x3a   : > { %v655_v17 = vrot.slane %v654_v4, 6  ;;  %v940_v21 = vrot.slane %v939_v5, 6  ;;  %12015 = vst [vmem:[#allocation23_spill] sm:$0xff] %v6648_v58  ;;  %v6815_v15 = vld [vmem:[#allocation7 + $0x328] sm:$0xf] }
  0x3b   : > { %12025 = vst [vmem:[#allocation33_spill] sm:$0xff] %v6815_v15 }
  0x3c   : > { %658 = vst [vmem:[#allocation7 + $0x148] sm:$0xff] %v655_v17  ;;  %943 = vst [vmem:[#allocation7 + $0x238] sm:$0xff] %v940_v21  ;;  %v5881_v21 = vld [vmem:[%s6299_s20 + $0x1b8] sm:$0xff] }
  0x3d   : > { %1655 = vperm.xlu1 %6031, %v1534_v48   ;;  %1650 = vperm.xlu0 %6030, %v1533_v54   ;;  %v363_v48 = vsel %vm283_vm1, %v361_v63, %v348_v24  ;;  %v648_v54 = vsel %vm283_vm1, %v646_v30, %v633_v25  ;;  %v6616_v24 = vsel %vm283_vm1, %v1216_v29, %v1203_v44  ;;  %v5833_v25 = vld [vmem:[%s6299_s20 + $0x38] sm:$0xff]  ;;  %v5832_v63 = vld [vmem:[%s6299_s20 + $0x30] sm:$0xff] }
  0x3e   : > { %v6611_v4 = vrot.slane %v363_v48, 6  ;;  %v649_v5 = vrot.slane %v648_v54, 6  ;;  %v1219_v30 = vrot.slane %v6616_v24, 6  ;;  %v6635_v48 = vld [vmem:[#allocation7 + $0x40] sm:$0xf]  ;;  %v381_v52 = vsel %vm281_vm0, %v5832_v63, %v12000_v0 }
  0x3f   : > { %v6657_v44 = vld [vmem:[#allocation7 + $0x130] sm:$0xf]  ;;  %v394_v56 = vsel %vm281_vm0, %v5833_v25, %v12000_v0  ;;  %v6688_v25 = vsel %vm281_vm0, %v5865_v38, %v12000_v0  ;;  %v6693_v35 = vsel %vm281_vm0, %v5881_v21, %v12000_v0  ;;  %v681_v38 = vsel %vm283_vm1, %v679_v11, %v666_v20 }
  0x40   : > { %12013 = vst [vmem:[#allocation21_spill] sm:$0xff] %v6611_v4  ;;  %367 = vst [vmem:[#allocation7 + $0x50] sm:$0xff] %v6611_v4  ;;  %v6683_v39 = vrot.slane %v649_v5, 1  ;;  %v396_v29 = vsel %vm283_vm1, %v394_v56, %v381_v52  ;;  %v1236_v21 = vsel %vm281_vm0, %v5880_v60, %v12000_v0  ;;  %v682_v47 = vrot.slane %v681_v38, 6  ;;  %v5882_v60 = vld [vmem:[%s6299_s20 + $0x1c0] sm:$0xff] }
  0x41   : > { %1665 = vperm.xlu1 %6031, %v1536_v43   ;;  %1660 = vperm.xlu0 %6030, %v1535_v45   ;;  %652 = vst [vmem:[#allocation7 + $0x140] sm:$0xff] %v649_v5  ;;  %1222 = vst [vmem:[#allocation7 + $0x320] sm:$0xff] %v1219_v30  ;;  %v6662_v43 = vld [vmem:[#allocation7 + $0x220] sm:$0xf]  ;;  %v397_v63 = vrot.slane %v396_v29, 6  ;;  %v966_v54 = vsel %vm283_vm1, %v6688_v25, %v951_v36  ;;  %v1251_v5 = vsel %vm283_vm1, %v6693_v35, %v1236_v21  ;;  %v5866_v45 = vld [vmem:[%s6299_s20 + $0x140] sm:$0xff] }
  0x42   : > { %12017 = vst [vmem:[#allocation25_spill] sm:$0xff] %v6657_v44  ;;  %12018 = vst [vmem:[#allocation26_spill] sm:$0xff] %v6662_v43  ;;  %v967_v1 = vrot.slane %v966_v54, 6  ;;  %v1252_v33 = vrot.slane %v1251_v5, 6  ;;  %v383_v61 = vsel %vm283_vm1, %v381_v52, %v12000_v0  ;;  %v669_v38 = vrot.slane %v668_v59, 6 }
  0x43   : > { %12020 = vst [vmem:[#allocation28_spill] sm:$0xff] %v6683_v39  ;;  %400 = vst [vmem:[#allocation7 + $0x68] sm:$0xff] %v397_v63  ;;  %v384_v29 = vrot.slane %v383_v61, 6  ;;  %v1238_v37 = vsel %vm283_vm1, %v1236_v21, %v12000_v0  ;;  %v954_v54 = vrot.slane %v953_v50, 6  ;;  %v6726_v20 = vsel %vm281_vm0, %v5834_v22, %v12000_v0 }
  0x44   : > { %685 = vst [vmem:[#allocation7 + $0x158] sm:$0xff] %v682_v47  ;;  %970 = vst [vmem:[#allocation7 + $0x248] sm:$0xff] %v967_v1  ;;  %v1239_v5 = vrot.slane %v1238_v37, 6  ;;  %v6731_v61 = vsel %vm281_vm0, %v5850_v27, %v12000_v0  ;;  %v6736_v36 = vsel %vm283_vm1, %v6726_v20, %v12000_v0  ;;  %v6746_v22 = vsel %vm281_vm0, %v5866_v45, %v12000_v0 }
  0x45   : > { %1670 = vperm.xlu0 %6030, %v1537_v34   ;;  %1255 = vst [vmem:[#allocation7 + $0x338] sm:$0xff] %v1252_v33  ;;  %387 = vst [vmem:[#allocation7 + $0x60] sm:$0xff] %v384_v29  ;;  %v6741_v33 = vsel %vm283_vm1, %v6731_v61, %v12000_v0  ;;  %v6751_v37 = vsel %vm281_vm0, %v5882_v60, %v12000_v0  ;;  %v417_v27 = vrot.slane %v6736_v36, 6  ;;  %v6796_v59 = vrot.slane %v1219_v30, 1 }
  0x46   : > { %672 = vst [vmem:[#allocation7 + $0x150] sm:$0xff] %v669_v38  ;;  %957 = vst [vmem:[#allocation7 + $0x240] sm:$0xff] %v954_v54  ;;  %v702_v1 = vrot.slane %v6741_v33, 6  ;;  %v6758_v50 = vsel %vm283_vm1, %v6746_v22, %v12000_v0  ;;  %v6763_v45 = vsel %vm283_vm1, %v6751_v37, %v12000_v0  ;;  %v402_v47 = vsel %vm283_vm1, %v12000_v0, %v394_v56  ;;  %v6779_v56 = vld [vmem:[#allocation7 + $0x58] sm:$0xf] }
  0x47   : > { %1242 = vst [vmem:[#allocation7 + $0x330] sm:$0xff] %v1239_v5  ;;  %v11668_v52 = vrot.slane %v6758_v50, 6  ;;  %v11667_v63 = vrot.slane %v6763_v45, 6  ;;  %v687_v21 = vsel %vm283_vm1, %v12000_v0, %v679_v11  ;;  %420 = vst [vmem:[#allocation7 + $0x78] sm:$0xff] %v417_v27  ;;  %v403_v29 = vrot.slane %v402_v47, 6 }
  0x48   : > { %705 = vst [vmem:[#allocation7 + $0x168] sm:$0xff] %v702_v1  ;;  %v688_v38 = vrot.slane %v687_v21, 6  ;;  %12021 = vst [vmem:[#allocation29_spill] sm:$0xff] %v6779_v56  ;;  %v972_v11 = vsel %vm283_vm1, %v12000_v0, %v6688_v25  ;;  %v1257_v47 = vsel %vm283_vm1, %v12000_v0, %v6693_v35  ;;  %v6791_v21 = vld [vmem:[#allocation7 + $0x148] sm:$0xf]  ;;  %v4785_v25 = vld [vmem:[%s11660_s1] sm:$0xff] }
  0x49   : > { %990 = vst [vmem:[#allocation7 + $0x258] sm:$0xff] %v11668_v52  ;;  %1275 = vst [vmem:[#allocation7 + $0x348] sm:$0xff] %v11667_v63  ;;  %v973_v60 = vrot.slane %v972_v11, 6  ;;  %v1258_v54 = vrot.slane %v1257_v47, 6  ;;  %v4786_v35 = vld [vmem:[%s11660_s1 + $0x8] sm:$0xff]  ;;  %v1895_v5 = vrot.slane %v6335_v26, 1 }
  0x4a   : > { %12022 = vst [vmem:[#allocation30_spill] sm:$0xff] %v6791_v21  ;;  %12023 = vst [vmem:[#allocation31_spill] sm:$0xff] %v6796_v59  ;;  %v6015_v24 = vpack.c.bf16 %v4786_v35, %v4785_v25  ;;  %v11670_v30 = vrot.slane %v6363_v40, 1  ;;  %v6809_v11 = vld [vmem:[#allocation7 + $0x238] sm:$0xf]  ;;  %v1905_v34 = vrot.slane %v6552_v49, 1 }
  0x4b   : > { %406 = vst [vmem:[#allocation7 + $0x70] sm:$0xff] %v403_v29  ;;  %691 = vst [vmem:[#allocation7 + $0x160] sm:$0xff] %v688_v38  ;;  %v1900_v29 = vrot.slane %v6518_v10, 1  ;;  %v11669_v38 = vrot.slane %v6497_v53, 1  ;;  %v11671_v32 = vrot.slane %v6611_v4, 1  ;;  %v12030_v47 = vrot.slane %v6758_v50, 6 }
  0x4c   : > { %976 = vst [vmem:[#allocation7 + $0x250] sm:$0xff] %v973_v60  ;;  %1261 = vst [vmem:[#allocation7 + $0x340] sm:$0xff] %v1258_v54  ;;  %6016 = vmatprep.subr.bf16.mxu0 %v6015_v24  ;;  %6019 = vmatprep.subr.bf16.mxu1 %v6015_v24  ;;  %v6829_v54 = vsel %vm1889_vm2, %v6402_v62, %v6402_v62  ;;  %v1897_v35 = vsel %vm1889_vm2, %v1895_v5, %v11670_v30  ;;  %v6849_v5 = vrot.slane %v417_v27, 1 }
  0x4d   : > { %12024 = vst [vmem:[#allocation32_spill] sm:$0xff] %v6809_v11  ;;  %6018 = vmatpush3.bf16.msra.mxu0 %v6015_v24  ;;  %6020 = vmatpush3.bf16.msra.mxu1 %v6015_v24  ;;  %12026 = vst [vmem:[#allocation34_spill] sm:$0xff] %v6829_v54  ;;  %v1902_v17 = vsel %vm1889_vm2, %v1900_v29, %v11669_v38  ;;  %v1907_v60 = vsel %vm1889_vm2, %v1905_v34, %v11671_v32  ;;  %v6853_v29 = vrot.slane %v702_v1, 1 }
  0x4e   : > { %12028 = vst [vmem:[#allocation36_spill] sm:$0xff] %v6849_v5  ;;  %v6857_v52 = vrot.slane %v12030_v47, 1  ;;  %v12032_v38 = vrot.slane %v6763_v45, 6  ;;  %v2142_v34 = vadd.f32 %v6829_v54, %v12000_v0  ;;  %v2144_v25 = vadd.f32 %v1897_v35, %v6335_v26  ;;  %v6109_v5 = vld [vmem:[#allocation7 + $0x100] sm:$0xf] }
  0x4f   : > { %12029 = vst [vmem:[#allocation37_spill] sm:$0xff] %v6853_v29  ;;  %v2146_v36 = vadd.f32 %v1902_v17, %v6518_v10  ;;  %v2148_v50 = vadd.f32 %v1907_v60, %v6552_v49  ;;  %v2652_v32 = vrot.slane %v6335_v26, 2  ;;  %v11676_v35 = vrot.slane %v6363_v40, 2 }
  0x50   : > { %12031 = vst [vmem:[#allocation38_spill] sm:$0xff] %v6857_v52  ;;  %v6861_v30 = vrot.slane %v12032_v38, 1  ;;  %v6874_v38 = vrot.slane %v12000_v0, 2  ;;  %v2657_v17 = vrot.slane %v6518_v10, 2  ;;  %v11677_v27 = vrot.slane %v6497_v53, 2 }
  0x51   : > { %v2662_v60 = vrot.slane %v6552_v49, 2  ;;  %v11678_v47 = vrot.slane %v6611_v4, 2  ;;  %v2654_v45 = vsel %vm283_vm1, %v2652_v32, %v11676_v35  ;;  %v6894_v29 = vrot.slane %v12000_v0, 3 }
  0x52   : > { %v6839_v24 = vld [vmem:[#allocation7 + $0x70] sm:$0xf]  ;;  %v6841_v63 = vld [vmem:[#allocation7 + $0x160] sm:$0xf]  ;;  %12033 = vst [vmem:[#allocation39_spill] sm:$0xff] %v6861_v30  ;;  %12034 = vst [vmem:[#allocation40_spill] sm:$0xff] %v6874_v38  ;;  %v2649_v33 = vsel %vm283_vm1, %v6874_v38, %v6874_v38  ;;  %v2659_v1 = vsel %vm283_vm1, %v2657_v17, %v11677_v27  ;;  %v2901_v59 = vadd.f32 %v2654_v45, %v2144_v25 }
  0x53   : > { %12027 = vst [vmem:[#allocation35_spill] sm:$0xff] %v6841_v63  ;;  %v6891_v30 = vadd.f32 %v2649_v33, %v2142_v34  ;;  %v2664_v57 = vsel %vm283_vm1, %v2662_v60, %v11678_v47  ;;  %v2903_v58 = vadd.f32 %v2659_v1, %v2146_v36  ;;  %v11681_v32 = vrot.slane %v6363_v40, 3 }
  0x54   : > { %v2905_v39 = vadd.f32 %v2664_v57, %v2148_v50  ;;  %v3306_v35 = vrot.slane %v6518_v10, 3  ;;  %v3298_v34 = vsel %vm3295_vm3, %v6894_v29, %v6894_v29  ;;  %v11683_v33 = vrot.slane %v6497_v53, 3 }
  0x55   : > { %v3311_v17 = vrot.slane %v6552_v49, 3  ;;  %v11684_v27 = vrot.slane %v6611_v4, 3  ;;  %v3303_v57 = vsel %vm3295_vm3, %v3301_v14, %v11681_v32  ;;  %v3548_v25 = vadd.f32 %v3298_v34, %v6891_v30 }
  0x56   : > { %v6913_v36 = vrot.slane %v12000_v0, 4  ;;  %v3308_v1 = vsel %vm3295_vm3, %v3306_v35, %v11683_v33  ;;  %v3550_v45 = vadd.f32 %v3303_v57, %v2901_v59  ;;  %v11685_v14 = vrot.slane %v6363_v40, 4  ;;  %v6929_v33 = vld [vmem:[#allocation7 + $0x250] sm:$0xf]  ;;  %v6935_v59 = vld [vmem:[#allocation7 + $0x340] sm:$0xf] }
  0x57   : > { %v3313_v50 = vsel %vm3295_vm3, %v3311_v17, %v11684_v27  ;;  %v3552_v60 = vadd.f32 %v3308_v1, %v2903_v58  ;;  %v3955_v32 = vrot.slane %v6518_v10, 4  ;;  %v11691_v0 = vrot.slane %v6497_v53, 4  ;;  %12035 = vst [vmem:[#allocation41_spill] sm:$0xff] %v6929_v33  ;;  %12036 = vst [vmem:[#allocation42_spill] sm:$0xff] %v6935_v59 }
  0x58   : > { %v3554_v47 = vadd.f32 %v3313_v50, %v2905_v39  ;;  %v3947_v34 = vsel %vm3944_vm4, %v6913_v36, %v6913_v36  ;;  %v3960_v35 = vrot.slane %v6552_v49, 4  ;;  %v3952_v39 = vsel %vm3944_vm4, %v3950_v19, %v11685_v14 }
  0x59   : > { %v11686_v26 = vrot.slane %v6611_v4, 4  ;;  %v4197_v58 = vadd.f32 %v3947_v34, %v3548_v25  ;;  %v3957_v17 = vsel %vm3944_vm4, %v3955_v32, %v11691_v0  ;;  %v4199_v10 = vadd.f32 %v3952_v39, %v3550_v45  ;;  %v6110_v4 = vld [vmem:[#allocation7 + $0x1f0] sm:$0xf] }
  0x5a   : > { %v1985_v57 = vrot.slane %v6338_v28, 1  ;;  %v11689_v19 = vrot.slane %v6365_v42, 1  ;;  %v1990_v50 = vrot.slane %v6520_v16, 1  ;;  %v4201_v34 = vadd.f32 %v3957_v17, %v3552_v60 }
  0x5b   : > { %v3962_v1 = vsel %vm3944_vm4, %v3960_v35, %v11686_v26  ;;  %v4593_v27 = vadd.f32 %v4199_v10, %v4197_v58  ;;  %v11688_v45 = vrot.slane %v6499_v55, 1  ;;  %v1995_v49 = vrot.slane %v6555_v51, 1 }
  0x5c   : > { %v1987_v32 = vsel %vm1889_vm2, %v1985_v57, %v11689_v19  ;;  %v4203_v39 = vadd.f32 %v3962_v1, %v3554_v47  ;;  %v11687_v35 = vrot.slane %v6613_v23, 1  ;;  %v2742_v58 = vrot.slane %v6338_v28, 2 }
  0x5d   : > { %v1992_v26 = vsel %vm1889_vm2, %v1990_v50, %v11688_v45  ;;  %v2180_v60 = vadd.f32 %v1987_v32, %v6338_v28  ;;  %v4625_v17 = vadd.f32 %v4593_v27, %v4201_v34  ;;  %v11690_v47 = vrot.slane %v6365_v42, 2 }
  0x5e   : > { %v1997_v10 = vsel %vm1889_vm2, %v1995_v49, %v11687_v35  ;;  %v2182_v57 = vadd.f32 %v1992_v26, %v6520_v16  ;;  %v2747_v14 = vrot.slane %v6520_v16, 2  ;;  %v11692_v25 = vrot.slane %v6499_v55, 2  ;;  %v6976_v35 = vld [vmem:[#allocation7] sm:$0xff] }
  0x5f   : > { %v2184_v1 = vadd.f32 %v1997_v10, %v6555_v51  ;;  %v2744_v50 = vsel %vm283_vm1, %v2742_v58, %v11690_v47  ;;  %v2752_v27 = vrot.slane %v6555_v51, 2  ;;  %v11693_v32 = vrot.slane %v6613_v23, 2 }
  0x60   : > { %v2749_v26 = vsel %vm283_vm1, %v2747_v14, %v11692_v25  ;;  %v2937_v49 = vadd.f32 %v2744_v50, %v2180_v60  ;;  %v6979_v10 = vrot.slane %v6976_v35, 3  ;;  %v3391_v58 = vrot.slane %v6338_v28, 3 }
  0x61   : > { %v2754_v45 = vsel %vm283_vm1, %v2752_v27, %v11693_v32  ;;  %v2939_v19 = vadd.f32 %v2749_v26, %v2182_v57  ;;  %v11696_v47 = vrot.slane %v6365_v42, 3  ;;  %v3396_v60 = vrot.slane %v6520_v16, 3 }
  0x62   : > { %12037 = vst [vmem:[#allocation43_spill] sm:$0xff] %v6979_v10  ;;  %v2941_v0 = vadd.f32 %v2754_v45, %v2184_v1  ;;  %v3388_v14 = vsel %vm3295_vm3, %v6979_v10, %v6979_v10  ;;  %v11700_v50 = vrot.slane %v6499_v55, 3  ;;  %v3401_v27 = vrot.slane %v6555_v51, 3 }
  0x63   : > { %v3393_v25 = vsel %vm3295_vm3, %v3391_v58, %v11696_v47  ;;  %v11698_v57 = vrot.slane %v6613_v23, 3  ;;  %v3584_v26 = vadd.f32 %v3388_v14, %v6891_v30  ;;  %v7001_v32 = vrot.slane %v6976_v35, 4 }
  0x64   : > { %v3398_v45 = vsel %vm3295_vm3, %v3396_v60, %v11700_v50  ;;  %v3586_v1 = vadd.f32 %v3393_v25, %v2937_v49  ;;  %v4040_v58 = vrot.slane %v6338_v28, 4  ;;  %v11699_v47 = vrot.slane %v6365_v42, 4  ;;  %v5867_v50 = vld [vmem:[%s6299_s20 + $0x148] sm:$0xff] }
  0x65   : > { %12038 = vst [vmem:[#allocation44_spill] sm:$0xff] %v7001_v32  ;;  %v3403_v9 = vsel %vm3295_vm3, %v3401_v27, %v11698_v57  ;;  %v3588_v3 = vadd.f32 %v3398_v45, %v2939_v19  ;;  %v4037_v30 = vsel %vm3944_vm4, %v7001_v32, %v7001_v32  ;;  %v4045_v14 = vrot.slane %v6520_v16, 4 }
  0x66   : > { %v3590_v12 = vadd.f32 %v3403_v9, %v2941_v0  ;;  %v11702_v25 = vrot.slane %v6499_v55, 4  ;;  %v4042_v49 = vsel %vm3944_vm4, %v4040_v58, %v11699_v47  ;;  %v4050_v19 = vrot.slane %v6555_v51, 4  ;;  %v5835_v9 = vld [vmem:[%s6299_s20 + $0x48] sm:$0xff] }
  0x67   : > { %v11701_v28 = vrot.slane %v6613_v23, 4  ;;  %v4233_v0 = vadd.f32 %v4037_v30, %v3584_v26  ;;  %v4235_v27 = vadd.f32 %v4042_v49, %v3586_v1  ;;  %v7025_v57 = vadd.f32 %v4203_v39, %v4201_v34  ;;  %v5851_v47 = vld [vmem:[%s6299_s20 + $0xc8] sm:$0xff] }
  0x68   : > { %v4047_v16 = vsel %vm3944_vm4, %v4045_v14, %v11702_v25  ;;  %v7030_v26 = vmul.f32 0.06666667, %v4625_v17  ;;  %v12040_v1 = vrot.slane %v6418_v8, 1  ;;  %v427_v34 = vsel %vm281_vm0, %v5835_v9, %v6976_v35  ;;  %v5883_v17 = vld [vmem:[%s6299_s20 + $0x1c8] sm:$0xff] }
  0x69   : > { %12039 = vst [vmem:[#allocation45_spill] sm:$0xff] %v7025_v57  ;;  %v4052_v51 = vsel %vm3944_vm4, %v4050_v19, %v11701_v28  ;;  %v4237_v30 = vadd.f32 %v4047_v16, %v3588_v3  ;;  %v4609_v60 = vadd.f32 %v4235_v27, %v4233_v0  ;;  %v712_v39 = vsel %vm281_vm0, %v5851_v47, %v6976_v35  ;;  %v6124_v55 = vld [vmem:[#allocation7 + $0x40] sm:$0xf] }
  0x6a   : > { %v1894_v14 = vsel %vm1889_vm2, %v6402_v62, %v12040_v1  ;;  %v4239_v49 = vadd.f32 %v4052_v51, %v3590_v12  ;;  %v997_v3 = vsel %vm281_vm0, %v5867_v50, %v6976_v35  ;;  %v435_v19 = vsel %vm283_vm1, %v6976_v35, %v427_v34 }
  0x6b   : > { %v720_v0 = vsel %vm283_vm1, %v6976_v35, %v712_v39  ;;  %v12041_v12 = vrot.slane %v6441_v18, 1  ;;  %v12042_v16 = vrot.slane %v6363_v40, 1  ;;  %v2143_v27 = vadd.f32 %v6976_v35, %v1894_v14 }
  0x6c   : > { %v436_v47 = vrot.slane %v435_v19, 6  ;;  %v721_v51 = vrot.slane %v720_v0, 6  ;;  %v1005_v50 = vsel %vm283_vm1, %v6976_v35, %v997_v3  ;;  %v1282_v1 = vsel %vm281_vm0, %v5883_v17, %v6976_v35 }
  0x6d   : > { %v1899_v9 = vsel %vm1889_vm2, %v12042_v16, %v12041_v12  ;;  %v4641_v58 = vadd.f32 %v4609_v60, %v4237_v30  ;;  %v1006_v28 = vrot.slane %v1005_v50, 6  ;;  %v1290_v45 = vsel %vm283_vm1, %v6976_v35, %v1282_v1 }
  0x6e   : > { %v429_v25 = vsel %vm283_vm1, %v427_v34, %v6726_v20  ;;  %439 = vst [vmem:[#allocation7 + $0x88] sm:$0xff] %v436_v47  ;;  %724 = vst [vmem:[#allocation7 + $0x178] sm:$0xff] %v721_v51  ;;  %v1291_v14 = vrot.slane %v1290_v45, 6  ;;  %v714_v0 = vsel %vm283_vm1, %v712_v39, %v6731_v61  ;;  %v999_v12 = vsel %vm283_vm1, %v997_v3, %v6746_v22  ;;  %v7090_v22 = vld [vmem:[#allocation7 + $0x20] sm:$0xff] }
  0x6f   : > { %v7068_v19 = vrot.slane %v429_v25, 6  ;;  %1009 = vst [vmem:[#allocation7 + $0x268] sm:$0xff] %v1006_v28  ;;  %v7074_v60 = vrot.slane %v714_v0, 6  ;;  %v7076_v17 = vrot.slane %v999_v12, 6  ;;  %v1284_v16 = vsel %vm283_vm1, %v1282_v1, %v6751_v37 }
  0x70   : > { %v12044_v20 = vrot.slane %v6635_v48, 1  ;;  %v12045_v45 = vrot.slane %v6497_v53, 1  ;;  %v7085_v34 = vadd.f32 %v4239_v49, %v4237_v30  ;;  %1294 = vst [vmem:[#allocation7 + $0x358] sm:$0xff] %v1291_v14  ;;  %v7088_v61 = vrot.slane %v1284_v16, 6 }
  0x71   : > { %12043 = vst [vmem:[#allocation46_spill] sm:$0xff] %v7074_v60  ;;  %433 = vst [vmem:[#allocation7 + $0x80] sm:$0xff] %v7068_v19  ;;  %v2145_v28 = vadd.f32 %v7090_v22, %v1899_v9  ;;  %v7094_v37 = vmul.f32 0.06666667, %v4641_v58  ;;  %v12048_v49 = vrot.slane %v6418_v8, 2  ;;  %v12049_v47 = vrot.slane %v6441_v18, 2 }
  0x72   : > { %v1904_v25 = vsel %vm1889_vm2, %v12045_v45, %v12044_v20  ;;  %12046 = vst [vmem:[#allocation47_spill] sm:$0xff] %v7085_v34  ;;  %12047 = vst [vmem:[#allocation48_spill] sm:$0xff] %v7088_v61  ;;  %v12050_v51 = vrot.slane %v6363_v40, 2  ;;  %v12051_v50 = vrot.slane %v6635_v48, 2  ;;  %v12052_v1 = vrot.slane %v6497_v53, 2 }
  0x73   : > { %v2147_v39 = vadd.f32 %v1904_v25, %v6497_v53  ;;  %718 = vst [vmem:[#allocation7 + $0x170] sm:$0xff] %v7074_v60  ;;  %1003 = vst [vmem:[#allocation7 + $0x260] sm:$0xff] %v7076_v17  ;;  %v2651_v3 = vsel %vm283_vm1, %v6874_v38, %v12048_v49  ;;  %v12053_v20 = vrot.slane %v6418_v8, 3  ;;  %v12054_v25 = vrot.slane %v6441_v18, 3 }
  0x74   : > { %v2656_v9 = vsel %vm283_vm1, %v12050_v51, %v12049_v47  ;;  %1288 = vst [vmem:[#allocation7 + $0x350] sm:$0xff] %v7088_v61  ;;  %v2661_v14 = vsel %vm283_vm1, %v12052_v1, %v12051_v50  ;;  %v2900_v0 = vadd.f32 %v2651_v3, %v2143_v27  ;;  %v12055_v49 = vrot.slane %v6363_v40, 3 }
  0x75   : > { %v2902_v12 = vadd.f32 %v2656_v9, %v2145_v28  ;;  %v2904_v16 = vadd.f32 %v2661_v14, %v2147_v39  ;;  %v3300_v45 = vsel %vm3295_vm3, %v6894_v29, %v12053_v20  ;;  %v12056_v51 = vrot.slane %v6635_v48, 3  ;;  %v7131_v9 = vld [vmem:[#allocation7 + $0x88] sm:$0xf]  ;;  %v7133_v29 = vld [vmem:[#allocation7 + $0x178] sm:$0xf] }
  0x76   : > { %v3305_v47 = vsel %vm3295_vm3, %v12055_v49, %v12054_v25  ;;  %v12057_v58 = vrot.slane %v6497_v53, 3  ;;  %v3549_v39 = vadd.f32 %v3300_v45, %v2900_v0  ;;  %12058 = vst [vmem:[#allocation49_spill] sm:$0xff] %v7133_v29  ;;  %v12059_v14 = vrot.slane %v6418_v8, 4  ;;  %v6098_v28 = vld [vmem:[#allocation7 + $0x18] sm:$0xff] }
  0x77   : > { %v3551_v3 = vadd.f32 %v3305_v47, %v2902_v12  ;;  %v12060_v25 = vrot.slane %v6441_v18, 4  ;;  %v3958_v0 = vrot.slane %v6635_v48, 4  ;;  %v7147_v12 = vld [vmem:[#allocation7 + $0x268] sm:$0xf]  ;;  %v12064_v48 = vrot.slane %v6497_v53, 4  ;;  %v6100_v53 = vld [vmem:[#allocation7 + $0x1f8] sm:$0xff] }
  0x78   : > { %v3310_v50 = vsel %vm3295_vm3, %v12057_v58, %v12056_v51  ;;  %v3949_v20 = vsel %vm3944_vm4, %v6913_v36, %v12059_v14  ;;  %v12061_v58 = vrot.slane %v6363_v40, 4  ;;  %12062 = vst [vmem:[#allocation50_spill] sm:$0xff] %v7147_v12  ;;  %v7153_v51 = vld [vmem:[#allocation7 + $0x358] sm:$0xf]  ;;  %v6099_v40 = vld [vmem:[#allocation7 + $0x108] sm:$0xff] }
  0x79   : > { %v7135_v1 = vadd.f32 %v3310_v50, %v2904_v16  ;;  %12063 = vst [vmem:[#allocation51_spill] sm:$0xff] %v7153_v51  ;;  %v7170_v50 = vsel %vm3944_vm4, %v12064_v48, %v3958_v0  ;;  %v7172_v14 = vadd.f32 %v3949_v20, %v3549_v39  ;;  %v6101_v0 = vld [vmem:[#allocation7 + $0x2e8] sm:$0xff] }
  0x7a   : > { %v3954_v49 = vsel %vm3944_vm4, %v12061_v58, %v12060_v25  ;;  %v12065_v58 = vrot.slane %v6430_v13, 1 }
  0x7b   : > { %v7174_v25 = vadd.f32 %v3954_v49, %v3551_v3 }
  0x7c   : > { %v7180_v16 = vsel %vm1889_vm2, %v6402_v62, %v12065_v58 }
  0x7d   : > { %12066 = vst [vmem:[#allocation52_spill] sm:$0xff] %v7180_v16 }
  0x90   : > { %v1556_v18 = vpop.permute.xlu1 %1555  ;;  %v1541_v36 = vpop.permute.xlu0 %1540 }
  0x91   : > { %v7182_v8 = vadd.f32 %v6098_v28, %v1556_v18  ;;  %v7184_v47 = vadd.f32 %v6099_v40, %v1556_v18  ;;  %v7186_v45 = vadd.f32 %v6100_v53, %v1556_v18  ;;  %v7188_v39 = vadd.f32 %v6101_v0, %v1556_v18  ;;  %v6102_v53 = vld [vmem:[#allocation7 + $0x110] sm:$0xff]  ;;  %v7212_v18 = vld [vmem:[#allocation7 + $0x200] sm:$0xff] }
  0x92   : > { %v7191_v3 = vadd.f32 %v6976_v35, %v1541_v36  ;;  %12070 = vst [vmem:[#allocation56_spill] sm:$0xff] %v7212_v18  ;;  %v6104_v0 = vld [vmem:[#allocation7 + $0x2f0] sm:$0xff] }
  0x93   : > { %12067 = vst [vmem:[#allocation53_spill] sm:$0xff] %v7184_v47  ;;  %12068 = vst [vmem:[#allocation54_spill] sm:$0xff] %v7188_v39  ;;  %v6105_v47 = vld [vmem:[#allocation7 + $0x28] sm:$0xf] }
  0x94   : > { %v1561_v30 = vpop.permute.xlu1 %1560  ;;  %v1546_v48 = vpop.permute.xlu0 %1545 }
  0x95   : > { %v7208_v58 = vadd.f32 %v7090_v22, %v1561_v30  ;;  %v7210_v20 = vadd.f32 %v6102_v53, %v1561_v30  ;;  %v7215_v36 = vadd.f32 %v7212_v18, %v1561_v30  ;;  %v7217_v27 = vadd.f32 %v6104_v0, %v1561_v30  ;;  %v6106_v0 = vld [vmem:[#allocation7 + $0x118] sm:$0xf] }
  0x96   : > { %v7220_v49 = vadd.f32 %v6976_v35, %v1546_v48  ;;  %v6107_v35 = vld [vmem:[#allocation7 + $0x208] sm:$0xf] }
  0x97   : > { %12069 = vst [vmem:[#allocation55_spill] sm:$0xff] %v7210_v20  ;;  %12071 = vst [vmem:[#allocation57_spill] sm:$0xff] %v7217_v27  ;;  %v12081_v32 = vrot.slane %v7208_v58, 1  ;;  %v12084_v38 = vrot.slane %v7215_v36, 1  ;;  %v12086_v13 = vrot.slane %v7217_v27, 1 }
  0x98   : > { %12072 = vst [vmem:[#allocation58_spill] sm:$0xff] %v7220_v49  ;;  %v7233_v48 = vrot.slane %v7220_v49, 1  ;;  %v1566_v40 = vpop.permute.xlu1 %1565  ;;  %v7236_v22 = vrot.slane %v7220_v49, 2  ;;  %v1551_v53 = vpop.permute.xlu0 %1550  ;;  %v7239_v62 = vrot.slane %v7220_v49, 3  ;;  %v7242_v39 = vrot.slane %v7220_v49, 4 }
  0x99   : > { %v7244_v30 = vadd.f32 %v6105_v47, %v1566_v40  ;;  %v7246_v28 = vadd.f32 %v6106_v0, %v1566_v40  ;;  %v7248_v54 = vadd.f32 %v6107_v35, %v1566_v40  ;;  %v7251_v2 = vadd.f32 %v1566_v40, %v6601_v46  ;;  %v6111_v47 = vld [vmem:[#allocation7 + $0x2e0] sm:$0xf] }
  0x9a   : > { %12073 = vst [vmem:[#allocation59_spill] sm:$0xff] %v7239_v62  ;;  %12074 = vst [vmem:[#allocation60_spill] sm:$0xff] %v7242_v39  ;;  %v7253_v52 = vadd.f32 %v6108_v6, %v1551_v53  ;;  %v7255_v23 = vadd.f32 %v6109_v5, %v1551_v53  ;;  %v7257_v34 = vadd.f32 %v6110_v4, %v1551_v53 }
  0x9b   : > { %12075 = vst [vmem:[#allocation61_spill] sm:$0xff] %v7246_v28  ;;  %12076 = vst [vmem:[#allocation62_spill] sm:$0xff] %v7248_v54  ;;  %v7259_v57 = vadd.f32 %v6111_v47, %v1551_v53  ;;  %v2330_v0 = vrot.slane %v7244_v30, 1  ;;  %v2375_v35 = vrot.slane %v7246_v28, 1  ;;  %v2420_v7 = vrot.slane %v7248_v54, 1  ;;  %v6123_v54 = vld [vmem:[#allocation7 + $0x318] sm:$0xff] }
  0x9c   : > { %12077 = vst [vmem:[#allocation63_spill] sm:$0xff] %v7251_v2  ;;  %12078 = vst [vmem:[#allocation64_spill] sm:$0xff] %v7255_v23  ;;  %v2465_v40 = vrot.slane %v7251_v2, 1  ;;  %v3024_v46 = vrot.slane %v7246_v28, 2  ;;  %v3114_v4 = vrot.slane %v7251_v2, 2  ;;  %v12082_v47 = vrot.slane %v7210_v20, 1  ;;  %v1571_v28 = vpop.permute.xlu0 %1570 }
  0x9d   : > { %12079 = vst [vmem:[#allocation65_spill] sm:$0xff] %v7257_v34  ;;  %12080 = vst [vmem:[#allocation66_spill] sm:$0xff] %v7259_v57  ;;  %v7272_v53 = vsel %vm1889_vm2, %v12081_v32, %v2330_v0  ;;  %v7282_v6 = vsel %vm1889_vm2, %v12084_v38, %v2420_v7  ;;  %v12088_v7 = vrot.slane %v7210_v20, 2  ;;  %v2460_v32 = vrot.slane %v7259_v57, 1  ;;  %v6120_v20 = vld [vmem:[#allocation7 + $0x48] sm:$0xff] }
  0x9e   : > { %v7277_v10 = vsel %vm1889_vm2, %v12082_v47, %v2375_v35  ;;  %12085 = vst [vmem:[#allocation68_spill] sm:$0xff] %v7282_v6  ;;  %v7287_v5 = vsel %vm1889_vm2, %v12086_v13, %v2465_v40  ;;  %v12090_v13 = vrot.slane %v7217_v27, 2  ;;  %v3019_v0 = vrot.slane %v7255_v23, 2 }
  0x9f   : > { %12083 = vst [vmem:[#allocation67_spill] sm:$0xff] %v7277_v10  ;;  %12087 = vst [vmem:[#allocation69_spill] sm:$0xff] %v7287_v5  ;;  %v7300_v38 = vsel %vm283_vm1, %v12088_v7, %v3024_v46  ;;  %v2325_v10 = vrot.slane %v7253_v52, 1  ;;  %v3109_v46 = vrot.slane %v7259_v57, 2  ;;  %v7337_v18 = vsel %vm1889_vm2, %v7233_v48, %v2460_v32  ;;  %v6115_v7 = vld [vmem:[#allocation7 + $0x308] sm:$0xff]  ;;  %v6119_v57 = vld [vmem:[#allocation7 + $0x300] sm:$0xff] }
  0xa0   : > { %12089 = vst [vmem:[#allocation70_spill] sm:$0xff] %v7300_v38  ;;  %v7305_v40 = vsel %vm283_vm1, %v12090_v13, %v3114_v4  ;;  %v2370_v4 = vrot.slane %v7255_v23, 1  ;;  %v2415_v13 = vrot.slane %v7257_v34, 1  ;;  %12094 = vst [vmem:[#allocation74_spill] sm:$0xff] %v7337_v18  ;;  %v6118_v18 = vld [vmem:[#allocation7 + $0x210] sm:$0xff]  ;;  %v1581_v34 = vpop.permute.xlu0 %1580 }
  0xa1   : > { %12091 = vst [vmem:[#allocation71_spill] sm:$0xff] %v7305_v40  ;;  %v7323_v35 = vsel %vm1889_vm2, %v7233_v48, %v2325_v10  ;;  %v7353_v32 = vsel %vm283_vm1, %v7236_v22, %v3109_v46  ;;  %v7367_v10 = vld [vmem:[#allocation7 + $0x218] sm:$0xff] }
  0xa2   : > { %v7327_v5 = vsel %vm1889_vm2, %v7233_v48, %v2370_v4  ;;  %v7333_v47 = vsel %vm1889_vm2, %v7233_v48, %v2415_v13  ;;  %v1576_v4 = vpop.permute.xlu1 %1575  ;;  %v7349_v13 = vsel %vm283_vm1, %v7236_v22, %v3019_v0  ;;  %12096 = vst [vmem:[#allocation76_spill] sm:$0xff] %v7353_v32  ;;  %v6113_v32 = vld [vmem:[#allocation7 + $0x128] sm:$0xff]  ;;  %12098 = vst [vmem:[#allocation78_spill] sm:$0xff] %v7367_v10  ;;  %v6117_v0 = vld [vmem:[#allocation7 + $0x120] sm:$0xff] }
  0xa3   : > { %12092 = vst [vmem:[#allocation72_spill] sm:$0xff] %v7327_v5  ;;  %12093 = vst [vmem:[#allocation73_spill] sm:$0xff] %v7333_v47  ;;  %v7365_v27 = vadd.f32 %v6113_v32, %v1576_v4  ;;  %v7370_v2 = vadd.f32 %v7367_v10, %v1576_v4  ;;  %v7372_v38 = vadd.f32 %v6115_v7, %v1576_v4  ;;  %v6116_v5 = vld [vmem:[#allocation7 + $0x30] sm:$0xff]  ;;  %v6121_v10 = vld [vmem:[#allocation7 + $0x138] sm:$0xff] }
  0xa4   : > { %12095 = vst [vmem:[#allocation75_spill] sm:$0xff] %v7349_v13  ;;  %v6112_v13 = vld [vmem:[#allocation7 + $0x38] sm:$0xff]  ;;  %v7374_v40 = vadd.f32 %v6116_v5, %v1571_v28  ;;  %v7376_v23 = vadd.f32 %v6117_v0, %v1571_v28  ;;  %v7380_v32 = vadd.f32 %v6119_v57, %v1571_v28  ;;  %v6122_v0 = vld [vmem:[#allocation7 + $0x228] sm:$0xff]  ;;  %v7402_v57 = vadd.f32 %v6124_v55, %v1581_v34 }
  0xa5   : > { %v7363_v46 = vadd.f32 %v6112_v13, %v1576_v4  ;;  %12097 = vst [vmem:[#allocation77_spill] sm:$0xff] %v7365_v27  ;;  %12099 = vst [vmem:[#allocation79_spill] sm:$0xff] %v7372_v38  ;;  %v7378_v13 = vadd.f32 %v6118_v18, %v1571_v28  ;;  %v7405_v28 = vadd.f32 %v1581_v34, %v6657_v44  ;;  %v12109_v6 = vrot.slane %v7372_v38, 1 }
  0xa6   : > { %12100 = vst [vmem:[#allocation80_spill] sm:$0xff] %v7376_v23  ;;  %12101 = vst [vmem:[#allocation81_spill] sm:$0xff] %v7380_v32  ;;  %v1586_v4 = vpop.permute.xlu1 %1585  ;;  %v7408_v47 = vadd.f32 %v1581_v34, %v6662_v43  ;;  %v1591_v32 = vpop.permute.xlu0 %1590 }
  0xa7   : > { %v7394_v7 = vadd.f32 %v6120_v20, %v1586_v4  ;;  %v7396_v5 = vadd.f32 %v6121_v10, %v1586_v4  ;;  %v7398_v16 = vadd.f32 %v6122_v0, %v1586_v4  ;;  %v7400_v18 = vadd.f32 %v6123_v54, %v1586_v4  ;;  %12104 = vst [vmem:[#allocation84_spill] sm:$0xff] %v7405_v28 }
  0xa8   : > { %12105 = vst [vmem:[#allocation85_spill] sm:$0xff] %v7408_v47  ;;  %v7411_v20 = vadd.f32 %v1581_v34, %v6664_v41  ;;  %v2380_v54 = vrot.slane %v7405_v28, 1  ;;  %v12107_v10 = vrot.slane %v7365_v27, 1  ;;  %v6125_v34 = vld [vmem:[#allocation7 + $0x50] sm:$0xff]  ;;  %v6126_v27 = vld [vmem:[#allocation7 + $0x140] sm:$0xff] }
  0xa9   : > { %12102 = vst [vmem:[#allocation82_spill] sm:$0xff] %v7396_v5  ;;  %12103 = vst [vmem:[#allocation83_spill] sm:$0xff] %v7400_v18  ;;  %v7463_v5 = vadd.f32 %v6125_v34, %v1591_v32  ;;  %v7465_v18 = vadd.f32 %v6126_v27, %v1591_v32  ;;  %v6127_v47 = vld [vmem:[#allocation7 + $0x230] sm:$0xff]  ;;  %v6128_v34 = vld [vmem:[#allocation7 + $0x320] sm:$0xff] }
  0xaa   : > { %12106 = vst [vmem:[#allocation86_spill] sm:$0xff] %v7411_v20  ;;  %v2470_v4 = vrot.slane %v7411_v20, 1  ;;  %v1596_v41 = vpop.permute.xlu1 %1595  ;;  %v7436_v0 = vsel %vm1889_vm2, %v12107_v10, %v2380_v54  ;;  %v7485_v43 = vadd.f32 %v6128_v34, %v1591_v32  ;;  %v1601_v38 = vpop.permute.xlu0 %1600  ;;  %v7527_v20 = vld [vmem:[#allocation7 + $0x68] sm:$0xff] }
  0xab   : > { %12108 = vst [vmem:[#allocation87_spill] sm:$0xff] %v7436_v0  ;;  %v7458_v44 = vadd.f32 %v1596_v41, %v6809_v11  ;;  %v7461_v23 = vadd.f32 %v1596_v41, %v6815_v15  ;;  %12115 = vst [vmem:[#allocation93_spill] sm:$0xff] %v7465_v18  ;;  %v11784_v27 = vrot.slane %v7463_v5, 1  ;;  %v11783_v0 = vrot.slane %v7465_v18, 1  ;;  %v7541_v11 = vld [vmem:[#allocation7 + $0x60] sm:$0xff] }
  0xac   : > { %v7441_v55 = vsel %vm1889_vm2, %v12109_v6, %v2470_v4  ;;  %v7452_v6 = vadd.f32 %v1596_v41, %v6779_v56  ;;  %v7455_v4 = vadd.f32 %v1596_v41, %v6791_v21  ;;  %v7483_v41 = vadd.f32 %v6127_v47, %v1591_v32  ;;  %12116 = vst [vmem:[#allocation94_spill] sm:$0xff] %v7485_v43 }
  0xad   : > { %12110 = vst [vmem:[#allocation88_spill] sm:$0xff] %v7441_v55  ;;  %12113 = vst [vmem:[#allocation91_spill] sm:$0xff] %v7458_v44  ;;  %v2430_v55 = vrot.slane %v7458_v44, 1  ;;  %v2475_v28 = vrot.slane %v7461_v23, 1  ;;  %v11788_v56 = vrot.slane %v7485_v43, 1  ;;  %v6136_v43 = vld [vmem:[#allocation7 + $0x330] sm:$0xff] }
  0xae   : > { %12111 = vst [vmem:[#allocation89_spill] sm:$0xff] %v7452_v6  ;;  %12112 = vst [vmem:[#allocation90_spill] sm:$0xff] %v7455_v4  ;;  %v2340_v54 = vrot.slane %v7452_v6, 1  ;;  %v2385_v10 = vrot.slane %v7455_v4, 1  ;;  %v11785_v34 = vrot.slane %v7483_v41, 1  ;;  %v1606_v15 = vpop.permute.xlu1 %1605  ;;  %v7560_v6 = vld [vmem:[#allocation7 + $0x240] sm:$0xff] }
  0xaf   : > { %12114 = vst [vmem:[#allocation92_spill] sm:$0xff] %v7461_v23  ;;  %12121 = vst [vmem:[#allocation99_spill] sm:$0xff] %v7527_v20  ;;  %v7563_v18 = vadd.f32 %v7560_v6, %v1601_v38  ;;  %v12148_v44 = vrot.slane %v7463_v5, 1 }
  0xb0   : > { %v7496_v47 = vsel %vm1889_vm2, %v11784_v27, %v2340_v54  ;;  %v7501_v32 = vsel %vm1889_vm2, %v11783_v0, %v2385_v10  ;;  %v7514_v10 = vsel %vm1889_vm2, %v11785_v34, %v2430_v55  ;;  %v7519_v0 = vsel %vm1889_vm2, %v11788_v56, %v2475_v28  ;;  %v6130_v34 = vld [vmem:[#allocation7 + $0x158] sm:$0xff]  ;;  %v7534_v28 = vld [vmem:[#allocation7 + $0x248] sm:$0xff]  ;;  %12125 = vst [vmem:[#allocation103_spill] sm:$0xff] %v7541_v11 }
  0xb1   : > { %12117 = vst [vmem:[#allocation95_spill] sm:$0xff] %v7496_v47  ;;  %12118 = vst [vmem:[#allocation96_spill] sm:$0xff] %v7501_v32  ;;  %v7530_v55 = vadd.f32 %v7527_v20, %v1606_v15  ;;  %v7532_v23 = vadd.f32 %v6130_v34, %v1606_v15  ;;  %v7537_v21 = vadd.f32 %v7534_v28, %v1606_v15  ;;  %v6132_v27 = vld [vmem:[#allocation7 + $0x338] sm:$0xff] }
  0xb2   : > { %12119 = vst [vmem:[#allocation97_spill] sm:$0xff] %v7514_v10  ;;  %12120 = vst [vmem:[#allocation98_spill] sm:$0xff] %v7519_v0  ;;  %v7539_v56 = vadd.f32 %v6132_v27, %v1606_v15  ;;  %v7544_v54 = vadd.f32 %v7541_v11, %v1601_v38  ;;  %v6134_v0 = vld [vmem:[#allocation7 + $0x150] sm:$0xff]  ;;  %v7565_v10 = vadd.f32 %v6136_v43, %v1601_v38  ;;  %v1616_v15 = vpop.permute.xlu1 %1615  ;;  %v6137_v47 = vld [vmem:[#allocation7 + $0x78] sm:$0xff] }
  0xb3   : > { %12122 = vst [vmem:[#allocation100_spill] sm:$0xff] %v7532_v23  ;;  %12123 = vst [vmem:[#allocation101_spill] sm:$0xff] %v7534_v28  ;;  %v7546_v32 = vadd.f32 %v6134_v0, %v1601_v38  ;;  %v1611_v28 = vpop.permute.xlu0 %1610  ;;  %v7579_v11 = vadd.f32 %v6137_v47, %v1616_v15  ;;  %v6138_v0 = vld [vmem:[#allocation7 + $0x168] sm:$0xff]  ;;  %v6139_v34 = vld [vmem:[#allocation7 + $0x258] sm:$0xff]  ;;  %v12138_v43 = vrot.slane %v7530_v55, 1 }
  0xb4   : > { %12124 = vst [vmem:[#allocation102_spill] sm:$0xff] %v7539_v56  ;;  %12126 = vst [vmem:[#allocation104_spill] sm:$0xff] %v7544_v54  ;;  %v7581_v4 = vadd.f32 %v6138_v0, %v1616_v15  ;;  %v7588_v20 = vadd.f32 %v1611_v28, %v6839_v24  ;;  %v7591_v38 = vadd.f32 %v1611_v28, %v6841_v63  ;;  %v12149_v0 = vrot.slane %v7394_v7, 1 }
  0xb5   : > { %12127 = vst [vmem:[#allocation105_spill] sm:$0xff] %v7546_v32  ;;  %12128 = vst [vmem:[#allocation106_spill] sm:$0xff] %v7560_v6  ;;  %v7583_v32 = vadd.f32 %v6139_v34, %v1616_v15  ;;  %v6140_v6 = vld [vmem:[#allocation7 + $0x348] sm:$0xff] }
  0xb6   : > { %12129 = vst [vmem:[#allocation107_spill] sm:$0xff] %v7565_v10  ;;  %12130 = vst [vmem:[#allocation108_spill] sm:$0xff] %v7579_v11  ;;  %v7585_v54 = vadd.f32 %v6140_v6, %v1616_v15  ;;  %v7610_v6 = vadd.f32 %v1611_v28, %v6929_v33  ;;  %v7613_v15 = vadd.f32 %v1611_v28, %v6935_v59  ;;  %v2345_v63 = vrot.slane %v7588_v20, 1 }
  0xb7   : > { %12131 = vst [vmem:[#allocation109_spill] sm:$0xff] %v7581_v4  ;;  %12132 = vst [vmem:[#allocation110_spill] sm:$0xff] %v7583_v32  ;;  %v2390_v27 = vrot.slane %v7591_v38, 1  ;;  %v12139_v28 = vrot.slane %v7532_v23, 1  ;;  %v12145_v59 = vrot.slane %v7191_v3, 1  ;;  %v2339_v34 = vsel %vm1889_vm2, %v12149_v0, %v12148_v44 }
  0xb8   : > { %12133 = vst [vmem:[#allocation111_spill] sm:$0xff] %v7585_v54  ;;  %12134 = vst [vmem:[#allocation112_spill] sm:$0xff] %v7588_v20  ;;  %v7624_v10 = vsel %vm1889_vm2, %v12138_v43, %v2345_v63  ;;  %v2435_v4 = vrot.slane %v7610_v6, 1  ;;  %v2480_v47 = vrot.slane %v7613_v15, 1  ;;  %v12141_v63 = vrot.slane %v7537_v21, 1 }
  0xb9   : > { %12135 = vst [vmem:[#allocation113_spill] sm:$0xff] %v7591_v38  ;;  %12136 = vst [vmem:[#allocation114_spill] sm:$0xff] %v7610_v6  ;;  %v7629_v54 = vsel %vm1889_vm2, %v12139_v28, %v2390_v27  ;;  %v12143_v27 = vrot.slane %v7539_v56, 1  ;;  %v2324_v23 = vsel %vm1889_vm2, %v12145_v59, %v7233_v48  ;;  %v2580_v48 = vmax.f32 %v7394_v7, %v2339_v34 }
  0xba   : > { %12137 = vst [vmem:[#allocation115_spill] sm:$0xff] %v7613_v15  ;;  %12140 = vst [vmem:[#allocation116_spill] sm:$0xff] %v7629_v54  ;;  %v7640_v43 = vsel %vm1889_vm2, %v12141_v63, %v2435_v4  ;;  %v12146_v4 = vrot.slane %v7208_v58, 1  ;;  %v12147_v63 = vrot.slane %v7182_v8, 1  ;;  %v11832_v54 = vrot.slane %v7363_v46, 1 }
  0xbb   : > { %12142 = vst [vmem:[#allocation117_spill] sm:$0xff] %v7640_v43  ;;  %v7645_v28 = vsel %vm1889_vm2, %v12143_v27, %v2480_v47  ;;  %v2332_v27 = vrot.slane %v7374_v40, 1  ;;  %v2574_v15 = vmax.f32 %v7191_v3, %v2324_v23  ;;  %v2981_v38 = vrot.slane %v7374_v40, 2 }
  0xbc   : > { %12144 = vst [vmem:[#allocation118_spill] sm:$0xff] %v7645_v28  ;;  %v2329_v47 = vsel %vm1889_vm2, %v12147_v63, %v12146_v4  ;;  %v2976_v63 = vrot.slane %v7182_v8, 2  ;;  %v11844_v28 = vrot.slane %v7208_v58, 2  ;;  %v12150_v44 = vrot.slane %v7191_v3, 2 }
  0xbd   : > { %v2576_v59 = vmax.f32 %v7182_v8, %v2329_v47  ;;  %v2334_v4 = vsel %vm1889_vm2, %v2332_v27, %v11832_v54  ;;  %v11843_v0 = vrot.slane %v7363_v46, 2  ;;  %v12151_v34 = vrot.slane %v7463_v5, 2 }
  0xbe   : > { %v2578_v56 = vmax.f32 %v7374_v40, %v2334_v4  ;;  %v2973_v23 = vsel %vm283_vm1, %v12150_v44, %v7236_v22  ;;  %v12152_v47 = vrot.slane %v7394_v7, 2  ;;  %v2978_v54 = vsel %vm283_vm1, %v2976_v63, %v11844_v28 }
  0xbf   : > { %v3223_v32 = vmax.f32 %v2574_v15, %v2973_v23  ;;  %v2983_v4 = vsel %vm283_vm1, %v2981_v38, %v11843_v0  ;;  %v3225_v6 = vmax.f32 %v2576_v59, %v2978_v54  ;;  %v3625_v44 = vrot.slane %v7182_v8, 3 }
  0xc0   : > { %v2988_v27 = vsel %vm283_vm1, %v12152_v47, %v12151_v34  ;;  %v3227_v43 = vmax.f32 %v2578_v56, %v2983_v4  ;;  %v11845_v33 = vrot.slane %v7208_v58, 3  ;;  %v3630_v20 = vrot.slane %v7374_v40, 3 }
  0xc1   : > { %v3229_v11 = vmax.f32 %v2580_v48, %v2988_v27  ;;  %v11863_v34 = vrot.slane %v7363_v46, 3  ;;  %v12153_v47 = vrot.slane %v7191_v3, 3  ;;  %v3635_v48 = vrot.slane %v7394_v7, 3 }
  0xc2   : > { %v11847_v63 = vrot.slane %v7463_v5, 3  ;;  %v3627_v54 = vsel %vm3295_vm3, %v3625_v44, %v11845_v33  ;;  %v4274_v4 = vrot.slane %v7182_v8, 4  ;;  %v12154_v0 = vrot.slane %v7191_v3, 4 }
  0xc3   : > { %v3622_v15 = vsel %vm3295_vm3, %v12153_v47, %v7239_v62  ;;  %v3632_v56 = vsel %vm3295_vm3, %v3630_v20, %v11863_v34  ;;  %v3874_v23 = vmax.f32 %v3225_v6, %v3627_v54  ;;  %v11858_v44 = vrot.slane %v7208_v58, 4 }
  0xc4   : > { %v3872_v38 = vmax.f32 %v3223_v32, %v3622_v15  ;;  %v3637_v59 = vsel %vm3295_vm3, %v3635_v48, %v11847_v63  ;;  %v3876_v27 = vmax.f32 %v3227_v43, %v3632_v56  ;;  %v4271_v28 = vsel %vm3944_vm4, %v12154_v0, %v7242_v39 }
  0xc5   : > { %v3878_v47 = vmax.f32 %v3229_v11, %v3637_v59  ;;  %v4279_v33 = vrot.slane %v7374_v40, 4  ;;  %v11857_v20 = vrot.slane %v7363_v46, 4  ;;  %v4284_v32 = vrot.slane %v7394_v7, 4 }
  0xc6   : > { %v11846_v6 = vrot.slane %v7463_v5, 4  ;;  %v7722_v43 = vmax.f32 %v3872_v38, %v4271_v28  ;;  %v4276_v11 = vsel %vm3944_vm4, %v4274_v4, %v11858_v44  ;;  %v12156_v8 = vrot.slane %v7215_v36, 1 }
  0xc7   : > { %v12157_v3 = vrot.slane %v7186_v45, 1  ;;  %v2422_v40 = vrot.slane %v7378_v13, 1  ;;  %v4281_v7 = vsel %vm3944_vm4, %v4279_v33, %v11857_v20  ;;  %v4523_v15 = vmax.f32 %v3874_v23, %v4276_v11 }
  0xc8   : > { %12155 = vst [vmem:[#allocation119_spill] sm:$0xff] %v7722_v43  ;;  %v4286_v28 = vsel %vm3944_vm4, %v4284_v32, %v11846_v6  ;;  %v11848_v48 = vrot.slane %v7370_v2, 1  ;;  %v7740_v54 = vmax.f32 %v3876_v27, %v4281_v7  ;;  %v12158_v38 = vrot.slane %v7483_v41, 1 }
  0xc9   : > { %v2419_v0 = vsel %vm1889_vm2, %v12157_v3, %v12156_v8  ;;  %v7742_v56 = vmax.f32 %v3878_v47, %v4286_v28  ;;  %v12159_v59 = vrot.slane %v7398_v16, 1  ;;  %v4657_v8 = vmax.f32 %v7722_v43, %v4523_v15 }
  0xca   : > { %v2424_v33 = vsel %vm1889_vm2, %v2422_v40, %v11848_v48  ;;  %v2612_v23 = vmax.f32 %v7186_v45, %v2419_v0  ;;  %v3066_v3 = vrot.slane %v7186_v45, 2  ;;  %v11856_v7 = vrot.slane %v7215_v36, 2 }
  0xcb   : > { %v2429_v4 = vsel %vm1889_vm2, %v12159_v59, %v12158_v38  ;;  %v2614_v47 = vmax.f32 %v7378_v13, %v2424_v33  ;;  %v4689_v11 = vmax.f32 %v4657_v8, %v7740_v54  ;;  %v3071_v28 = vrot.slane %v7378_v13, 2 }
  0xcc   : > { %v2616_v32 = vmax.f32 %v7398_v16, %v2429_v4  ;;  %v11849_v15 = vrot.slane %v7370_v2, 2  ;;  %v12160_v40 = vrot.slane %v7483_v41, 2  ;;  %v12161_v0 = vrot.slane %v7398_v16, 2 }
  0xcd   : > { %v4753_v59 = vadd.f32 %v7030_v26, %v4689_v11  ;;  %v3068_v4 = vsel %vm283_vm1, %v3066_v3, %v11856_v7  ;;  %v3715_v63 = vrot.slane %v7186_v45, 3  ;;  %v11850_v48 = vrot.slane %v7215_v36, 3 }
  0xce   : > { %v3078_v38 = vsel %vm283_vm1, %v12161_v0, %v12160_v40  ;;  %v3073_v33 = vsel %vm283_vm1, %v3071_v28, %v11849_v15  ;;  %v3261_v6 = vmax.f32 %v2612_v23, %v3068_v4  ;;  %v3720_v40 = vrot.slane %v7378_v13, 3 }
  0xcf   : > { %v3265_v8 = vmax.f32 %v2616_v32, %v3078_v38  ;;  %5967 = vmatprep.mubr.msk.f32.mxu0 %vm4794_vm5, %v4753_v59  ;;  %v3263_v27 = vmax.f32 %v2614_v47, %v3073_v33  ;;  %v11855_v26 = vrot.slane %v7370_v2, 3  ;;  %v3725_v11 = vrot.slane %v7398_v16, 3  ;;  %v1626_v59 = vpop.permute.xlu1 %1625 }
  0xd0   : > { %v11851_v32 = vrot.slane %v7483_v41, 3  ;;  %v3717_v3 = vsel %vm3295_vm3, %v3715_v63, %v11850_v48  ;;  %v4364_v38 = vrot.slane %v7186_v45, 4  ;;  %v11852_v33 = vrot.slane %v7215_v36, 4 }
  0xd1   : > { %v3722_v23 = vsel %vm3295_vm3, %v3720_v40, %v11855_v26  ;;  %v3910_v28 = vmax.f32 %v3261_v6, %v3717_v3  ;;  %v4369_v15 = vrot.slane %v7378_v13, 4  ;;  %v11853_v63 = vrot.slane %v7370_v2, 4 }
  0xd2   : > { %v3727_v47 = vsel %vm3295_vm3, %v3725_v11, %v11851_v32  ;;  %v3912_v0 = vmax.f32 %v3263_v27, %v3722_v23  ;;  %v4374_v48 = vrot.slane %v7398_v16, 4  ;;  %v11854_v40 = vrot.slane %v7483_v41, 4 }
  0xd3   : > { %v3914_v4 = vmax.f32 %v3265_v8, %v3727_v47  ;;  %v4366_v11 = vsel %vm3944_vm4, %v4364_v38, %v11852_v33  ;;  %v7801_v6 = vadd.f32 %v1626_v59, %v7131_v9  ;;  %v7804_v45 = vadd.f32 %v1626_v59, %v7133_v29 }
  0xd4   : > { %v7807_v27 = vadd.f32 %v1626_v59, %v7147_v12  ;;  %v4371_v13 = vsel %vm3944_vm4, %v4369_v15, %v11853_v63  ;;  %v4376_v16 = vsel %vm3944_vm4, %v4374_v48, %v11854_v40  ;;  %v4559_v8 = vmax.f32 %v3910_v28, %v4366_v11  ;;  %v1621_v11 = vpop.permute.xlu0 %1620 }
  0xd5   : > { %12162 = vst [vmem:[#allocation120_spill] sm:$0xff] %v7804_v45  ;;  %v7816_v3 = vadd.f32 %v1626_v59, %v7153_v51  ;;  %v7818_v23 = vmax.f32 %v3912_v0, %v4371_v13  ;;  %v7820_v47 = vmax.f32 %v3914_v4, %v4376_v16  ;;  %v2350_v38 = vrot.slane %v7801_v6, 1 }
  0xd6   : > { %12163 = vst [vmem:[#allocation121_spill] sm:$0xff] %v7807_v27  ;;  %v2395_v32 = vrot.slane %v7804_v45, 1  ;;  %v4673_v33 = vmax.f32 %v7722_v43, %v4559_v8  ;;  %v2440_v15 = vrot.slane %v7807_v27, 1  ;;  %v7847_v16 = vadd.f32 %v1621_v11, %v7074_v60  ;;  %v12208_v45 = vld [vmem:[#allocation65_spill] sm:$0xff] }
  0xd7   : > { %12164 = vst [vmem:[#allocation122_spill] sm:$0xff] %v7816_v3  ;;  %v2485_v63 = vrot.slane %v7816_v3, 1  ;;  %v7850_v8 = vadd.f32 %v1621_v11, %v7076_v17  ;;  %v7853_v48 = vadd.f32 %v1621_v11, %v7088_v61  ;;  %v12167_v28 = vrot.slane %v7402_v57, 1 }
  0xd8   : > { %v4705_v13 = vmax.f32 %v4673_v33, %v7818_v23  ;;  %v7844_v33 = vadd.f32 %v1621_v11, %v7068_v19  ;;  %12165 = vst [vmem:[#allocation123_spill] sm:$0xff] %v7847_v16  ;;  %v12168_v0 = vrot.slane %v7363_v46, 1  ;;  %v11859_v26 = vrot.slane %v7847_v16, 1 }
  0xd9   : > { %12166 = vst [vmem:[#allocation124_spill] sm:$0xff] %v7853_v48  ;;  %v11860_v20 = vrot.slane %v7850_v8, 1  ;;  %v11861_v44 = vrot.slane %v7853_v48, 1  ;;  %v12179_v34 = vrot.slane %v7253_v52, 3  ;;  %v12221_v48 = vrot.slane %v6458_v31, 3 }
  0xda   : > { %v4769_v59 = vadd.f32 %v7094_v37, %v4705_v13  ;;  %v2336_v37 = vsel %vm1889_vm2, %v12168_v0, %v12167_v28  ;;  %v12169_v13 = vrot.slane %v7253_v52, 2  ;;  %v11862_v40 = vrot.slane %v7844_v33, 1 }
  0xdb   : > { %v7888_v28 = vsel %vm1889_vm2, %v11860_v20, %v2440_v15  ;;  %v7893_v0 = vsel %vm1889_vm2, %v11861_v44, %v2485_v63  ;;  %v12175_v15 = vrot.slane %v7402_v57, 2  ;;  %v12176_v20 = vrot.slane %v7363_v46, 2 }
  0xdc   : > { %v2975_v4 = vsel %vm283_vm1, %v7236_v22, %v12169_v13  ;;  %5991 = vmatprep.mubr.msk.f32.mxu1 %vm4794_vm5, %v4769_v59  ;;  %v7876_v59 = vsel %vm1889_vm2, %v11862_v40, %v2350_v38  ;;  %v7881_v13 = vsel %vm1889_vm2, %v11859_v26, %v2395_v32  ;;  %12171 = vst [vmem:[#allocation126_spill] sm:$0xff] %v7888_v28  ;;  %12172 = vst [vmem:[#allocation127_spill] sm:$0xff] %v7893_v0 }
  0xdd   : > { %12170 = vst [vmem:[#allocation125_spill] sm:$0xff] %v7881_v13  ;;  %v2579_v32 = vmax.f32 %v7363_v46, %v2336_v37  ;;  %v12173_v40 = vrot.slane %v7244_v30, 2  ;;  %v12174_v26 = vrot.slane %v7208_v58, 2  ;;  %v2985_v7 = vsel %vm283_vm1, %v12176_v20, %v12175_v15 }
  0xde   : > { %v12177_v63 = vmax.f32 %v7220_v49, %v7323_v35  ;;  %v12178_v38 = vmax.f32 %v7208_v58, %v7272_v53  ;;  %v3624_v0 = vsel %vm3295_vm3, %v7239_v62, %v12179_v34  ;;  %v12182_v20 = vrot.slane %v7402_v57, 3 }
  0xdf   : > { %v2980_v11 = vsel %vm283_vm1, %v12174_v26, %v12173_v40  ;;  %v12180_v26 = vrot.slane %v7244_v30, 3  ;;  %v12181_v40 = vrot.slane %v7208_v58, 3  ;;  %v12183_v35 = vrot.slane %v7363_v46, 3 }
  0xe0   : > { %v3224_v44 = vmax.f32 %v12177_v63, %v2975_v4  ;;  %v3226_v37 = vmax.f32 %v12178_v38, %v2980_v11  ;;  %v3228_v15 = vmax.f32 %v2579_v32, %v2985_v7  ;;  %v7942_v11 = vadd.f32 %v7170_v50, %v7135_v1 }
  0xe1   : > { %v3629_v3 = vsel %vm3295_vm3, %v12181_v40, %v12180_v26  ;;  %v3634_v4 = vsel %vm3295_vm3, %v12183_v35, %v12182_v20  ;;  %v12184_v34 = vrot.slane %v7253_v52, 4  ;;  %v12185_v26 = vrot.slane %v7244_v30, 4 }
  0xe2   : > { %v3873_v53 = vmax.f32 %v3224_v44, %v3624_v0  ;;  %v3875_v63 = vmax.f32 %v3226_v37, %v3629_v3  ;;  %v12186_v40 = vrot.slane %v7208_v58, 4  ;;  %v12187_v20 = vrot.slane %v7402_v57, 4  ;;  %v12191_v58 = vld [vmem:[#allocation26_spill] sm:$0xff]  ;;  %v12193_v37 = vld [vmem:[#allocation19_spill] sm:$0xff] }
  0xe3   : > { %v4273_v38 = vsel %vm3944_vm4, %v7242_v39, %v12184_v34  ;;  %v12188_v44 = vrot.slane %v7363_v46, 4  ;;  %v4594_v1 = vadd.f32 %v7174_v25, %v7172_v14  ;;  %v3877_v52 = vmax.f32 %v3228_v15, %v3634_v4  ;;  %v12195_v14 = vld [vmem:[#allocation52_spill] sm:$0xff] }
  0xe4   : > { %v4278_v51 = vsel %vm3944_vm4, %v12186_v40, %v12185_v26  ;;  %v4522_v50 = vmax.f32 %v3873_v53, %v4273_v38  ;;  %v12189_v0 = vrot.slane %v6458_v31, 1  ;;  %v12190_v3 = vrot.slane %v6365_v42, 1  ;;  %v7971_v26 = vld [vmem:[#allocation7] sm:$0xff]  ;;  %v12196_v4 = vld [vmem:[#allocation56_spill] sm:$0xff]  ;;  %v12197_v38 = vld [vmem:[#allocation78_spill] sm:$0xff] }
  0xe5   : > { %v4283_v7 = vsel %vm3944_vm4, %v12188_v44, %v12187_v20  ;;  %v12192_v32 = vrot.slane %v12191_v58, 1  ;;  %v12194_v35 = vrot.slane %v12193_v37, 1  ;;  %v4524_v46 = vmax.f32 %v3875_v63, %v4278_v51  ;;  %v12198_v20 = vld [vmem:[#allocation85_spill] sm:$0xff]  ;;  %v12201_v51 = vld [vmem:[#allocation16_spill] sm:$0xff] }
  0xe6   : > { %v1989_v30 = vsel %vm1889_vm2, %v12190_v3, %v12189_v0  ;;  %v4626_v34 = vadd.f32 %v4594_v1, %v7942_v11  ;;  %v2179_v25 = vadd.f32 %v7971_v26, %v12195_v14  ;;  %v7976_v53 = vmax.f32 %v3877_v52, %v4283_v7  ;;  %v12203_v1 = vld [vmem:[#allocation40_spill] sm:$0xff] }
  0xe7   : > { %v1994_v57 = vsel %vm1889_vm2, %v12194_v35, %v12192_v32  ;;  %v2181_v15 = vadd.f32 %v12196_v4, %v1989_v30  ;;  %v12199_v44 = vrot.slane %v12198_v20, 1  ;;  %v12200_v0 = vrot.slane %v7370_v2, 1 }
  0xe8   : > { %v2183_v40 = vadd.f32 %v12197_v38, %v1994_v57  ;;  %v12202_v63 = vrot.slane %v12201_v51, 2  ;;  %v4658_v35 = vmax.f32 %v4522_v50, %v4524_v46  ;;  %v4722_v13 = vmul.f32 0.06666667, %v4626_v34 }
  0xe9   : > { %v2426_v3 = vsel %vm1889_vm2, %v12200_v0, %v12199_v44  ;;  %v12204_v7 = vrot.slane %v6458_v31, 2  ;;  %v12205_v52 = vrot.slane %v6365_v42, 2  ;;  %v12206_v57 = vrot.slane %v12191_v58, 2 }
  0xea   : > { %v2741_v32 = vsel %vm283_vm1, %v12203_v1, %v12202_v63  ;;  %v2615_v14 = vmax.f32 %v7370_v2, %v2426_v3  ;;  %v12207_v4 = vrot.slane %v12193_v37, 2  ;;  %v12209_v63 = vrot.slane %v12208_v45, 2  ;;  %v12210_v3 = vld [vmem:[#allocation62_spill] sm:$0xff] }
  0xeb   : > { %v2746_v30 = vsel %vm283_vm1, %v12205_v52, %v12204_v7  ;;  %v2936_v44 = vadd.f32 %v2741_v32, %v2179_v25  ;;  %v4690_v46 = vmax.f32 %v4658_v35, %v7976_v53  ;;  %v12211_v1 = vrot.slane %v12210_v3, 2 }
  0xec   : > { %v2751_v38 = vsel %vm283_vm1, %v12207_v4, %v12206_v57  ;;  %v2938_v0 = vadd.f32 %v2746_v30, %v2181_v15  ;;  %v3065_v50 = vsel %vm283_vm1, %v7236_v22, %v12209_v63  ;;  %v12212_v7 = vrot.slane %v7215_v36, 2  ;;  %v12215_v15 = vld [vmem:[#allocation73_spill] sm:$0xff]  ;;  %v12217_v22 = vld [vmem:[#allocation68_spill] sm:$0xff]  ;;  %v12220_v63 = vld [vmem:[#allocation43_spill] sm:$0xff] }
  0xed   : > { %v2940_v34 = vadd.f32 %v2751_v38, %v2183_v40  ;;  %v12213_v29 = vrot.slane %v12198_v20, 2  ;;  %v12214_v57 = vrot.slane %v7370_v2, 2  ;;  %v12216_v32 = vmax.f32 %v7220_v49, %v12215_v15 }
  0xee   : > { %v3070_v52 = vsel %vm283_vm1, %v12212_v7, %v12211_v1  ;;  %v12218_v35 = vmax.f32 %v7215_v36, %v12217_v22  ;;  %v12219_v38 = vrot.slane %v12201_v51, 3  ;;  %v4754_v7 = vadd.f32 %v4722_v13, %v4690_v46 }
  0xef   : > { %v3075_v25 = vsel %vm283_vm1, %v12214_v57, %v12213_v29  ;;  %v3260_v30 = vmax.f32 %v12216_v32, %v3065_v50  ;;  %v12222_v61 = vrot.slane %v6365_v42, 3  ;;  %v12223_v57 = vrot.slane %v12191_v58, 3 }
  0xf0   : > { %v3262_v40 = vmax.f32 %v12218_v35, %v3070_v52  ;;  %v3264_v4 = vmax.f32 %v2615_v14, %v3075_v25  ;;  %v3390_v1 = vsel %vm3295_vm3, %v12220_v63, %v12219_v38  ;;  %v12224_v50 = vrot.slane %v12193_v37, 3  ;;  %5968 = vmatmul.mubr.msk.f32.vlgmr.msra.gmra.mrb[0].mxu0 %vm4794_vm5, %v4754_v7  ;;  %v12231_v38 = vld [vmem:[#allocation44_spill] sm:$0xff] }
  0xf1   : > { %v3395_v29 = vsel %vm3295_vm3, %v12222_v61, %v12221_v48  ;;  %v3585_v14 = vadd.f32 %v3390_v1, %v2936_v44  ;;  %v12225_v32 = vrot.slane %v12208_v45, 3  ;;  %v12226_v46 = vrot.slane %v12210_v3, 3 }
  0xf2   : > { %v3400_v15 = vsel %vm3295_vm3, %v12224_v50, %v12223_v57  ;;  %v3587_v52 = vadd.f32 %v3395_v29, %v2938_v0  ;;  %v12227_v61 = vrot.slane %v7215_v36, 3  ;;  %v12228_v58 = vrot.slane %v12198_v20, 3  ;;  %v6142_v50 = vld [vmem:[#allocation7 + $0x220] sm:$0xf] }
  0xf3   : > { %v3589_v25 = vadd.f32 %v3400_v15, %v2940_v34  ;;  %v3714_v13 = vsel %vm3295_vm3, %v7239_v62, %v12225_v32  ;;  %v12229_v44 = vrot.slane %v7370_v2, 3  ;;  %v12230_v35 = vrot.slane %v12201_v51, 4 }
  0xf4   : > { %v3719_v48 = vsel %vm3295_vm3, %v12227_v61, %v12226_v46  ;;  %v3909_v34 = vmax.f32 %v3260_v30, %v3714_v13  ;;  %v12232_v29 = vrot.slane %v6458_v31, 4  ;;  %v12233_v7 = vrot.slane %v6365_v42, 4  ;;  %v5836_v46 = vld [vmem:[%s6299_s20 + $0x50] sm:$0xff]  ;;  %v5837_v61 = vld [vmem:[%s6299_s20 + $0x58] sm:$0xff] }
  0xf5   : > { %v3724_v0 = vsel %vm3295_vm3, %v12229_v44, %v12228_v58  ;;  %v3911_v22 = vmax.f32 %v3262_v40, %v3719_v48  ;;  %v4039_v63 = vsel %vm3944_vm4, %v12231_v38, %v12230_v35  ;;  %v4048_v15 = vrot.slane %v6142_v50, 4  ;;  %v5852_v58 = vld [vmem:[%s6299_s20 + $0xd0] sm:$0xff]  ;;  %v5885_v50 = vld [vmem:[%s6299_s20 + $0x1d8] sm:$0xff] }
  0xf6   : > { %v3913_v1 = vmax.f32 %v3264_v4, %v3724_v0  ;;  %v4044_v57 = vsel %vm3944_vm4, %v12233_v7, %v12232_v29  ;;  %v4234_v32 = vadd.f32 %v4039_v63, %v3585_v14  ;;  %v12234_v51 = vrot.slane %v12208_v45, 4  ;;  %v5884_v7 = vld [vmem:[%s6299_s20 + $0x1d0] sm:$0xff] }
  0xf7   : > { %v4236_v30 = vadd.f32 %v4044_v57, %v3587_v52  ;;  %v12235_v31 = vrot.slane %v12210_v3, 4  ;;  %v12236_v42 = vrot.slane %v7215_v36, 4  ;;  %v12237_v13 = vrot.slane %v12198_v20, 4  ;;  %v5853_v52 = vld [vmem:[%s6299_s20 + $0xd8] sm:$0xff]  ;;  %v5868_v36 = vld [vmem:[%s6299_s20 + $0x150] sm:$0xff]  ;;  %v8898_v20 = vld [vmem:[#allocation7 + $0x80] sm:$0xff] }
  0xf8   : > { %v4363_v40 = vsel %vm3944_vm4, %v7242_v39, %v12234_v51  ;;  %v12238_v14 = vrot.slane %v7370_v2, 4  ;;  %v12239_v45 = vrot.slane %v12193_v37, 4  ;;  %v447_v2 = vsel %vm281_vm0, %v5836_v46, %v7971_v26  ;;  %v5869_v37 = vld [vmem:[%s6299_s20 + $0x158] sm:$0xff] }
  0xf9   : > { %v4368_v4 = vsel %vm3944_vm4, %v12236_v42, %v12235_v31  ;;  %v4558_v0 = vmax.f32 %v3909_v34, %v4363_v40  ;;  %v4610_v63 = vadd.f32 %v4236_v30, %v4234_v32  ;;  %v8090_v29 = vsel %vm281_vm0, %v5837_v61, %v7971_v26  ;;  %v1636_v34 = vpop.permute.xlu1 %1635 }
  0xfa   : > { %v4373_v48 = vsel %vm3944_vm4, %v12238_v14, %v12237_v13  ;;  %v4049_v44 = vsel %vm3944_vm4, %v12239_v45, %v4048_v15  ;;  %v4560_v35 = vmax.f32 %v3911_v22, %v4368_v4  ;;  %v462_v22 = vsel %vm283_vm1, %v8090_v29, %v447_v2 }
  0xfb   : > { %v8079_v3 = vmax.f32 %v3913_v1, %v4373_v48  ;;  %v8082_v38 = vadd.f32 %v4049_v44, %v3589_v25  ;;  %v732_v25 = vsel %vm281_vm0, %v5852_v58, %v7971_v26  ;;  %v8102_v1 = vsel %vm281_vm0, %v5853_v52, %v7971_v26 }
  0xfc   : > { %v4674_v57 = vmax.f32 %v4558_v0, %v4560_v35  ;;  %v8106_v32 = vrot.slane %v462_v22, 6  ;;  %v747_v46 = vsel %vm283_vm1, %v8102_v1, %v732_v25  ;;  %v1017_v61 = vsel %vm281_vm0, %v5868_v36, %v7971_v26  ;;  %v12256_v35 = vld [vmem:[#allocation104_spill] sm:$0xff] }
  0xfd   : > { %v4642_v15 = vadd.f32 %v4610_v63, %v8082_v38  ;;  %v748_v51 = vrot.slane %v747_v46, 6  ;;  %v8117_v40 = vsel %vm281_vm0, %v5869_v37, %v7971_v26  ;;  %v1302_v31 = vsel %vm281_vm0, %v5884_v7, %v7971_v26 }
  0xfe   : > { %v4706_v30 = vmax.f32 %v4674_v57, %v8079_v3  ;;  %466 = vst [vmem:[#allocation7 + $0x98] sm:$0xff] %v8106_v32  ;;  %v1032_v4 = vsel %vm283_vm1, %v8117_v40, %v1017_v61  ;;  %v8128_v13 = vsel %vm281_vm0, %v5885_v50, %v7971_v26  ;;  %v8131_v14 = vadd.f32 %v1636_v34, %v8106_v32  ;;  %v1631_v50 = vpop.permute.xlu0 %1630 }
  0xff   : > { %v4738_v42 = vmul.f32 0.06666667, %v4642_v15  ;;  %751 = vst [vmem:[#allocation7 + $0x188] sm:$0xff] %v748_v51  ;;  %v1033_v48 = vrot.slane %v1032_v4, 6  ;;  %v1317_v58 = vsel %vm283_vm1, %v8128_v13, %v1302_v31  ;;  %v8135_v52 = vadd.f32 %v1636_v34, %v748_v51  ;;  %v1646_v51 = vpop.permute.xlu1 %1645 }
 0x100   : > { %v449_v45 = vsel %vm283_vm1, %v447_v2, %v7971_v26  ;;  %v1318_v0 = vrot.slane %v1317_v58, 6  ;;  %v734_v46 = vsel %vm283_vm1, %v732_v25, %v7971_v26  ;;  %v5854_v58 = vld [vmem:[%s6299_s20 + $0xe0] sm:$0xff]  ;;  %v1019_v25 = vsel %vm283_vm1, %v1017_v61, %v7971_v26 }
 0x101   : > { %12241 = vst [vmem:[#allocation26_spill] sm:$0xff] %v8135_v52  ;;  %v4770_v44 = vadd.f32 %v4738_v42, %v4706_v30  ;;  %1036 = vst [vmem:[#allocation7 + $0x278] sm:$0xff] %v1033_v48  ;;  %v8141_v63 = vadd.f32 %v1636_v34, %v1033_v48  ;;  %v8150_v15 = vrot.slane %v449_v45, 6  ;;  %v5838_v30 = vld [vmem:[%s6299_s20 + $0x60] sm:$0xff]  ;;  %v735_v48 = vrot.slane %v734_v46, 6 }
 0x102   : > { %1321 = vst [vmem:[#allocation7 + $0x368] sm:$0xff] %v1318_v0  ;;  %v8147_v2 = vadd.f32 %v1636_v34, %v1318_v0  ;;  %v1020_v22 = vrot.slane %v1019_v25, 6  ;;  %v1304_v7 = vsel %vm283_vm1, %v1302_v31, %v7971_v26  ;;  %v8176_v45 = vsel %vm281_vm0, %v5838_v30, %v7971_v26 }
 0x103   : > { %5992 = vmatmul.mubr.msk.f32.vlgmr.msra.gmra.mrb[0].mxu1 %vm4794_vm5, %v4770_v44  ;;  %v5870_v44 = vld [vmem:[%s6299_s20 + $0x160] sm:$0xff]  ;;  %453 = vst [vmem:[#allocation7 + $0x90] sm:$0xff] %v8150_v15  ;;  %738 = vst [vmem:[#allocation7 + $0x180] sm:$0xff] %v735_v48  ;;  %v8169_v46 = vadd.f32 %v1631_v50, %v8150_v15  ;;  %v8171_v4 = vadd.f32 %v1631_v50, %v735_v48  ;;  %v1305_v42 = vrot.slane %v1304_v7, 6  ;;  %v12259_v39 = vrot.slane %v12256_v35, 2 }
 0x104   : > { %12242 = vst [vmem:[#allocation19_spill] sm:$0xff] %v8147_v2  ;;  %v8181_v61 = vsel %vm281_vm0, %v5854_v58, %v7971_v26  ;;  %v8186_v31 = vsel %vm281_vm0, %v5870_v44, %v7971_v26  ;;  %1023 = vst [vmem:[#allocation7 + $0x270] sm:$0xff] %v1020_v22  ;;  %v8188_v25 = vadd.f32 %v1631_v50, %v1020_v22  ;;  %v5886_v44 = vld [vmem:[%s6299_s20 + $0x1e0] sm:$0xff] }
 0x105   : > { %12243 = vst [vmem:[#allocation52_spill] sm:$0xff] %v8171_v4  ;;  %1308 = vst [vmem:[#allocation7 + $0x360] sm:$0xff] %v1305_v42  ;;  %v8193_v0 = vadd.f32 %v1631_v50, %v1305_v42  ;;  %v482_v48 = vsel %vm283_vm1, %v8176_v45, %v7971_v26  ;;  %v767_v36 = vsel %vm283_vm1, %v8181_v61, %v7971_v26  ;;  %v12254_v4 = vld [vmem:[#allocation99_spill] sm:$0xff] }
 0x106   : > { %v8208_v57 = vrot.slane %v482_v48, 6  ;;  %v1052_v7 = vsel %vm283_vm1, %v8186_v31, %v7971_v26  ;;  %v8219_v22 = vsel %vm281_vm0, %v5886_v44, %v7971_v26  ;;  %v468_v42 = vsel %vm283_vm1, %v7971_v26, %v8090_v29 }
 0x107   : > { %12244 = vst [vmem:[#allocation56_spill] sm:$0xff] %v8193_v0  ;;  %v8225_v48 = vrot.slane %v767_v36, 6  ;;  %v8227_v58 = vrot.slane %v1052_v7, 6  ;;  %v1337_v50 = vsel %vm283_vm1, %v8219_v22, %v7971_v26  ;;  %v469_v37 = vrot.slane %v468_v42, 6 }
 0x108   : > { %12245 = vst [vmem:[#allocation78_spill] sm:$0xff] %v8208_v57  ;;  %486 = vst [vmem:[#allocation7 + $0xa8] sm:$0xff] %v8208_v57  ;;  %v8233_v34 = vadd.f32 %v1646_v51, %v8208_v57  ;;  %v8235_v30 = vrot.slane %v1337_v50, 6  ;;  %v753_v29 = vsel %vm283_vm1, %v7971_v26, %v8102_v1  ;;  %v1323_v1 = vsel %vm283_vm1, %v7971_v26, %v8128_v13 }
 0x109   : > { %12246 = vst [vmem:[#allocation85_spill] sm:$0xff] %v8225_v48  ;;  %12247 = vst [vmem:[#allocation16_spill] sm:$0xff] %v8227_v58  ;;  %v8244_v36 = vadd.f32 %v1646_v51, %v8225_v48  ;;  %v8247_v7 = vadd.f32 %v1646_v51, %v8227_v58  ;;  %v754_v0 = vrot.slane %v753_v29, 6  ;;  %v1324_v16 = vrot.slane %v1323_v1, 6 }
 0x10a   : > { %12248 = vst [vmem:[#allocation40_spill] sm:$0xff] %v8233_v34  ;;  %12249 = vst [vmem:[#allocation65_spill] sm:$0xff] %v8235_v30  ;;  %v8253_v42 = vadd.f32 %v1646_v51, %v8235_v30  ;;  %v1038_v51 = vsel %vm283_vm1, %v7971_v26, %v8117_v40  ;;  %v12255_v50 = vrot.slane %v7530_v55, 1  ;;  %v12257_v29 = vrot.slane %v12256_v35, 1 }
 0x10b   : > { %771 = vst [vmem:[#allocation7 + $0x198] sm:$0xff] %v8225_v48  ;;  %1056 = vst [vmem:[#allocation7 + $0x288] sm:$0xff] %v8227_v58  ;;  %v1641_v48 = vpop.permute.xlu0 %1640  ;;  %v1039_v60 = vrot.slane %v1038_v51, 6  ;;  %v12258_v1 = vrot.slane %v7530_v55, 2  ;;  %v12265_v58 = vld [vmem:[#allocation106_spill] sm:$0xff] }
 0x10c   : > { %12250 = vst [vmem:[#allocation62_spill] sm:$0xff] %v8244_v36  ;;  %12251 = vst [vmem:[#allocation73_spill] sm:$0xff] %v8247_v7  ;;  %v2000_v34 = vrot.slane %v12265_v58, 1 }
 0x10d   : > { %1341 = vst [vmem:[#allocation7 + $0x378] sm:$0xff] %v8235_v30  ;;  %12252 = vst [vmem:[#allocation68_spill] sm:$0xff] %v8253_v42  ;;  %v11896_v30 = vrot.slane %v12254_v4, 1  ;;  %v2344_v42 = vsel %vm1889_vm2, %v12257_v29, %v12255_v50  ;;  %v2993_v62 = vsel %vm283_vm1, %v12259_v39, %v12258_v1  ;;  %v11903_v39 = vrot.slane %v12254_v4, 3 }
 0x10e   : > { %472 = vst [vmem:[#allocation7 + $0xa0] sm:$0xff] %v469_v37  ;;  %v12253_v37 = vld [vmem:[#allocation103_spill] sm:$0xff]  ;;  %757 = vst [vmem:[#allocation7 + $0x190] sm:$0xff] %v754_v0  ;;  %v2582_v0 = vmax.f32 %v12256_v35, %v2344_v42 }
 0x10f   : > { %v1910_v44 = vrot.slane %v12253_v37, 1  ;;  %v2667_v40 = vrot.slane %v12253_v37, 2  ;;  %1042 = vst [vmem:[#allocation7 + $0x280] sm:$0xff] %v1039_v60  ;;  %v3316_v50 = vrot.slane %v12253_v37, 3  ;;  %1327 = vst [vmem:[#allocation7 + $0x370] sm:$0xff] %v1324_v16 }
 0x110   : > { %v3231_v43 = vmax.f32 %v2582_v0, %v2993_v62  ;;  %v12263_v0 = vrot.slane %v8131_v14, 1 }
 0x111   : > { %v1912_v13 = vsel %vm1889_vm2, %v1910_v44, %v11896_v30  ;;  %v12260_v30 = vrot.slane %v12254_v4, 2  ;;  %v12261_v44 = vrot.slane %v7530_v55, 3 }
 0x112   : > { %v2150_v42 = vadd.f32 %v12253_v37, %v1912_v13  ;;  %v3318_v13 = vsel %vm3295_vm3, %v3316_v50, %v11903_v39 }
 0x113   : > { %v2669_v49 = vsel %vm283_vm1, %v2667_v40, %v12260_v30  ;;  %v12262_v30 = vrot.slane %v12256_v35, 3  ;;  %v3965_v40 = vrot.slane %v12253_v37, 4 }
 0x114   : > { %v2907_v51 = vadd.f32 %v2669_v49, %v2150_v42  ;;  %v4289_v42 = vrot.slane %v12256_v35, 4  ;;  %v12274_v35 = vrot.slane %v8141_v63, 1  ;;  %v12279_v49 = vrot.slane %v7530_v55, 4 }
 0x115   : > { %v8287_v36 = vld [vmem:[#allocation7 + $0xa0] sm:$0xf]  ;;  %v3642_v62 = vsel %vm3295_vm3, %v12262_v30, %v12261_v44  ;;  %v8330_v60 = vld [vmem:[#allocation7 + $0x190] sm:$0xf] }
 0x116   : > { %v8300_v29 = vadd.f32 %v1641_v48, %v8287_v36  ;;  %v3880_v7 = vmax.f32 %v3231_v43, %v3642_v62  ;;  %12264 = vst [vmem:[#allocation43_spill] sm:$0xff] %v8330_v60  ;;  %v3556_v50 = vadd.f32 %v3318_v13, %v2907_v51  ;;  %v12266_v44 = vld [vmem:[#allocation101_spill] sm:$0xff]  ;;  %v8338_v57 = vadd.f32 %v1641_v48, %v8330_v60  ;;  %v8343_v62 = vld [vmem:[#allocation7 + $0x370] sm:$0xf] }
 0x117   : > { %v8335_v37 = vld [vmem:[#allocation7 + $0x280] sm:$0xf]  ;;  %12269 = vst [vmem:[#allocation103_spill] sm:$0xff] %v8343_v62  ;;  %v8352_v30 = vadd.f32 %v1641_v48, %v8343_v62  ;;  %v12272_v13 = vrot.slane %v8135_v52, 1  ;;  %v12278_v62 = vrot.slane %v12254_v4, 4  ;;  %v4291_v58 = vsel %vm3944_vm4, %v4289_v42, %v12279_v49 }
 0x118   : > { %v2355_v16 = vrot.slane %v8300_v29, 1  ;;  %12267 = vst [vmem:[#allocation44_spill] sm:$0xff] %v8335_v37  ;;  %12268 = vst [vmem:[#allocation9_spill] sm:$0xff] %v8338_v57  ;;  %v8346_v51 = vadd.f32 %v1641_v48, %v8335_v37  ;;  %v12280_v60 = vrot.slane %v12266_v44, 1  ;;  %v8400_v43 = vmax.f32 %v3880_v7, %v4291_v58  ;;  %v12283_v49 = vld [vmem:[#allocation45_spill] sm:$0xff]  ;;  %v6146_v37 = vld [vmem:[#allocation7 + $0x68] sm:$0xff] }
 0x119   : > { %12271 = vst [vmem:[#allocation104_spill] sm:$0xff] %v8352_v30  ;;  %v2490_v48 = vrot.slane %v8352_v30, 1  ;;  %v12284_v30 = vrot.slane %v7537_v21, 2 }
 0x11a   : > { %v8326_v1 = vsel %vm1889_vm2, %v12263_v0, %v2355_v16  ;;  %12270 = vst [vmem:[#allocation99_spill] sm:$0xff] %v8346_v51  ;;  %v2400_v16 = vrot.slane %v8338_v57, 1  ;;  %v2445_v39 = vrot.slane %v8346_v51, 1  ;;  %v2002_v57 = vsel %vm1889_vm2, %v2000_v34, %v12280_v60  ;;  %v8405_v34 = vld [vmem:[#allocation7 + $0x248] sm:$0xff] }
 0x11b   : > { %v12289_v51 = vrot.slane %v8405_v34, 2 }
 0x11c   : > { %v8364_v0 = vsel %vm1889_vm2, %v12272_v13, %v2400_v16  ;;  %v8372_v27 = vsel %vm1889_vm2, %v12274_v35, %v2445_v39  ;;  %v12276_v16 = vrot.slane %v8147_v2, 1  ;;  %v3967_v39 = vsel %vm3944_vm4, %v3965_v40, %v12278_v62  ;;  %v6143_v40 = vld [vmem:[#allocation7 + $0x240] sm:$0xff] }
 0x11d   : > { %12273 = vst [vmem:[#allocation106_spill] sm:$0xff] %v8364_v0  ;;  %12275 = vst [vmem:[#allocation101_spill] sm:$0xff] %v8372_v27  ;;  %v8387_v35 = vadd.f32 %v3967_v39, %v3556_v50  ;;  %v2186_v50 = vadd.f32 %v6143_v40, %v2002_v57  ;;  %v2757_v39 = vrot.slane %v6143_v40, 2  ;;  %v3406_v58 = vrot.slane %v6143_v40, 3  ;;  %v5839_v2 = vld [vmem:[%s6299_s20 + $0x68] sm:$0xff] }
 0x11e   : > { %v8380_v13 = vsel %vm1889_vm2, %v12276_v16, %v2490_v48  ;;  %v12281_v48 = vrot.slane %v7537_v21, 1  ;;  %v12282_v16 = vrot.slane %v7563_v18, 1  ;;  %v12288_v0 = vrot.slane %v7563_v18, 3 }
 0x11f   : > { %12277 = vst [vmem:[#allocation128_spill] sm:$0xff] %v8380_v13  ;;  %v4627_v42 = vadd.f32 %v12283_v49, %v8387_v35  ;;  %v11927_v13 = vrot.slane %v8405_v34, 3  ;;  %v12287_v49 = vrot.slane %v7537_v21, 3 }
 0x120   : > { %v2434_v28 = vsel %vm1889_vm2, %v12282_v16, %v12281_v48  ;;  %v12285_v48 = vrot.slane %v7563_v18, 2 }
 0x121   : > { %v2618_v62 = vmax.f32 %v7563_v18, %v2434_v28  ;;  %v12286_v28 = vmax.f32 %v7740_v54, %v7742_v56  ;;  %v3732_v60 = vsel %vm3295_vm3, %v12288_v0, %v12287_v49  ;;  %v4723_v52 = vmul.f32 0.06666667, %v4627_v42  ;;  %v5855_v56 = vld [vmem:[%s6299_s20 + $0xe8] sm:$0xff] }
 0x122   : > { %v3083_v7 = vsel %vm283_vm1, %v12285_v48, %v12284_v30  ;;  %v2759_v30 = vsel %vm283_vm1, %v2757_v39, %v12289_v51  ;;  %v4055_v48 = vrot.slane %v6143_v40, 4  ;;  %v11926_v54 = vrot.slane %v8405_v34, 4 }
 0x123   : > { %v4691_v57 = vmax.f32 %v12286_v28, %v8400_v43  ;;  %v3267_v16 = vmax.f32 %v2618_v62, %v3083_v7  ;;  %v5871_v62 = vld [vmem:[%s6299_s20 + $0x168] sm:$0xff]  ;;  %v2943_v7 = vadd.f32 %v2759_v30, %v2186_v50  ;;  %v3408_v28 = vsel %vm3295_vm3, %v3406_v58, %v11927_v13 }
 0x124   : > { %v4379_v0 = vrot.slane %v7563_v18, 4  ;;  %v4057_v42 = vsel %vm3944_vm4, %v4055_v48, %v11926_v54  ;;  %v11925_v51 = vrot.slane %v7537_v21, 4  ;;  %v493_v40 = vsel %vm281_vm0, %v5839_v2, %v7971_v26 }
 0x125   : > { %v3916_v27 = vmax.f32 %v3267_v16, %v3732_v60  ;;  %v4755_v49 = vadd.f32 %v4723_v52, %v4691_v57  ;;  %v3592_v39 = vadd.f32 %v3408_v28, %v2943_v7  ;;  %v501_v50 = vsel %vm283_vm1, %v7971_v26, %v493_v40  ;;  %v5887_v52 = vld [vmem:[%s6299_s20 + $0x1e8] sm:$0xff]  ;;  %v1651_v28 = vpop.permute.xlu0 %1650 }
 0x126   : > { %v778_v60 = vsel %vm281_vm0, %v5855_v56, %v7971_v26  ;;  %v1063_v18 = vsel %vm281_vm0, %v5871_v62, %v7971_v26  ;;  %v4381_v58 = vsel %vm3944_vm4, %v4379_v0, %v11925_v51  ;;  %v502_v2 = vrot.slane %v501_v50, 6  ;;  %v12304_v51 = vld [vmem:[#allocation21_spill] sm:$0xff] }
 0x127   : > { %5970 = vmatprep.mubr.msk.f32.mxu0 %vm4794_vm5, %v4755_v49  ;;  %v786_v57 = vsel %vm283_vm1, %v7971_v26, %v778_v60  ;;  %v1071_v16 = vsel %vm283_vm1, %v7971_v26, %v1063_v18  ;;  %v8458_v30 = vadd.f32 %v4057_v42, %v3592_v39  ;;  %v8460_v48 = vmax.f32 %v3916_v27, %v4381_v58  ;;  %v12290_v27 = vld [vmem:[#allocation47_spill] sm:$0xff] }
 0x128   : > { %v787_v56 = vrot.slane %v786_v57, 6  ;;  %v1072_v62 = vrot.slane %v1071_v16, 6  ;;  %505 = vst [vmem:[#allocation7 + $0xb8] sm:$0xff] %v502_v2  ;;  %v1348_v7 = vsel %vm281_vm0, %v5887_v52, %v7971_v26  ;;  %v495_v0 = vsel %vm283_vm1, %v493_v40, %v8176_v45 }
 0x129   : > { %v780_v49 = vsel %vm283_vm1, %v778_v60, %v8181_v61  ;;  %v1065_v42 = vsel %vm283_vm1, %v1063_v18, %v8186_v31  ;;  %v4643_v39 = vadd.f32 %v12290_v27, %v8458_v30  ;;  %v12291_v50 = vmax.f32 %v7818_v23, %v7820_v47 }
 0x12a   : > { %790 = vst [vmem:[#allocation7 + $0x1a8] sm:$0xff] %v787_v56  ;;  %1075 = vst [vmem:[#allocation7 + $0x298] sm:$0xff] %v1072_v62  ;;  %v1356_v52 = vsel %vm283_vm1, %v7971_v26, %v1348_v7  ;;  %v8479_v45 = vrot.slane %v495_v0, 6  ;;  %v8481_v61 = vrot.slane %v780_v49, 6  ;;  %v8483_v60 = vrot.slane %v1065_v42, 6 }
 0x12b   : > { %v4707_v58 = vmax.f32 %v12291_v50, %v8460_v48  ;;  %v1357_v40 = vrot.slane %v1356_v52, 6  ;;  %v1350_v31 = vsel %vm283_vm1, %v1348_v7, %v8219_v22  ;;  %v4739_v18 = vmul.f32 0.06666667, %v4643_v39  ;;  %v1656_v7 = vpop.permute.xlu1 %1655  ;;  %v12302_v50 = vld [vmem:[#allocation29_spill] sm:$0xff] }
 0x12c   : > { %12292 = vst [vmem:[#allocation45_spill] sm:$0xff] %v8479_v45  ;;  %12293 = vst [vmem:[#allocation47_spill] sm:$0xff] %v8481_v61  ;;  %v8488_v23 = vrot.slane %v1350_v31, 6  ;;  %v8491_v47 = vadd.f32 %v1651_v28, %v8479_v45  ;;  %v8497_v57 = vadd.f32 %v1651_v28, %v8481_v61  ;;  %v8500_v22 = vadd.f32 %v1651_v28, %v8483_v60 }
 0x12d   : > { %12294 = vst [vmem:[#allocation129_spill] sm:$0xff] %v8483_v60  ;;  %499 = vst [vmem:[#allocation7 + $0xb0] sm:$0xff] %v8479_v45  ;;  %v4771_v62 = vadd.f32 %v4739_v18, %v4707_v58  ;;  %v12303_v2 = vrot.slane %v12302_v50, 1  ;;  %v12305_v54 = vrot.slane %v12304_v51, 1 }
 0x12e   : > { %12295 = vst [vmem:[#allocation130_spill] sm:$0xff] %v8488_v23  ;;  %1360 = vst [vmem:[#allocation7 + $0x388] sm:$0xff] %v1357_v40  ;;  %v8506_v0 = vadd.f32 %v1651_v28, %v8488_v23  ;;  %v12312_v39 = vrot.slane %v8497_v57, 1  ;;  %v12314_v45 = vrot.slane %v8500_v22, 1 }
 0x12f   : > { %784 = vst [vmem:[#allocation7 + $0x1a0] sm:$0xff] %v8481_v61  ;;  %1069 = vst [vmem:[#allocation7 + $0x290] sm:$0xff] %v8483_v60  ;;  %5994 = vmatprep.mubr.msk.f32.mxu1 %vm4794_vm5, %v4771_v62  ;;  %v8515_v58 = vld [vmem:[#allocation7 + $0xb8] sm:$0xf]  ;;  %v1909_v28 = vsel %vm1889_vm2, %v12305_v54, %v12303_v2  ;;  %v12310_v61 = vrot.slane %v8491_v47, 1 }
 0x130   : > { %12296 = vst [vmem:[#allocation131_spill] sm:$0xff] %v8497_v57  ;;  %1354 = vst [vmem:[#allocation7 + $0x380] sm:$0xff] %v8488_v23  ;;  %v8526_v56 = vadd.f32 %v1656_v7, %v8515_v58  ;;  %v12316_v12 = vrot.slane %v8506_v0, 1 }
 0x131   : > { %12297 = vst [vmem:[#allocation132_spill] sm:$0xff] %v8506_v0  ;;  %12298 = vst [vmem:[#allocation133_spill] sm:$0xff] %v8515_v58  ;;  %v8521_v49 = vld [vmem:[#allocation7 + $0x1a8] sm:$0xf]  ;;  %v8523_v16 = vld [vmem:[#allocation7 + $0x298] sm:$0xf] }
 0x132   : > { %12299 = vst [vmem:[#allocation134_spill] sm:$0xff] %v8521_v49  ;;  %12300 = vst [vmem:[#allocation135_spill] sm:$0xff] %v8523_v16  ;;  %v8536_v31 = vadd.f32 %v1656_v7, %v8521_v49  ;;  %v8539_v18 = vadd.f32 %v1656_v7, %v8523_v16  ;;  %v2360_v52 = vrot.slane %v8526_v56, 1  ;;  %v12329_v49 = vrot.slane %v7530_v55, 2 }
 0x133   : > { %12301 = vst [vmem:[#allocation136_spill] sm:$0xff] %v8526_v56  ;;  %v6153_v56 = vld [vmem:[#allocation7 + $0x90] sm:$0xff] }
 0x134   : > { %12306 = vst [vmem:[#allocation29_spill] sm:$0xff] %v8536_v31  ;;  %12307 = vst [vmem:[#allocation21_spill] sm:$0xff] %v8539_v18  ;;  %v2405_v54 = vrot.slane %v8536_v31, 1  ;;  %v2450_v2 = vrot.slane %v8539_v18, 1  ;;  %v8579_v62 = vsel %vm1889_vm2, %v12310_v61, %v2360_v52  ;;  %v12322_v61 = vrot.slane %v6839_v24, 2 }
 0x135   : > { %v8547_v42 = vld [vmem:[#allocation7 + $0x388] sm:$0xf]  ;;  %12311 = vst [vmem:[#allocation139_spill] sm:$0xff] %v8579_v62 }
 0x136   : > { %12308 = vst [vmem:[#allocation137_spill] sm:$0xff] %v8547_v42  ;;  %v8554_v40 = vadd.f32 %v1656_v7, %v8547_v42  ;;  %v8584_v27 = vsel %vm1889_vm2, %v12312_v39, %v2405_v54  ;;  %v8589_v60 = vsel %vm1889_vm2, %v12314_v45, %v2450_v2  ;;  %v12318_v7 = vrot.slane %v6839_v24, 1 }
 0x137   : > { %12313 = vst [vmem:[#allocation140_spill] sm:$0xff] %v8584_v27  ;;  %12315 = vst [vmem:[#allocation141_spill] sm:$0xff] %v8589_v60  ;;  %v12319_v39 = vrot.slane %v12254_v4, 1  ;;  %v2583_v54 = vmax.f32 %v7530_v55, %v7624_v10  ;;  %v12320_v2 = vrot.slane %v12302_v50, 2  ;;  %v12323_v42 = vrot.slane %v12254_v4, 2 }
 0x138   : > { %12309 = vst [vmem:[#allocation138_spill] sm:$0xff] %v8554_v40  ;;  %v2495_v23 = vrot.slane %v8554_v40, 1 }
 0x139   : > { %v1914_v52 = vsel %vm1889_vm2, %v12319_v39, %v12318_v7  ;;  %v2671_v27 = vsel %vm283_vm1, %v12323_v42, %v12322_v61  ;;  %v12324_v7 = vld [vmem:[#allocation89_spill] sm:$0xff]  ;;  %v12332_v42 = vrot.slane %v12302_v50, 3  ;;  %v12333_v61 = vrot.slane %v12304_v51, 3 }
 0x13a   : > { %v8594_v13 = vsel %vm1889_vm2, %v12316_v12, %v2495_v23  ;;  %v12321_v12 = vrot.slane %v12304_v51, 2  ;;  %v2151_v40 = vadd.f32 %v6146_v37, %v1914_v52  ;;  %v12325_v39 = vrot.slane %v12324_v7, 2  ;;  %v12330_v37 = vld [vmem:[#allocation95_spill] sm:$0xff] }
 0x13b   : > { %12317 = vst [vmem:[#allocation142_spill] sm:$0xff] %v8594_v13  ;;  %v6145_v13 = vld [vmem:[#allocation7 + $0x50] sm:$0xff]  ;;  %v12331_v52 = vmax.f32 %v7463_v5, %v12330_v37  ;;  %v3315_v60 = vsel %vm3295_vm3, %v12333_v61, %v12332_v42  ;;  %v12341_v37 = vrot.slane %v12304_v51, 4 }
 0x13c   : > { %v2149_v45 = vadd.f32 %v6145_v13, %v1909_v28  ;;  %v2666_v23 = vsel %vm283_vm1, %v12321_v12, %v12320_v2  ;;  %v12326_v13 = vrot.slane %v7463_v5, 2  ;;  %v12327_v28 = vld [vmem:[#allocation112_spill] sm:$0xff]  ;;  %v2908_v18 = vadd.f32 %v2671_v27, %v2151_v40  ;;  %v6147_v61 = vld [vmem:[#allocation7 + $0x70] sm:$0xf] }
 0x13d   : > { %v12328_v31 = vrot.slane %v12327_v28, 2 }
 0x13e   : > { %v2990_v10 = vsel %vm283_vm1, %v12326_v13, %v12325_v39  ;;  %v2906_v12 = vadd.f32 %v2666_v23, %v2149_v45  ;;  %v12334_v39 = vrot.slane %v6839_v24, 3  ;;  %v12335_v13 = vrot.slane %v12254_v4, 3 }
 0x13f   : > { %v2995_v2 = vsel %vm283_vm1, %v12329_v49, %v12328_v31  ;;  %v3230_v0 = vmax.f32 %v12331_v52, %v2990_v10  ;;  %v12336_v49 = vrot.slane %v12324_v7, 3  ;;  %v12337_v31 = vrot.slane %v7463_v5, 3 }
 0x140   : > { %v3232_v57 = vmax.f32 %v2583_v54, %v2995_v2  ;;  %v3320_v16 = vsel %vm3295_vm3, %v12335_v13, %v12334_v39  ;;  %v12338_v54 = vrot.slane %v12327_v28, 3  ;;  %v12339_v23 = vrot.slane %v7530_v55, 3 }
 0x141   : > { %v3639_v45 = vsel %vm3295_vm3, %v12337_v31, %v12336_v49  ;;  %v3555_v2 = vadd.f32 %v3315_v60, %v2906_v12  ;;  %v12340_v24 = vrot.slane %v12302_v50, 4  ;;  %v3557_v42 = vadd.f32 %v3320_v16, %v2908_v18  ;;  %v12346_v12 = vld [vmem:[#allocation32_spill] sm:$0xff]  ;;  %v12348_v18 = vld [vmem:[#allocation22_spill] sm:$0xff] }
 0x142   : > { %v3644_v10 = vsel %vm3295_vm3, %v12339_v23, %v12338_v54  ;;  %v3879_v27 = vmax.f32 %v3230_v0, %v3639_v45  ;;  %v3968_v39 = vrot.slane %v6147_v61, 4  ;;  %v12342_v13 = vrot.slane %v12324_v7, 4 }
 0x143   : > { %v3881_v40 = vmax.f32 %v3232_v57, %v3644_v10  ;;  %v3964_v52 = vsel %vm3944_vm4, %v12341_v37, %v12340_v24  ;;  %v12343_v49 = vrot.slane %v7463_v5, 4  ;;  %v12344_v54 = vrot.slane %v12327_v28, 4  ;;  %v12351_v10 = vld [vmem:[#allocation41_spill] sm:$0xff] }
 0x144   : > { %v12345_v60 = vrot.slane %v7530_v55, 4  ;;  %v4204_v0 = vadd.f32 %v3964_v52, %v3555_v2  ;;  %v12347_v16 = vrot.slane %v12346_v12, 1  ;;  %v12349_v45 = vrot.slane %v12348_v18, 1  ;;  %v6148_v2 = vld [vmem:[#allocation7 + $0x230] sm:$0xff] }
 0x145   : > { %v4288_v31 = vsel %vm3944_vm4, %v12343_v49, %v12342_v13  ;;  %v12350_v5 = vrot.slane %v12254_v4, 4  ;;  %v12352_v28 = vrot.slane %v12351_v10, 1  ;;  %v12353_v55 = vrot.slane %v12266_v44, 1 }
 0x146   : > { %v4293_v57 = vsel %vm3944_vm4, %v12345_v60, %v12344_v54  ;;  %v4528_v50 = vmax.f32 %v3879_v27, %v4288_v31  ;;  %v1999_v7 = vsel %vm1889_vm2, %v12349_v45, %v12347_v16  ;;  %v4596_v61 = vadd.f32 %v4204_v0, %v7942_v11  ;;  %v12359_v60 = vld [vmem:[#allocation91_spill] sm:$0xff]  ;;  %v12362_v0 = vld [vmem:[#allocation114_spill] sm:$0xff] }
 0x147   : > { %v8676_v51 = vmax.f32 %v3881_v40, %v4293_v57  ;;  %v3969_v23 = vsel %vm3944_vm4, %v12350_v5, %v3968_v39  ;;  %v2004_v24 = vsel %vm1889_vm2, %v12353_v55, %v12352_v28  ;;  %v2185_v27 = vadd.f32 %v6148_v2, %v1999_v7  ;;  %v12354_v40 = vld [vmem:[#allocation117_spill] sm:$0xff] }
 0x148   : > { %v2619_v37 = vmax.f32 %v7537_v21, %v12354_v40  ;;  %v8693_v52 = vadd.f32 %v3969_v23, %v3557_v42  ;;  %v4660_v13 = vmax.f32 %v7976_v53, %v4528_v50  ;;  %v2187_v4 = vadd.f32 %v8405_v34, %v2004_v24  ;;  %v12365_v55 = vld [vmem:[#allocation97_spill] sm:$0xff] }
 0x149   : > { %v12355_v39 = vrot.slane %v12346_v12, 2  ;;  %v12356_v49 = vrot.slane %v12348_v18, 2  ;;  %v12357_v31 = vrot.slane %v12351_v10, 2  ;;  %v12358_v54 = vrot.slane %v8405_v34, 2 }
 0x14a   : > { %v12360_v57 = vrot.slane %v12359_v60, 2  ;;  %v12361_v11 = vrot.slane %v7483_v41, 2  ;;  %v12363_v50 = vrot.slane %v12362_v0, 2  ;;  %v12364_v16 = vrot.slane %v7537_v21, 2 }
 0x14b   : > { %v2756_v44 = vsel %vm283_vm1, %v12356_v49, %v12355_v39  ;;  %v2761_v42 = vsel %vm283_vm1, %v12358_v54, %v12357_v31  ;;  %v4628_v7 = vadd.f32 %v4596_v61, %v8693_v52  ;;  %v4692_v5 = vmax.f32 %v4660_v13, %v8676_v51 }
 0x14c   : > { %v3080_v53 = vsel %vm283_vm1, %v12361_v11, %v12360_v57  ;;  %v3085_v45 = vsel %vm283_vm1, %v12364_v16, %v12363_v50  ;;  %v2942_v23 = vadd.f32 %v2756_v44, %v2185_v27  ;;  %v2944_v28 = vadd.f32 %v2761_v42, %v2187_v4  ;;  %v5840_v11 = vld [vmem:[%s6299_s20 + $0x70] sm:$0xff] }
 0x14d   : > { %v12366_v24 = vmax.f32 %v7483_v41, %v12365_v55  ;;  %v3268_v40 = vmax.f32 %v2619_v37, %v3085_v45  ;;  %v12367_v39 = vrot.slane %v12346_v12, 3  ;;  %v12368_v49 = vrot.slane %v12348_v18, 3 }
 0x14e   : > { %v12369_v54 = vrot.slane %v12351_v10, 3  ;;  %v12370_v61 = vrot.slane %v8405_v34, 3  ;;  %v4724_v27 = vmul.f32 0.06666667, %v4628_v7  ;;  %v12371_v42 = vrot.slane %v12359_v60, 3 }
 0x14f   : > { %v3266_v2 = vmax.f32 %v12366_v24, %v3080_v53  ;;  %v3405_v31 = vsel %vm3295_vm3, %v12368_v49, %v12367_v39  ;;  %v12372_v37 = vrot.slane %v7483_v41, 3  ;;  %v12373_v53 = vrot.slane %v12362_v0, 3  ;;  %v5841_v24 = vld [vmem:[%s6299_s20 + $0x78] sm:$0xff] }
 0x150   : > { %v3410_v13 = vsel %vm3295_vm3, %v12370_v61, %v12369_v54  ;;  %v3591_v4 = vadd.f32 %v3405_v31, %v2942_v23  ;;  %v12374_v10 = vrot.slane %v7537_v21, 3  ;;  %v12375_v45 = vrot.slane %v12346_v12, 4  ;;  %v5857_v12 = vld [vmem:[%s6299_s20 + $0xf8] sm:$0xff] }
 0x151   : > { %v3593_v44 = vadd.f32 %v3410_v13, %v2944_v28  ;;  %v3729_v57 = vsel %vm3295_vm3, %v12372_v37, %v12371_v42  ;;  %v12376_v7 = vrot.slane %v12348_v18, 4  ;;  %v6149_v28 = vld [vmem:[#allocation7 + $0x250] sm:$0xf]  ;;  %v4756_v39 = vadd.f32 %v4724_v27, %v4692_v5  ;;  %v5856_v13 = vld [vmem:[%s6299_s20 + $0xf0] sm:$0xff] }
 0x152   : > { %v3734_v50 = vsel %vm3295_vm3, %v12374_v10, %v12373_v53  ;;  %v3915_v16 = vmax.f32 %v3266_v2, %v3729_v57  ;;  %v4058_v55 = vrot.slane %v6149_v28, 4  ;;  %v12377_v54 = vrot.slane %v12359_v60, 4  ;;  %v5872_v60 = vld [vmem:[%s6299_s20 + $0x170] sm:$0xff] }
 0x153   : > { %v4054_v23 = vsel %vm3944_vm4, %v12376_v7, %v12375_v45  ;;  %v3917_v49 = vmax.f32 %v3268_v40, %v3734_v50  ;;  %v12378_v61 = vrot.slane %v7483_v41, 4  ;;  %v12379_v18 = vrot.slane %v8405_v34, 4  ;;  %5971 = vmatmul.mubr.msk.f32.gmra.mrb[2].mxu0 %vm4794_vm5, %v4756_v39  ;;  %v5888_v53 = vld [vmem:[%s6299_s20 + $0x1f0] sm:$0xff]  ;;  %v1666_v50 = vpop.permute.xlu1 %1665 }
 0x154   : > { %v4240_v31 = vadd.f32 %v4054_v23, %v3591_v4  ;;  %v12380_v37 = vrot.slane %v12362_v0, 4  ;;  %v12381_v5 = vrot.slane %v7537_v21, 4  ;;  %v513_v41 = vsel %vm281_vm0, %v5840_v11, %v7971_v26  ;;  %v5873_v0 = vld [vmem:[%s6299_s20 + $0x178] sm:$0xff] }
 0x155   : > { %v4378_v2 = vsel %vm3944_vm4, %v12378_v61, %v12377_v54  ;;  %v4059_v42 = vsel %vm3944_vm4, %v12379_v18, %v4058_v55  ;;  %v526_v21 = vsel %vm281_vm0, %v5841_v24, %v7971_v26  ;;  %v1096_v24 = vsel %vm281_vm0, %v5873_v0, %v7971_v26 }
 0x156   : > { %v4383_v40 = vsel %vm3944_vm4, %v12381_v5, %v12380_v37  ;;  %v4564_v27 = vmax.f32 %v3915_v16, %v4378_v2  ;;  %v8770_v4 = vadd.f32 %v4059_v42, %v3593_v44  ;;  %v4612_v57 = vadd.f32 %v4240_v31, %v8082_v38  ;;  %v5889_v38 = vld [vmem:[%s6299_s20 + $0x1f8] sm:$0xff] }
 0x157   : > { %v8772_v34 = vmax.f32 %v3917_v49, %v4383_v40  ;;  %v528_v11 = vsel %vm283_vm1, %v526_v21, %v513_v41  ;;  %v798_v44 = vsel %vm281_vm0, %v5856_v13, %v7971_v26  ;;  %v811_v16 = vsel %vm281_vm0, %v5857_v12, %v7971_v26 }
 0x158   : > { %v4676_v10 = vmax.f32 %v8079_v3, %v4564_v27  ;;  %v4644_v45 = vadd.f32 %v4612_v57, %v8770_v4  ;;  %v8790_v7 = vrot.slane %v528_v11, 6  ;;  %v813_v23 = vsel %vm283_vm1, %v811_v16, %v798_v44  ;;  %v8883_v57 = vld [vmem:[#allocation7 + $0x78] sm:$0xff] }
 0x159   : > { %v1083_v3 = vsel %vm281_vm0, %v5872_v60, %v7971_v26  ;;  %v814_v55 = vrot.slane %v813_v23, 6  ;;  %v1368_v39 = vsel %vm281_vm0, %v5888_v53, %v7971_v26  ;;  %v1381_v54 = vsel %vm281_vm0, %v5889_v38, %v7971_v26  ;;  %v1661_v53 = vpop.permute.xlu0 %1660 }
 0x15a   : > { %v4708_v28 = vmax.f32 %v4676_v10, %v8772_v34  ;;  %v4740_v49 = vmul.f32 0.06666667, %v4644_v45  ;;  %v1098_v31 = vsel %vm283_vm1, %v1096_v24, %v1083_v3  ;;  %v8808_v61 = vadd.f32 %v1666_v50, %v8790_v7 }
 0x15b   : > { %817 = vst [vmem:[#allocation7 + $0x1b8] sm:$0xff] %v814_v55  ;;  %v8810_v2 = vrot.slane %v1098_v31, 6  ;;  %v1383_v13 = vsel %vm283_vm1, %v1381_v54, %v1368_v39  ;;  %v8813_v12 = vadd.f32 %v1666_v50, %v814_v55  ;;  %v515_v18 = vsel %vm283_vm1, %v513_v41, %v7971_v26  ;;  %v8839_v31 = vld [vmem:[#allocation7] sm:$0xff] }
 0x15c   : > { %v4772_v42 = vadd.f32 %v4740_v49, %v4708_v28  ;;  %v1384_v37 = vrot.slane %v1383_v13, 6  ;;  %v8829_v10 = vrot.slane %v515_v18, 6  ;;  %v800_v11 = vsel %vm283_vm1, %v798_v44, %v7971_v26  ;;  %12384 = vst [vmem:[#allocation95_spill] sm:$0xff] %v8839_v31 }
 0x15d   : > { %12382 = vst [vmem:[#allocation89_spill] sm:$0xff] %v8813_v12  ;;  %v8820_v40 = vadd.f32 %v1666_v50, %v8810_v2  ;;  %v801_v28 = vrot.slane %v800_v11, 6  ;;  %v1085_v13 = vsel %vm283_vm1, %v1083_v3, %v8839_v31  ;;  %v1370_v44 = vsel %vm283_vm1, %v1368_v39, %v8839_v31  ;;  %v1671_v38 = vpop.permute.xlu0 %1670 }
 0x15e   : > { %5995 = vmatmul.mubr.msk.f32.gmra.mrb[2].mxu1 %vm4794_vm5, %v4772_v42  ;;  %1387 = vst [vmem:[#allocation7 + $0x398] sm:$0xff] %v1384_v37  ;;  %v8826_v0 = vadd.f32 %v1666_v50, %v1384_v37  ;;  %v8843_v26 = vrot.slane %v1085_v13, 6  ;;  %v8848_v18 = vadd.f32 %v1661_v53, %v8829_v10  ;;  %v1371_v37 = vrot.slane %v1370_v44, 6 }
 0x15f   : > { %804 = vst [vmem:[#allocation7 + $0x1b0] sm:$0xff] %v801_v28  ;;  %v8850_v42 = vadd.f32 %v1661_v53, %v801_v28  ;;  %v534_v11 = vsel %vm283_vm1, %v8839_v31, %v526_v21  ;;  %v819_v49 = vsel %vm283_vm1, %v8839_v31, %v811_v16  ;;  %v1104_v3 = vsel %vm283_vm1, %v8839_v31, %v1096_v24  ;;  %v12388_v24 = vld [vmem:[#allocation36_spill] sm:$0xff] }
 0x160   : > { %12383 = vst [vmem:[#allocation112_spill] sm:$0xff] %v8826_v0  ;;  %v8859_v13 = vadd.f32 %v1661_v53, %v8843_v26  ;;  %1374 = vst [vmem:[#allocation7 + $0x390] sm:$0xff] %v1371_v37  ;;  %v8864_v44 = vadd.f32 %v1661_v53, %v1371_v37  ;;  %v535_v45 = vrot.slane %v534_v11, 6  ;;  %v820_v37 = vrot.slane %v819_v49, 6 }
 0x161   : > { %12385 = vst [vmem:[#allocation32_spill] sm:$0xff] %v8850_v42  ;;  %v1105_v21 = vrot.slane %v1104_v3, 6  ;;  %v1389_v41 = vsel %vm283_vm1, %v8839_v31, %v1381_v54  ;;  %v12387_v16 = vrot.slane %v7068_v19, 1  ;;  %v1920_v23 = vrot.slane %v8150_v15, 1  ;;  %v12390_v3 = vld [vmem:[#allocation108_spill] sm:$0xff] }
 0x162   : > { %12386 = vst [vmem:[#allocation22_spill] sm:$0xff] %v8864_v44  ;;  %538 = vst [vmem:[#allocation7 + $0xd0] sm:$0xff] %v535_v45  ;;  %v1390_v11 = vrot.slane %v1389_v41, 6  ;;  %v11959_v50 = vrot.slane %v8106_v32, 1  ;;  %v12389_v45 = vrot.slane %v7844_v33, 1  ;;  %v12391_v53 = vrot.slane %v12390_v3, 1 }
 0x163   : > { %v1917_v60 = vsel %vm1889_vm2, %v12388_v24, %v12387_v16  ;;  %823 = vst [vmem:[#allocation7 + $0x1c0] sm:$0xff] %v820_v37  ;;  %1108 = vst [vmem:[#allocation7 + $0x2b0] sm:$0xff] %v1105_v21  ;;  %v12392_v28 = vrot.slane %v8131_v14, 1  ;;  %v12393_v16 = vrot.slane %v8169_v46, 1  ;;  %v2672_v37 = vrot.slane %v8883_v57, 2 }
 0x164   : > { %v2152_v49 = vadd.f32 %v8883_v57, %v1917_v60  ;;  %v2349_v54 = vsel %vm1889_vm2, %v12391_v53, %v12389_v45  ;;  %v11960_v60 = vrot.slane %v8898_v20, 2  ;;  %1393 = vst [vmem:[#allocation7 + $0x3a0] sm:$0xff] %v1390_v11  ;;  %v1922_v53 = vsel %vm1889_vm2, %v1920_v23, %v11959_v50 }
 0x165   : > { %v2354_v24 = vsel %vm1889_vm2, %v12393_v16, %v12392_v28  ;;  %v2584_v41 = vmax.f32 %v12390_v3, %v2349_v54  ;;  %v2677_v45 = vrot.slane %v8150_v15, 2  ;;  %v11965_v39 = vrot.slane %v8106_v32, 2 }
 0x166   : > { %v2586_v21 = vmax.f32 %v8169_v46, %v2354_v24  ;;  %v2154_v28 = vadd.f32 %v1922_v53, %v8150_v15  ;;  %v2674_v54 = vsel %vm283_vm1, %v2672_v37, %v11960_v60  ;;  %v12394_v16 = vrot.slane %v7844_v33, 2 }
 0x167   : > { %v12395_v11 = vrot.slane %v12390_v3, 2  ;;  %v12396_v23 = vrot.slane %v8131_v14, 2  ;;  %v12397_v24 = vrot.slane %v8169_v46, 2  ;;  %v2679_v53 = vsel %vm283_vm1, %v2677_v45, %v11965_v39 }
 0x168   : > { %v2909_v27 = vadd.f32 %v2674_v54, %v2152_v49  ;;  %v2911_v60 = vadd.f32 %v2679_v53, %v2154_v28  ;;  %v3321_v44 = vrot.slane %v8883_v57, 3  ;;  %v12400_v45 = vrot.slane %v12390_v3, 3  ;;  %v9023_v54 = vld [vmem:[#allocation7 + $0x98] sm:$0xff] }
 0x169   : > { %v2998_v55 = vsel %vm283_vm1, %v12395_v11, %v12394_v16  ;;  %v3003_v50 = vsel %vm283_vm1, %v12397_v24, %v12396_v23  ;;  %v3326_v11 = vrot.slane %v8150_v15, 3  ;;  %v8931_v42 = vld [vmem:[#allocation7 + $0xd0] sm:$0xf]  ;;  %v12399_v24 = vrot.slane %v7844_v33, 3 }
 0x16a   : > { %v8924_v5 = vmax.f32 %v2584_v41, %v2998_v55  ;;  %v8926_v37 = vmax.f32 %v2586_v21, %v3003_v50  ;;  %12398 = vst [vmem:[#allocation41_spill] sm:$0xff] %v8931_v42  ;;  %v12401_v50 = vrot.slane %v8131_v14, 3  ;;  %v12402_v49 = vrot.slane %v8169_v46, 3  ;;  %v8947_v15 = vld [vmem:[#allocation7 + $0x1c0] sm:$0xf] }
 0x16b   : > { %v3647_v55 = vsel %vm3295_vm3, %v12400_v45, %v12399_v24  ;;  %v3970_v21 = vrot.slane %v8883_v57, 4  ;;  %12403 = vst [vmem:[#allocation117_spill] sm:$0xff] %v8947_v15  ;;  %v8950_v28 = vadd.f32 %v1671_v38, %v8931_v42  ;;  %v8955_v45 = vld [vmem:[#allocation7 + $0x2b0] sm:$0xf]  ;;  %v8958_v39 = vadd.f32 %v1671_v38, %v8947_v15  ;;  %v8963_v23 = vld [vmem:[#allocation7 + $0x3a0] sm:$0xf] }
 0x16c   : > { %v8944_v41 = vsel %vm3295_vm3, %v12402_v49, %v12401_v50  ;;  %12405 = vst [vmem:[#allocation114_spill] sm:$0xff] %v8955_v45  ;;  %12407 = vst [vmem:[#allocation36_spill] sm:$0xff] %v8963_v23  ;;  %v8966_v16 = vadd.f32 %v1671_v38, %v8955_v45  ;;  %v8972_v31 = vadd.f32 %v1671_v38, %v8963_v23  ;;  %v12410_v15 = vrot.slane %v8808_v61, 1 }
 0x16d   : > { %12404 = vst [vmem:[#allocation91_spill] sm:$0xff] %v8950_v28  ;;  %12406 = vst [vmem:[#allocation97_spill] sm:$0xff] %v8958_v39  ;;  %v2365_v24 = vrot.slane %v8950_v28, 1  ;;  %v2410_v57 = vrot.slane %v8958_v39, 1  ;;  %v12412_v38 = vrot.slane %v8813_v12, 1  ;;  %v12418_v12 = vrot.slane %v8898_v20, 3 }
 0x16e   : > { %12408 = vst [vmem:[#allocation108_spill] sm:$0xff] %v8966_v16  ;;  %12409 = vst [vmem:[#allocation143_spill] sm:$0xff] %v8972_v31  ;;  %v2455_v53 = vrot.slane %v8966_v16, 1  ;;  %v2500_v50 = vrot.slane %v8972_v31, 1  ;;  %v3882_v49 = vmax.f32 %v8924_v5, %v3647_v55  ;;  %v11986_v31 = vrot.slane %v9023_v54, 4 }
 0x16f   : > { %v8980_v62 = vsel %vm1889_vm2, %v12410_v15, %v2365_v24  ;;  %v8988_v42 = vsel %vm1889_vm2, %v12412_v38, %v2410_v57  ;;  %v12414_v15 = vrot.slane %v8820_v40, 1  ;;  %v12416_v57 = vrot.slane %v8826_v0, 1 }
 0x170   : > { %12411 = vst [vmem:[#allocation144_spill] sm:$0xff] %v8980_v62  ;;  %12413 = vst [vmem:[#allocation145_spill] sm:$0xff] %v8988_v42  ;;  %v3323_v23 = vsel %vm3295_vm3, %v3321_v44, %v12418_v12  ;;  %v3884_v42 = vmax.f32 %v8926_v37, %v8944_v41  ;;  %v12420_v12 = vrot.slane %v7844_v33, 4  ;;  %v12421_v44 = vrot.slane %v12390_v3, 4  ;;  %v6155_v41 = vld [vmem:[#allocation7 + $0x270] sm:$0xff] }
 0x171   : > { %v8996_v24 = vsel %vm1889_vm2, %v12414_v15, %v2455_v53  ;;  %v9004_v38 = vsel %vm1889_vm2, %v12416_v57, %v2500_v50  ;;  %v12419_v50 = vrot.slane %v8106_v32, 3  ;;  %v3558_v58 = vadd.f32 %v3323_v23, %v2909_v27  ;;  %v12423_v23 = vld [vmem:[#allocation38_spill] sm:$0xff] }
 0x172   : > { %12415 = vst [vmem:[#allocation146_spill] sm:$0xff] %v8996_v24  ;;  %12417 = vst [vmem:[#allocation147_spill] sm:$0xff] %v9004_v38  ;;  %v11983_v15 = vrot.slane %v8898_v20, 4  ;;  %v3975_v38 = vrot.slane %v6153_v56, 4  ;;  %v4299_v5 = vrot.slane %v8169_v46, 4  ;;  %v11984_v37 = vrot.slane %v8131_v14, 4 }
 0x173   : > { %v3328_v57 = vsel %vm3295_vm3, %v3326_v11, %v12419_v50  ;;  %v4296_v11 = vsel %vm3944_vm4, %v12421_v44, %v12420_v12  ;;  %v12422_v56 = vrot.slane %v7076_v17, 1  ;;  %v2010_v50 = vrot.slane %v6155_v41, 1  ;;  %v9046_v12 = vld [vmem:[#allocation7 + $0x278] sm:$0xff] }
 0x174   : > { %v3560_v53 = vadd.f32 %v3328_v57, %v2911_v60  ;;  %v3972_v27 = vsel %vm3944_vm4, %v3970_v21, %v11983_v15  ;;  %v4531_v60 = vmax.f32 %v3882_v49, %v4296_v11  ;;  %v3977_v3 = vsel %vm3944_vm4, %v3975_v38, %v11986_v31 }
 0x175   : > { %v2007_v55 = vsel %vm1889_vm2, %v12423_v23, %v12422_v56  ;;  %v4207_v57 = vadd.f32 %v3972_v27, %v3558_v58  ;;  %v4301_v46 = vsel %vm3944_vm4, %v4299_v5, %v11984_v37  ;;  %v11985_v21 = vrot.slane %v9046_v12, 1  ;;  %v6157_v56 = vld [vmem:[#allocation7 + $0x258] sm:$0xff]  ;;  %v12425_v5 = vld [vmem:[#allocation110_spill] sm:$0xff] }
 0x176   : > { %v9049_v49 = vadd.f32 %v3977_v3, %v3560_v53  ;;  %v9051_v44 = vmax.f32 %v3884_v42, %v4301_v46  ;;  %v4661_v11 = vmax.f32 %v8400_v43, %v4531_v60  ;;  %v2188_v23 = vadd.f32 %v6157_v56, %v2007_v55  ;;  %v9072_v46 = vld [vmem:[#allocation7 + $0x260] sm:$0xff] }
 0x177   : > { %v4597_v15 = vadd.f32 %v4207_v57, %v8387_v35  ;;  %v2012_v58 = vsel %vm1889_vm2, %v2010_v50, %v11985_v21  ;;  %v12424_v38 = vrot.slane %v7850_v8, 1  ;;  %v12426_v27 = vrot.slane %v12425_v5, 1 }
 0x178   : > { %v12427_v53 = vrot.slane %v8141_v63, 1  ;;  %v12428_v42 = vrot.slane %v8188_v25, 1  ;;  %v4693_v60 = vmax.f32 %v4661_v11, %v9051_v44  ;;  %v2190_v55 = vadd.f32 %v6155_v41, %v2012_v58 }
 0x179   : > { %v2439_v37 = vsel %vm1889_vm2, %v12426_v27, %v12424_v38  ;;  %v4629_v50 = vadd.f32 %v4597_v15, %v9049_v49  ;;  %v2762_v57 = vrot.slane %v6157_v56, 2  ;;  %v2763_v38 = vrot.slane %v9072_v46, 2 }
 0x17a   : > { %v2444_v43 = vsel %vm1889_vm2, %v12428_v42, %v12427_v53  ;;  %v2620_v35 = vmax.f32 %v12425_v5, %v2439_v37  ;;  %v2767_v27 = vrot.slane %v6155_v41, 2  ;;  %v12429_v31 = vrot.slane %v7850_v8, 2 }
 0x17b   : > { %v2622_v3 = vmax.f32 %v8188_v25, %v2444_v43  ;;  %v12430_v53 = vrot.slane %v12425_v5, 2  ;;  %v12431_v37 = vrot.slane %v8141_v63, 2  ;;  %v12432_v58 = vrot.slane %v8188_v25, 2 }
 0x17c   : > { %v3411_v42 = vrot.slane %v6157_v56, 3  ;;  %v4725_v43 = vmul.f32 0.06666667, %v4629_v50  ;;  %v2764_v39 = vsel %vm283_vm1, %v2762_v57, %v2763_v38  ;;  %v12433_v16 = vrot.slane %v9046_v12, 2 }
 0x17d   : > { %v3088_v11 = vsel %vm283_vm1, %v12430_v53, %v12429_v31  ;;  %v3093_v15 = vsel %vm283_vm1, %v12432_v58, %v12431_v37  ;;  %v2945_v45 = vadd.f32 %v2764_v39, %v2188_v23  ;;  %v3412_v31 = vrot.slane %v9072_v46, 3 }
 0x17e   : > { %v3269_v0 = vmax.f32 %v2620_v35, %v3088_v11  ;;  %v3271_v21 = vmax.f32 %v2622_v3, %v3093_v15  ;;  %v2769_v24 = vsel %vm283_vm1, %v2767_v27, %v12433_v16  ;;  %v3416_v53 = vrot.slane %v6155_v41, 3 }
 0x17f   : > { %v4757_v28 = vadd.f32 %v4725_v43, %v4693_v60  ;;  %v2947_v62 = vadd.f32 %v2769_v24, %v2190_v55  ;;  %v3417_v37 = vrot.slane %v9046_v12, 3  ;;  %v12434_v50 = vrot.slane %v7850_v8, 3 }
 0x180   : > { %v12435_v58 = vrot.slane %v12425_v5, 3  ;;  %v3413_v35 = vsel %vm3295_vm3, %v3411_v42, %v3412_v31  ;;  %v12436_v16 = vrot.slane %v8141_v63, 3  ;;  %v12437_v39 = vrot.slane %v8188_v25, 3 }
 0x181   : > { %v4060_v24 = vrot.slane %v6157_v56, 4  ;;  %5973 = vmatprep.mubr.msk.f32.mxu0 %vm4794_vm5, %v4757_v28  ;;  %v3418_v55 = vsel %vm3295_vm3, %v3416_v53, %v3417_v37  ;;  %v3594_v3 = vadd.f32 %v3413_v35, %v2945_v45  ;;  %v4061_v11 = vrot.slane %v9072_v46, 4 }
 0x182   : > { %v3737_v57 = vsel %vm3295_vm3, %v12435_v58, %v12434_v50  ;;  %v3742_v23 = vsel %vm3295_vm3, %v12437_v39, %v12436_v16  ;;  %v3596_v15 = vadd.f32 %v3418_v55, %v2947_v62  ;;  %v4065_v42 = vrot.slane %v6155_v41, 4 }
 0x183   : > { %v3918_v60 = vmax.f32 %v3269_v0, %v3737_v57  ;;  %v3920_v27 = vmax.f32 %v3271_v21, %v3742_v23  ;;  %v4066_v43 = vrot.slane %v9046_v12, 4  ;;  %v12438_v50 = vrot.slane %v7850_v8, 4 }
 0x184   : > { %v12439_v58 = vrot.slane %v12425_v5, 4  ;;  %v4062_v28 = vsel %vm3944_vm4, %v4060_v24, %v4061_v11  ;;  %v4389_v56 = vrot.slane %v8188_v25, 4  ;;  %v4390_v45 = vrot.slane %v8141_v63, 4 }
 0x185   : > { %v4067_v62 = vsel %vm3944_vm4, %v4065_v42, %v4066_v43  ;;  %v4243_v41 = vadd.f32 %v4062_v28, %v3594_v3  ;;  %v12440_v53 = vrot.slane %v7131_v9, 1  ;;  %v12441_v5 = vrot.slane %v7068_v19, 1 }
 0x186   : > { %v4386_v0 = vsel %vm3944_vm4, %v12439_v58, %v12438_v50  ;;  %v12442_v35 = vrot.slane %v8287_v36, 1  ;;  %v12443_v16 = vrot.slane %v8106_v32, 1  ;;  %v9136_v39 = vadd.f32 %v4067_v62, %v3596_v15 }
 0x187   : > { %v4567_v21 = vmax.f32 %v3918_v60, %v4386_v0  ;;  %v1919_v57 = vsel %vm1889_vm2, %v12441_v5, %v12440_v53  ;;  %v4391_v23 = vsel %vm3944_vm4, %v4389_v56, %v4390_v45  ;;  %v4613_v19 = vadd.f32 %v4243_v41, %v8458_v30 }
 0x188   : > { %v1924_v25 = vsel %vm1889_vm2, %v12443_v16, %v12442_v35  ;;  %v2153_v24 = vadd.f32 %v8898_v20, %v1919_v57  ;;  %v9143_v55 = vmax.f32 %v3920_v27, %v4391_v23  ;;  %v2587_v42 = vmax.f32 %v8131_v14, %v8326_v1 }
 0x189   : > { %v4677_v60 = vmax.f32 %v8460_v48, %v4567_v21  ;;  %v2155_v3 = vadd.f32 %v9023_v54, %v1924_v25  ;;  %v12444_v15 = vrot.slane %v7131_v9, 2  ;;  %v12445_v50 = vrot.slane %v8898_v20, 2 }
 0x18a   : > { %v12446_v0 = vrot.slane %v8287_v36, 2  ;;  %v12447_v48 = vrot.slane %v8106_v32, 2  ;;  %v12448_v28 = vrot.slane %v7801_v6, 2  ;;  %v12449_v30 = vrot.slane %v7844_v33, 2 }
 0x18b   : > { %v2676_v58 = vsel %vm283_vm1, %v12445_v50, %v12444_v15  ;;  %v12450_v1 = vrot.slane %v8300_v29, 2  ;;  %v12451_v21 = vrot.slane %v8131_v14, 2  ;;  %v4645_v41 = vadd.f32 %v4613_v19, %v9136_v39 }
 0x18c   : > { %v2681_v27 = vsel %vm283_vm1, %v12447_v48, %v12446_v0  ;;  %v3000_v56 = vsel %vm283_vm1, %v12449_v30, %v12448_v28  ;;  %v4709_v53 = vmax.f32 %v4677_v60, %v9143_v55  ;;  %v2910_v5 = vadd.f32 %v2676_v58, %v2153_v24 }
 0x18d   : > { %v3005_v62 = vsel %vm283_vm1, %v12451_v21, %v12450_v1  ;;  %v2912_v57 = vadd.f32 %v2681_v27, %v2155_v3  ;;  %v12452_v35 = vmax.f32 %v7844_v33, %v7876_v59  ;;  %v12453_v23 = vrot.slane %v7131_v9, 3  ;;  %v6159_v21 = vld [vmem:[#allocation7 + $0xa0] sm:$0xf] }
 0x18e   : > { %v3236_v25 = vmax.f32 %v2587_v42, %v3005_v62  ;;  %v12454_v15 = vrot.slane %v8898_v20, 3  ;;  %v12455_v0 = vrot.slane %v8287_v36, 3  ;;  %v12456_v48 = vrot.slane %v8106_v32, 3 }
 0x18f   : > { %v3234_v16 = vmax.f32 %v12452_v35, %v3000_v56  ;;  %v4741_v60 = vmul.f32 0.06666667, %v4645_v41  ;;  %v12457_v58 = vrot.slane %v7801_v6, 3  ;;  %v12458_v59 = vrot.slane %v7844_v33, 3 }
 0x190   : > { %v3325_v50 = vsel %vm3295_vm3, %v12454_v15, %v12453_v23  ;;  %v3330_v19 = vsel %vm3295_vm3, %v12456_v48, %v12455_v0  ;;  %v12459_v27 = vrot.slane %v8300_v29, 3  ;;  %v12460_v28 = vrot.slane %v8131_v14, 3 }
 0x191   : > { %v3559_v24 = vadd.f32 %v3325_v50, %v2910_v5  ;;  %v3561_v3 = vadd.f32 %v3330_v19, %v2912_v57  ;;  %v3649_v42 = vsel %vm3295_vm3, %v12458_v59, %v12457_v58  ;;  %v12461_v32 = vrot.slane %v7131_v9, 4 }
 0x192   : > { %v3654_v30 = vsel %vm3295_vm3, %v12460_v28, %v12459_v27  ;;  %v3883_v36 = vmax.f32 %v3234_v16, %v3649_v42  ;;  %v12462_v56 = vrot.slane %v8898_v20, 4  ;;  %v3978_v62 = vrot.slane %v6159_v21, 4  ;;  %v12474_v27 = vld [vmem:[#allocation101_spill] sm:$0xff] }
 0x193   : > { %v4773_v41 = vadd.f32 %v4741_v60, %v4709_v53  ;;  %v3885_v5 = vmax.f32 %v3236_v25, %v3654_v30  ;;  %v12463_v35 = vrot.slane %v7801_v6, 4  ;;  %v12464_v23 = vrot.slane %v7844_v33, 4  ;;  %v12468_v53 = vld [vmem:[#allocation50_spill] sm:$0xff] }
 0x194   : > { %v3974_v1 = vsel %vm3944_vm4, %v12462_v56, %v12461_v32  ;;  %v12465_v50 = vrot.slane %v9023_v54, 4  ;;  %v12466_v9 = vrot.slane %v8300_v29, 4  ;;  %v12467_v20 = vrot.slane %v8131_v14, 4  ;;  %v12471_v29 = vld [vmem:[#allocation44_spill] sm:$0xff]  ;;  %v12478_v56 = vld [vmem:[#allocation121_spill] sm:$0xff] }
 0x195   : > { %v4208_v57 = vadd.f32 %v3974_v1, %v3559_v24  ;;  %v4298_v15 = vsel %vm3944_vm4, %v12464_v23, %v12463_v35  ;;  %v12469_v25 = vrot.slane %v12468_v53, 1  ;;  %v12470_v19 = vrot.slane %v7076_v17, 1  ;;  %5997 = vmatprep.mubr.msk.f32.mxu1 %vm4794_vm5, %v4773_v41  ;;  %v12481_v35 = vld [vmem:[#allocation99_spill] sm:$0xff] }
 0x196   : > { %v3979_v16 = vsel %vm3944_vm4, %v12465_v50, %v3978_v62  ;;  %v4303_v0 = vsel %vm3944_vm4, %v12467_v20, %v12466_v9  ;;  %v4532_v48 = vmax.f32 %v3883_v36, %v4298_v15  ;;  %v12472_v24 = vrot.slane %v12471_v29, 1 }
 0x197   : > { %v2009_v6 = vsel %vm1889_vm2, %v12470_v19, %v12469_v25  ;;  %v9218_v33 = vadd.f32 %v3979_v16, %v3561_v3  ;;  %v9220_v54 = vmax.f32 %v3885_v5, %v4303_v0  ;;  %v4598_v60 = vadd.f32 %v4208_v57, %v8693_v52  ;;  %v12484_v16 = vld [vmem:[#allocation126_spill] sm:$0xff] }
 0x198   : > { %v12473_v14 = vrot.slane %v9046_v12, 1  ;;  %v4662_v59 = vmax.f32 %v8676_v51, %v4532_v48  ;;  %v2189_v17 = vadd.f32 %v9072_v46, %v2009_v6  ;;  %v2623_v3 = vmax.f32 %v8141_v63, %v12474_v27 }
 0x199   : > { %v4630_v28 = vadd.f32 %v4598_v60, %v9218_v33  ;;  %v12475_v30 = vrot.slane %v12468_v53, 2  ;;  %v12476_v36 = vrot.slane %v12471_v29, 2  ;;  %v12477_v32 = vrot.slane %v9046_v12, 2 }
 0x19a   : > { %v2014_v58 = vsel %vm1889_vm2, %v12473_v14, %v12472_v24  ;;  %v12479_v1 = vrot.slane %v12478_v56, 2  ;;  %v12480_v21 = vrot.slane %v7850_v8, 2  ;;  %v4694_v41 = vmax.f32 %v4662_v59, %v9220_v54 }
 0x19b   : > { %v2191_v42 = vadd.f32 %v9046_v12, %v2014_v58  ;;  %v2766_v52 = vsel %vm283_vm1, %v2763_v38, %v12475_v30  ;;  %v2771_v51 = vsel %vm283_vm1, %v12477_v32, %v12476_v36  ;;  %v12482_v23 = vrot.slane %v12481_v35, 2  ;;  %v6160_v30 = vld [vmem:[#allocation7 + $0x280] sm:$0xf] }
 0x19c   : > { %v3090_v62 = vsel %vm283_vm1, %v12480_v21, %v12479_v1  ;;  %v2946_v5 = vadd.f32 %v2766_v52, %v2189_v17  ;;  %v12483_v38 = vrot.slane %v8141_v63, 2  ;;  %v4726_v50 = vmul.f32 0.06666667, %v4630_v28 }
 0x19d   : > { %v2948_v57 = vadd.f32 %v2771_v51, %v2191_v42  ;;  %v12485_v9 = vmax.f32 %v7850_v8, %v12484_v16  ;;  %v12486_v48 = vrot.slane %v12468_v53, 3  ;;  %v12487_v19 = vrot.slane %v12471_v29, 3 }
 0x19e   : > { %v3095_v15 = vsel %vm283_vm1, %v12483_v38, %v12482_v23  ;;  %v12488_v24 = vrot.slane %v12478_v56, 3  ;;  %v12489_v14 = vrot.slane %v7850_v8, 3  ;;  %v12490_v59 = vrot.slane %v12481_v35, 3 }
 0x19f   : > { %v3270_v20 = vmax.f32 %v12485_v9, %v3090_v62  ;;  %v3272_v0 = vmax.f32 %v2623_v3, %v3095_v15  ;;  %v3415_v25 = vsel %vm3295_vm3, %v3412_v31, %v12486_v48  ;;  %v3420_v6 = vsel %vm3295_vm3, %v3417_v37, %v12487_v19  ;;  %v12501_v9 = vld [vmem:[#allocation40_spill] sm:$0xff] }
 0x1a0   : > { %v3595_v60 = vadd.f32 %v3415_v25, %v2946_v5  ;;  %v3739_v58 = vsel %vm3295_vm3, %v12489_v14, %v12488_v24  ;;  %v12491_v17 = vrot.slane %v8141_v63, 3  ;;  %v4758_v31 = vadd.f32 %v4726_v50, %v4694_v41  ;;  %v12498_v5 = vld [vmem:[#allocation78_spill] sm:$0xff] }
 0x1a1   : > { %v3597_v27 = vadd.f32 %v3420_v6, %v2948_v57  ;;  %v3919_v29 = vmax.f32 %v3270_v20, %v3739_v58  ;;  %v12492_v28 = vrot.slane %v12468_v53, 4  ;;  %v4068_v52 = vrot.slane %v6160_v30, 4 }
 0x1a2   : > { %v3744_v42 = vsel %vm3295_vm3, %v12491_v17, %v12490_v59  ;;  %v12493_v36 = vrot.slane %v12478_v56, 4  ;;  %v12494_v32 = vrot.slane %v7850_v8, 4  ;;  %v12495_v1 = vrot.slane %v12481_v35, 4  ;;  %5974 = vmatmul.mubr.msk.f32.gmra.mrb[4].mxu0 %vm4794_vm5, %v4758_v31  ;;  %v6161_v35 = vld [vmem:[#allocation7 + $0xa8] sm:$0xff] }
 0x1a3   : > { %v3921_v3 = vmax.f32 %v3272_v0, %v3744_v42  ;;  %v4064_v37 = vsel %vm3944_vm4, %v4061_v11, %v12492_v28  ;;  %v12496_v11 = vld [vmem:[#allocation45_spill] sm:$0xff]  ;;  %v12499_v56 = vrot.slane %v12498_v5, 1  ;;  %v4069_v57 = vsel %vm3944_vm4, %v4066_v43, %v4068_v52 }
 0x1a4   : > { %v4388_v51 = vsel %vm3944_vm4, %v12494_v32, %v12493_v36  ;;  %v4393_v21 = vsel %vm3944_vm4, %v4390_v45, %v12495_v1  ;;  %v4244_v53 = vadd.f32 %v4064_v37, %v3595_v60  ;;  %v12497_v41 = vrot.slane %v12496_v11, 1 }
 0x1a5   : > { %v4568_v46 = vmax.f32 %v3919_v29, %v4388_v51  ;;  %v9294_v62 = vmax.f32 %v3921_v3, %v4393_v21  ;;  %v1930_v63 = vrot.slane %v8829_v10, 1  ;;  %v1931_v45 = vrot.slane %v8790_v7, 1 }
 0x1a6   : > { %v1927_v8 = vsel %vm1889_vm2, %v12499_v56, %v12497_v41  ;;  %v9306_v38 = vadd.f32 %v4069_v57, %v3597_v27  ;;  %v4614_v15 = vadd.f32 %v4244_v53, %v8770_v4  ;;  %v12500_v16 = vrot.slane %v8491_v47, 1 }
 0x1a7   : > { %v2156_v23 = vadd.f32 %v6161_v35, %v1927_v8  ;;  %v4678_v50 = vmax.f32 %v8772_v34, %v4568_v46  ;;  %v12502_v20 = vrot.slane %v12501_v9, 1  ;;  %v1932_v43 = vsel %vm1889_vm2, %v1930_v63, %v1931_v45 }
 0x1a8   : > { %v12503_v0 = vrot.slane %v8808_v61, 1  ;;  %v12504_v48 = vrot.slane %v8848_v18, 1  ;;  %v2682_v19 = vrot.slane %v6161_v35, 2  ;;  %v4646_v34 = vadd.f32 %v4614_v15, %v9306_v38 }
 0x1a9   : > { %v2359_v12 = vsel %vm1889_vm2, %v12502_v20, %v12500_v16  ;;  %v4710_v6 = vmax.f32 %v4678_v50, %v9294_v62  ;;  %v2158_v60 = vadd.f32 %v1932_v43, %v8829_v10  ;;  %v2683_v14 = vrot.slane %v12496_v11, 2 }
 0x1aa   : > { %v2364_v25 = vsel %vm1889_vm2, %v12504_v48, %v12503_v0  ;;  %v2588_v4 = vmax.f32 %v12501_v9, %v2359_v12  ;;  %v2687_v58 = vrot.slane %v8829_v10, 2  ;;  %v2688_v59 = vrot.slane %v8790_v7, 2 }
 0x1ab   : > { %v2590_v24 = vmax.f32 %v8848_v18, %v2364_v25  ;;  %v12505_v17 = vrot.slane %v8491_v47, 2  ;;  %v12506_v42 = vrot.slane %v12501_v9, 2  ;;  %v4742_v27 = vmul.f32 0.06666667, %v4646_v34 }
 0x1ac   : > { %v12507_v29 = vrot.slane %v8808_v61, 2  ;;  %v12508_v3 = vrot.slane %v8848_v18, 2  ;;  %v3331_v30 = vrot.slane %v6161_v35, 3  ;;  %v2684_v52 = vsel %vm283_vm1, %v2682_v19, %v2683_v14 }
 0x1ad   : > { %v3008_v31 = vsel %vm283_vm1, %v12506_v42, %v12505_v17  ;;  %v2689_v36 = vsel %vm283_vm1, %v2687_v58, %v2688_v59  ;;  %v3332_v51 = vrot.slane %v12496_v11, 3  ;;  %v4774_v1 = vadd.f32 %v4742_v27, %v4710_v6  ;;  %v12515_v17 = vld [vmem:[#allocation129_spill] sm:$0xff] }
 0x1ae   : > { %v3013_v28 = vsel %vm283_vm1, %v12508_v3, %v12507_v29  ;;  %v3237_v37 = vmax.f32 %v2588_v4, %v3008_v31  ;;  %v2913_v21 = vadd.f32 %v2684_v52, %v2156_v23  ;;  %v2915_v53 = vadd.f32 %v2689_v36, %v2158_v60  ;;  %v12517_v31 = vld [vmem:[#allocation16_spill] sm:$0xff]  ;;  %v6162_v36 = vld [vmem:[#allocation7 + $0x288] sm:$0xff] }
 0x1af   : > { %v3239_v32 = vmax.f32 %v2590_v24, %v3013_v28  ;;  %v3336_v46 = vrot.slane %v8829_v10, 3  ;;  %v3333_v41 = vsel %vm3295_vm3, %v3331_v30, %v3332_v51  ;;  %v3337_v5 = vrot.slane %v8790_v7, 3  ;;  %5998 = vmatmul.mubr.msk.f32.gmra.mrb[4].mxu1 %vm4794_vm5, %v4774_v1 }
 0x1b0   : > { %v12509_v56 = vrot.slane %v8491_v47, 3  ;;  %v12510_v8 = vrot.slane %v12501_v9, 3  ;;  %v12511_v63 = vrot.slane %v8808_v61, 3  ;;  %v12512_v15 = vrot.slane %v8848_v18, 3 }
 0x1b1   : > { %v3562_v50 = vadd.f32 %v3333_v41, %v2913_v21  ;;  %v3980_v12 = vrot.slane %v6161_v35, 4  ;;  %v3338_v43 = vsel %vm3295_vm3, %v3336_v46, %v3337_v5  ;;  %v3981_v0 = vrot.slane %v12496_v11, 4 }
 0x1b2   : > { %v3657_v57 = vsel %vm3295_vm3, %v12510_v8, %v12509_v56  ;;  %v3662_v23 = vsel %vm3295_vm3, %v12512_v15, %v12511_v63  ;;  %v3985_v48 = vrot.slane %v8829_v10, 4  ;;  %v3986_v25 = vrot.slane %v8790_v7, 4 }
 0x1b3   : > { %v3886_v16 = vmax.f32 %v3237_v37, %v3657_v57  ;;  %v3888_v20 = vmax.f32 %v3239_v32, %v3662_v23  ;;  %v3564_v4 = vadd.f32 %v3338_v43, %v2915_v53  ;;  %v12513_v19 = vrot.slane %v8491_v47, 4  ;;  %v12520_v53 = vld [vmem:[#allocation73_spill] sm:$0xff] }
 0x1b4   : > { %v12514_v34 = vrot.slane %v12501_v9, 4  ;;  %v4309_v60 = vrot.slane %v8848_v18, 4  ;;  %v4310_v35 = vrot.slane %v8808_v61, 4  ;;  %v3982_v24 = vsel %vm3944_vm4, %v3980_v12, %v3981_v0 }
 0x1b5   : > { %v3987_v10 = vsel %vm3944_vm4, %v3985_v48, %v3986_v25  ;;  %v12516_v42 = vrot.slane %v12515_v17, 1  ;;  %v12518_v27 = vrot.slane %v12517_v31, 1  ;;  %v4211_v29 = vadd.f32 %v3982_v24, %v3562_v50 }
 0x1b6   : > { %v4306_v6 = vsel %vm3944_vm4, %v12514_v34, %v12513_v19  ;;  %v4213_v3 = vadd.f32 %v3987_v10, %v3564_v4  ;;  %v4311_v18 = vsel %vm3944_vm4, %v4309_v60, %v4310_v35  ;;  %v2020_v28 = vrot.slane %v8843_v26, 1 }
 0x1b7   : > { %v4535_v58 = vmax.f32 %v3886_v16, %v4306_v6  ;;  %v2017_v9 = vsel %vm1889_vm2, %v12518_v27, %v12516_v42  ;;  %v4537_v37 = vmax.f32 %v3888_v20, %v4311_v18  ;;  %v2021_v52 = vrot.slane %v8810_v2, 1  ;;  %v9411_v20 = vld [vmem:[#allocation7 + $0x290] sm:$0xff] }
 0x1b8   : > { %v2192_v32 = vadd.f32 %v6162_v36, %v2017_v9  ;;  %v4599_v1 = vadd.f32 %v4211_v29, %v9049_v49  ;;  %v12519_v21 = vrot.slane %v8500_v22, 1  ;;  %v12521_v46 = vrot.slane %v12520_v53, 1 }
 0x1b9   : > { %v4663_v30 = vmax.f32 %v9051_v44, %v4535_v58  ;;  %v12522_v56 = vrot.slane %v8820_v40, 1  ;;  %v12523_v8 = vrot.slane %v8859_v13, 1  ;;  %v2772_v63 = vrot.slane %v6162_v36, 2 }
 0x1ba   : > { %v2449_v41 = vsel %vm1889_vm2, %v12521_v46, %v12519_v21  ;;  %v2022_v15 = vsel %vm1889_vm2, %v2020_v28, %v2021_v52  ;;  %v4631_v50 = vadd.f32 %v4599_v1, %v4213_v3  ;;  %v2773_v12 = vrot.slane %v9411_v20, 2 }
 0x1bb   : > { %v2454_v57 = vsel %vm1889_vm2, %v12523_v8, %v12522_v56  ;;  %v4695_v44 = vmax.f32 %v4663_v30, %v4537_v37  ;;  %v2624_v49 = vmax.f32 %v12520_v53, %v2449_v41  ;;  %v2194_v16 = vadd.f32 %v2022_v15, %v8843_v26 }
 0x1bc   : > { %v2626_v23 = vmax.f32 %v8859_v13, %v2454_v57  ;;  %v2777_v43 = vrot.slane %v8843_v26, 2  ;;  %v2778_v48 = vrot.slane %v8810_v2, 2  ;;  %v12524_v4 = vrot.slane %v8500_v22, 2 }
 0x1bd   : > { %v12525_v19 = vrot.slane %v12520_v53, 2  ;;  %v12526_v6 = vrot.slane %v8820_v40, 2  ;;  %v12527_v60 = vrot.slane %v8859_v13, 2  ;;  %v3421_v10 = vrot.slane %v6162_v36, 3 }
 0x1be   : > { %v4727_v58 = vmul.f32 0.06666667, %v4631_v50  ;;  %v2774_v42 = vsel %vm283_vm1, %v2772_v63, %v2773_v12  ;;  %v2779_v9 = vsel %vm283_vm1, %v2777_v43, %v2778_v48  ;;  %v3422_v3 = vrot.slane %v9411_v20, 3 }
 0x1bf   : > { %v3098_v34 = vsel %vm283_vm1, %v12525_v19, %v12524_v4  ;;  %v3103_v24 = vsel %vm283_vm1, %v12527_v60, %v12526_v6  ;;  %v2949_v29 = vadd.f32 %v2774_v42, %v2192_v32  ;;  %v3426_v18 = vrot.slane %v8843_v26, 3 }
 0x1c0   : > { %v3273_v31 = vmax.f32 %v2624_v49, %v3098_v34  ;;  %v3275_v27 = vmax.f32 %v2626_v23, %v3103_v24  ;;  %v4759_v28 = vadd.f32 %v4727_v58, %v4695_v44  ;;  %v2951_v37 = vadd.f32 %v2779_v9, %v2194_v16  ;;  %v12534_v58 = vld [vmem:[#allocation133_spill] sm:$0xff] }
 0x1c1   : > { %v3427_v30 = vrot.slane %v8810_v2, 3  ;;  %v12528_v1 = vrot.slane %v8500_v22, 3  ;;  %v12529_v21 = vrot.slane %v12520_v53, 3  ;;  %v3423_v41 = vsel %vm3295_vm3, %v3421_v10, %v3422_v3 }
 0x1c2   : > { %v12530_v32 = vrot.slane %v8820_v40, 3  ;;  %v12531_v56 = vrot.slane %v8859_v13, 3  ;;  %v4070_v63 = vrot.slane %v6162_v36, 4  ;;  %5976 = vmatprep.mubr.msk.f32.mxu0 %vm4794_vm5, %v4759_v28  ;;  %v3598_v15 = vadd.f32 %v3423_v41, %v2949_v29 }
 0x1c3   : > { %v3747_v46 = vsel %vm3295_vm3, %v12529_v21, %v12528_v1  ;;  %v3428_v44 = vsel %vm3295_vm3, %v3426_v18, %v3427_v30  ;;  %v4071_v23 = vrot.slane %v9411_v20, 4  ;;  %v4075_v16 = vrot.slane %v8843_v26, 4 }
 0x1c4   : > { %v3752_v8 = vsel %vm3295_vm3, %v12531_v56, %v12530_v32  ;;  %v3922_v57 = vmax.f32 %v3273_v31, %v3747_v46  ;;  %v3600_v50 = vadd.f32 %v3428_v44, %v2951_v37  ;;  %v4076_v43 = vrot.slane %v8810_v2, 4  ;;  %v6164_v37 = vld [vmem:[#allocation7 + $0xb0] sm:$0xff]  ;;  %v12539_v32 = vld [vmem:[#allocation144_spill] sm:$0xff] }
 0x1c5   : > { %v3924_v49 = vmax.f32 %v3275_v27, %v3752_v8  ;;  %v12532_v4 = vrot.slane %v8500_v22, 4  ;;  %v12533_v19 = vrot.slane %v12520_v53, 4  ;;  %v4072_v34 = vsel %vm3944_vm4, %v4070_v63, %v4071_v23  ;;  %v12537_v27 = vld [vmem:[#allocation41_spill] sm:$0xff]  ;;  %v12542_v63 = vld [vmem:[#allocation136_spill] sm:$0xff] }
 0x1c6   : > { %v4399_v6 = vrot.slane %v8859_v13, 4  ;;  %v4400_v60 = vrot.slane %v8820_v40, 4  ;;  %v4077_v26 = vsel %vm3944_vm4, %v4075_v16, %v4076_v43  ;;  %v4247_v10 = vadd.f32 %v4072_v34, %v3598_v15 }
 0x1c7   : > { %v4396_v36 = vsel %vm3944_vm4, %v12533_v19, %v12532_v4  ;;  %v12535_v42 = vrot.slane %v12534_v58, 1  ;;  %v12536_v53 = vrot.slane %v12496_v11, 1  ;;  %v12538_v9 = vrot.slane %v12537_v27, 1 }
 0x1c8   : > { %v4571_v24 = vmax.f32 %v3922_v57, %v4396_v36  ;;  %v4249_v29 = vadd.f32 %v4077_v26, %v3600_v50  ;;  %v4401_v18 = vsel %vm3944_vm4, %v4399_v6, %v4400_v60  ;;  %v4615_v46 = vadd.f32 %v4247_v10, %v9136_v39  ;;  %v12548_v6 = vld [vmem:[#allocation139_spill] sm:$0xff] }
 0x1c9   : > { %v1929_v31 = vsel %vm1889_vm2, %v12536_v53, %v12535_v42  ;;  %v1934_v13 = vsel %vm1889_vm2, %v1931_v45, %v12538_v9  ;;  %v4573_v21 = vmax.f32 %v3924_v49, %v4401_v18  ;;  %v2591_v56 = vmax.f32 %v8808_v61, %v12539_v32  ;;  %v12545_v49 = vld [vmem:[#allocation91_spill] sm:$0xff] }
 0x1ca   : > { %v4679_v28 = vmax.f32 %v9143_v55, %v4571_v24  ;;  %v2157_v1 = vadd.f32 %v6164_v37, %v1929_v31  ;;  %v2159_v41 = vadd.f32 %v1934_v13, %v8790_v7  ;;  %v12540_v8 = vrot.slane %v12534_v58, 2 }
 0x1cb   : > { %v12541_v57 = vrot.slane %v12537_v27, 2  ;;  %v12543_v44 = vrot.slane %v12542_v63, 2  ;;  %v12544_v39 = vrot.slane %v8491_v47, 2  ;;  %v12546_v50 = vrot.slane %v12545_v49, 2 }
 0x1cc   : > { %v2686_v45 = vsel %vm283_vm1, %v2683_v14, %v12540_v8  ;;  %v12547_v16 = vrot.slane %v8808_v61, 2  ;;  %v4647_v19 = vadd.f32 %v4615_v46, %v4249_v29  ;;  %v4711_v14 = vmax.f32 %v4679_v28, %v4573_v21 }
 0x1cd   : > { %v2691_v55 = vsel %vm283_vm1, %v2688_v59, %v12541_v57  ;;  %v3010_v15 = vsel %vm283_vm1, %v12544_v39, %v12543_v44  ;;  %v2914_v36 = vadd.f32 %v2686_v45, %v2157_v1  ;;  %v12549_v24 = vmax.f32 %v8491_v47, %v12548_v6 }
 0x1ce   : > { %v3015_v4 = vsel %vm283_vm1, %v12547_v16, %v12546_v50  ;;  %v2916_v34 = vadd.f32 %v2691_v55, %v2159_v41  ;;  %v12550_v10 = vrot.slane %v12534_v58, 3  ;;  %v12551_v53 = vrot.slane %v12537_v27, 3 }
 0x1cf   : > { %v3238_v59 = vmax.f32 %v12549_v24, %v3010_v15  ;;  %v3240_v26 = vmax.f32 %v2591_v56, %v3015_v4  ;;  %v4743_v9 = vmul.f32 0.06666667, %v4647_v19  ;;  %v12552_v18 = vrot.slane %v12542_v63, 3  ;;  %v12565_v19 = vld [vmem:[#allocation146_spill] sm:$0xff] }
 0x1d0   : > { %v3335_v42 = vsel %vm3295_vm3, %v3332_v51, %v12550_v10  ;;  %v3340_v31 = vsel %vm3295_vm3, %v3337_v5, %v12551_v53  ;;  %v12553_v28 = vrot.slane %v8491_v47, 3  ;;  %v12554_v1 = vrot.slane %v12545_v49, 3 }
 0x1d1   : > { %v3563_v13 = vadd.f32 %v3335_v42, %v2914_v36  ;;  %v3565_v29 = vadd.f32 %v3340_v31, %v2916_v34  ;;  %v12555_v21 = vrot.slane %v8808_v61, 3  ;;  %v12556_v41 = vrot.slane %v12534_v58, 4  ;;  %v12571_v31 = vld [vmem:[#allocation108_spill] sm:$0xff] }
 0x1d2   : > { %v3659_v37 = vsel %vm3295_vm3, %v12553_v28, %v12552_v18  ;;  %v3988_v32 = vrot.slane %v12537_v27, 4  ;;  %v4775_v56 = vadd.f32 %v4743_v9, %v4711_v14  ;;  %v12557_v57 = vrot.slane %v12542_v63, 4  ;;  %v12560_v27 = vld [vmem:[#allocation135_spill] sm:$0xff]  ;;  %v12574_v18 = vld [vmem:[#allocation141_spill] sm:$0xff] }
 0x1d3   : > { %v3664_v51 = vsel %vm3295_vm3, %v12555_v21, %v12554_v1  ;;  %v3887_v46 = vmax.f32 %v3238_v59, %v3659_v37  ;;  %v3984_v5 = vsel %vm3944_vm4, %v3981_v0, %v12556_v41  ;;  %v12558_v55 = vrot.slane %v8491_v47, 4 }
 0x1d4   : > { %v3889_v8 = vmax.f32 %v3240_v26, %v3664_v51  ;;  %v4212_v45 = vadd.f32 %v3984_v5, %v3563_v13  ;;  %v3989_v39 = vsel %vm3944_vm4, %v3986_v25, %v3988_v32  ;;  %v12559_v58 = vrot.slane %v12545_v49, 4  ;;  %6000 = vmatprep.mubr.msk.f32.mxu1 %vm4794_vm5, %v4775_v56  ;;  %v12563_v25 = vld [vmem:[#allocation114_spill] sm:$0xff] }
 0x1d5   : > { %v4308_v44 = vsel %vm3944_vm4, %v12558_v55, %v12557_v57  ;;  %v12561_v15 = vrot.slane %v12560_v27, 1  ;;  %v12562_v50 = vrot.slane %v12515_v17, 1  ;;  %v4214_v47 = vadd.f32 %v3989_v39, %v3565_v29 }
 0x1d6   : > { %v4313_v11 = vsel %vm3944_vm4, %v4310_v35, %v12559_v58  ;;  %v4536_v0 = vmax.f32 %v3887_v46, %v4308_v44  ;;  %v4600_v7 = vadd.f32 %v4212_v45, %v9218_v33  ;;  %v12564_v4 = vrot.slane %v12563_v25, 1 }
 0x1d7   : > { %v2019_v63 = vsel %vm1889_vm2, %v12562_v50, %v12561_v15  ;;  %v4538_v16 = vmax.f32 %v3889_v8, %v4313_v11  ;;  %v2627_v14 = vmax.f32 %v8820_v40, %v12565_v19  ;;  %v12566_v34 = vrot.slane %v12560_v27, 2  ;;  %v12589_v19 = vld [vmem:[#allocation95_spill] sm:$0xff] }
 0x1d8   : > { %v2024_v61 = vsel %vm1889_vm2, %v2021_v52, %v12564_v4  ;;  %v4664_v35 = vmax.f32 %v9220_v54, %v4536_v0  ;;  %v2193_v49 = vadd.f32 %v9411_v20, %v2019_v63  ;;  %v4632_v36 = vadd.f32 %v4600_v7, %v4214_v47  ;;  %v12568_v52 = vld [vmem:[#allocation21_spill] sm:$0xff] }
 0x1d9   : > { %v2195_v17 = vadd.f32 %v2024_v61, %v8810_v2  ;;  %v2776_v33 = vsel %vm283_vm1, %v2773_v12, %v12566_v34  ;;  %v12567_v6 = vrot.slane %v12563_v25, 2  ;;  %v12569_v24 = vrot.slane %v12568_v52, 2  ;;  %v12586_v7 = vld [vmem:[#allocation13_spill] sm:$0xff]  ;;  %v12588_v2 = vld [vmem:[#allocation34_spill] sm:$0xff] }
 0x1da   : > { %v12570_v59 = vrot.slane %v8500_v22, 2  ;;  %v4696_v10 = vmax.f32 %v4664_v35, %v4538_v16  ;;  %v2950_v42 = vadd.f32 %v2776_v33, %v2193_v49  ;;  %v12572_v9 = vrot.slane %v12571_v31, 2  ;;  %v9631_v4 = vld [vmem:[#allocation7 + $0x120] sm:$0xff]  ;;  %v12590_v33 = vld [vmem:[#allocation55_spill] sm:$0xff] }
 0x1db   : > { %v2781_v54 = vsel %vm283_vm1, %v2778_v48, %v12567_v6  ;;  %v12573_v13 = vrot.slane %v8820_v40, 2  ;;  %v4728_v29 = vmul.f32 0.06666667, %v4632_v36  ;;  %v12575_v28 = vmax.f32 %v8500_v22, %v12574_v18  ;;  %v6167_v36 = vld [vmem:[#allocation7 + $0x108] sm:$0xff] }
 0x1dc   : > { %v3100_v26 = vsel %vm283_vm1, %v12570_v59, %v12569_v24  ;;  %v2952_v53 = vadd.f32 %v2781_v54, %v2195_v17  ;;  %v12576_v1 = vrot.slane %v12560_v27, 3  ;;  %v12577_v51 = vrot.slane %v12563_v25, 3  ;;  %v12592_v54 = vld [vmem:[#allocation53_spill] sm:$0xff] }
 0x1dd   : > { %v3105_v12 = vsel %vm283_vm1, %v12573_v13, %v12572_v9  ;;  %v3274_v48 = vmax.f32 %v12575_v28, %v3100_v26  ;;  %v12578_v5 = vrot.slane %v12568_v52, 3  ;;  %v12579_v32 = vrot.slane %v8500_v22, 3  ;;  %v9660_v28 = vld [vmem:[#allocation7 + $0x110] sm:$0xff] }
 0x1de   : > { %v3276_v37 = vmax.f32 %v2627_v14, %v3105_v12  ;;  %v3425_v21 = vsel %vm3295_vm3, %v3422_v3, %v12576_v1  ;;  %v3430_v46 = vsel %vm3295_vm3, %v3427_v30, %v12577_v51  ;;  %v12580_v8 = vrot.slane %v12571_v31, 3 }
 0x1df   : > { %v3599_v41 = vadd.f32 %v3425_v21, %v2950_v42  ;;  %v3749_v56 = vsel %vm3295_vm3, %v12579_v32, %v12578_v5  ;;  %v12581_v45 = vrot.slane %v8820_v40, 3  ;;  %v4760_v3 = vadd.f32 %v4728_v29, %v4696_v10  ;;  %v9634_v40 = vld [vmem:[#allocation7 + $0x128] sm:$0xff]  ;;  %v12596_v42 = vld [vmem:[#allocation80_spill] sm:$0xff] }
 0x1e0   : > { %v3601_v55 = vadd.f32 %v3430_v46, %v2952_v53  ;;  %v3923_v44 = vmax.f32 %v3274_v48, %v3749_v56  ;;  %v12582_v58 = vrot.slane %v12560_v27, 4  ;;  %v4078_v11 = vrot.slane %v12563_v25, 4  ;;  %v12587_v25 = vld [vmem:[#allocation11_spill] sm:$0xff] }
 0x1e1   : > { %v3754_v57 = vsel %vm3295_vm3, %v12581_v45, %v12580_v8  ;;  %v12583_v0 = vrot.slane %v12568_v52, 4  ;;  %v12584_v15 = vrot.slane %v8500_v22, 4  ;;  %v12585_v63 = vrot.slane %v12571_v31, 4  ;;  %5977 = vmatmul.mubr.msk.f32.gmra.mrb[6].mxu0 %vm4794_vm5, %v4760_v3 }
 0x1e2   : > { %v3925_v39 = vmax.f32 %v3276_v37, %v3754_v57  ;;  %v4074_v30 = vsel %vm3944_vm4, %v4071_v23, %v12582_v58  ;;  %v4079_v23 = vsel %vm3944_vm4, %v4076_v43, %v4078_v11  ;;  %v1942_v22 = vsel %vm1889_vm2, %v12587_v25, %v12586_v7 }
 0x1e3   : > { %v4398_v50 = vsel %vm3944_vm4, %v12584_v15, %v12583_v0  ;;  %v4403_v47 = vsel %vm3944_vm4, %v4400_v60, %v12585_v63  ;;  %v4248_v27 = vadd.f32 %v4074_v30, %v3599_v41  ;;  %v1945_v61 = vrot.slane %v9631_v4, 1 }
 0x1e4   : > { %v4572_v20 = vmax.f32 %v3923_v44, %v4398_v50  ;;  %v4574_v16 = vmax.f32 %v3925_v39, %v4403_v47  ;;  %v1946_v60 = vrot.slane %v9634_v40, 1  ;;  %v4250_v35 = vadd.f32 %v4079_v23, %v3601_v55 }
 0x1e5   : > { %v4616_v49 = vadd.f32 %v4248_v27, %v9306_v38  ;;  %v2160_v43 = vadd.f32 %v12589_v19, %v12588_v2  ;;  %v2162_v34 = vadd.f32 %v6167_v36, %v1942_v22  ;;  %v12591_v6 = vrot.slane %v12590_v33, 1 }
 0x1e6   : > { %v4680_v17 = vmax.f32 %v9294_v62, %v4572_v20  ;;  %v1947_v14 = vsel %vm1889_vm2, %v1945_v61, %v1946_v60  ;;  %v12593_v52 = vrot.slane %v12592_v54, 1  ;;  %v12594_v62 = vld [vmem:[#allocation77_spill] sm:$0xff]  ;;  %v12597_v53 = vrot.slane %v12596_v42, 1 }
 0x1e7   : > { %v4648_v59 = vadd.f32 %v4616_v49, %v4250_v35  ;;  %v2164_v38 = vadd.f32 %v9631_v4, %v1947_v14  ;;  %v12595_v10 = vrot.slane %v12594_v62, 1  ;;  %v9658_v12 = vrot.slane %v12589_v19, 2 }
 0x1e8   : > { %v2374_v24 = vsel %vm1889_vm2, %v12593_v52, %v12591_v6  ;;  %v4712_v26 = vmax.f32 %v4680_v17, %v4574_v16  ;;  %v2697_v18 = vrot.slane %v6167_v36, 2  ;;  %v2698_v48 = vrot.slane %v9660_v28, 2 }
 0x1e9   : > { %v2379_v31 = vsel %vm1889_vm2, %v12597_v53, %v12595_v10  ;;  %v2594_v9 = vmax.f32 %v12592_v54, %v2374_v24  ;;  %v4744_v29 = vmul.f32 0.06666667, %v4648_v59  ;;  %v2702_v37 = vrot.slane %v9631_v4, 2 }
 0x1ea   : > { %v2596_v13 = vmax.f32 %v12596_v42, %v2379_v31  ;;  %v2703_v1 = vrot.slane %v9634_v40, 2  ;;  %v12598_v21 = vrot.slane %v12590_v33, 2  ;;  %v12599_v51 = vrot.slane %v12592_v54, 2 }
 0x1eb   : > { %v4776_v41 = vadd.f32 %v4744_v29, %v4712_v26  ;;  %v2694_v5 = vsel %vm283_vm1, %v9658_v12, %v9658_v12  ;;  %v2699_v32 = vsel %vm283_vm1, %v2697_v18, %v2698_v48  ;;  %v12600_v56 = vrot.slane %v12594_v62, 2 }
 0x1ec   : > { %v3023_v46 = vsel %vm283_vm1, %v12599_v51, %v12598_v21  ;;  %v12601_v8 = vrot.slane %v12596_v42, 2  ;;  %v2704_v57 = vsel %vm283_vm1, %v2702_v37, %v2703_v1  ;;  %v2917_v3 = vadd.f32 %v2694_v5, %v2160_v43  ;;  %v12608_v37 = vld [vmem:[#allocation15_spill] sm:$0xff]  ;;  %v12609_v21 = vld [vmem:[#allocation12_spill] sm:$0xff] }
 0x1ed   : > { %v2919_v55 = vadd.f32 %v2699_v32, %v2162_v34  ;;  %6001 = vmatmul.mubr.msk.f32.gmra.mrb[6].mxu1 %vm4794_vm5, %v4776_v41  ;;  %v2921_v44 = vadd.f32 %v2704_v57, %v2164_v38  ;;  %v3243_v39 = vmax.f32 %v2594_v9, %v3023_v46  ;;  %v9686_v30 = vrot.slane %v12589_v19, 3  ;;  %v9742_v46 = vld [vmem:[#allocation7 + $0x300] sm:$0xff]  ;;  %v12610_v32 = vld [vmem:[#allocation119_spill] sm:$0xff] }
 0x1ee   : > { %v3028_v45 = vsel %vm283_vm1, %v12601_v8, %v12600_v56  ;;  %v3346_v11 = vrot.slane %v6167_v36, 3  ;;  %v3347_v0 = vrot.slane %v9660_v28, 3  ;;  %v3351_v15 = vrot.slane %v9631_v4, 3  ;;  %v9746_v8 = vld [vmem:[#allocation7 + $0x308] sm:$0xff]  ;;  %v9749_v57 = vld [vmem:[#allocation7] sm:$0xff] }
 0x1ef   : > { %v3245_v58 = vmax.f32 %v2596_v13, %v3028_v45  ;;  %v3352_v50 = vrot.slane %v9634_v40, 3  ;;  %v12602_v63 = vrot.slane %v12590_v33, 3  ;;  %v12603_v47 = vrot.slane %v12592_v54, 3 }
 0x1f0   : > { %v12604_v20 = vrot.slane %v12594_v62, 3  ;;  %v12605_v16 = vrot.slane %v12596_v42, 3  ;;  %v3343_v25 = vsel %vm3295_vm3, %v9686_v30, %v9686_v30  ;;  %v3348_v22 = vsel %vm3295_vm3, %v3346_v11, %v3347_v0  ;;  %v12613_v11 = vld [vmem:[#allocation54_spill] sm:$0xff] }
 0x1f1   : > { %v3672_v27 = vsel %vm3295_vm3, %v12603_v47, %v12602_v63  ;;  %v3353_v35 = vsel %vm3295_vm3, %v3351_v15, %v3352_v50  ;;  %v3566_v49 = vadd.f32 %v3343_v25, %v2917_v3  ;;  %v3568_v17 = vadd.f32 %v3348_v22, %v2919_v55  ;;  %v6172_v55 = vld [vmem:[#allocation7 + $0x2e8] sm:$0xff]  ;;  %v12615_v47 = vld [vmem:[#allocation79_spill] sm:$0xff] }
 0x1f2   : > { %v3677_v23 = vsel %vm3295_vm3, %v12605_v16, %v12604_v20  ;;  %v3892_v61 = vmax.f32 %v3243_v39, %v3672_v27  ;;  %v3570_v14 = vadd.f32 %v3353_v35, %v2921_v44  ;;  %v9711_v34 = vrot.slane %v12589_v19, 4  ;;  %v12611_v39 = vld [vmem:[#allocation57_spill] sm:$0xff] }
 0x1f3   : > { %v3894_v43 = vmax.f32 %v3245_v58, %v3677_v23  ;;  %v3995_v6 = vrot.slane %v6167_v36, 4  ;;  %v3996_v52 = vrot.slane %v9660_v28, 4  ;;  %v4000_v24 = vrot.slane %v9631_v4, 4  ;;  %v12617_v20 = vld [vmem:[#allocation81_spill] sm:$0xff] }
 0x1f4   : > { %v4001_v59 = vrot.slane %v9634_v40, 4  ;;  %v3992_v26 = vsel %vm3944_vm4, %v9711_v34, %v9711_v34  ;;  %v12606_v38 = vrot.slane %v12590_v33, 4  ;;  %v12607_v10 = vrot.slane %v12592_v54, 4 }
 0x1f5   : > { %v4324_v19 = vrot.slane %v12596_v42, 4  ;;  %v4325_v36 = vrot.slane %v12594_v62, 4  ;;  %v3997_v4 = vsel %vm3944_vm4, %v3995_v6, %v3996_v52  ;;  %v4215_v9 = vadd.f32 %v3992_v26, %v3566_v49  ;;  %v9774_v6 = vld [vmem:[#allocation7 + $0x2f0] sm:$0xff] }
 0x1f6   : > { %v4321_v53 = vsel %vm3944_vm4, %v12607_v10, %v12606_v38  ;;  %v4002_v31 = vsel %vm3944_vm4, %v4000_v24, %v4001_v59  ;;  %v4217_v13 = vadd.f32 %v3997_v4, %v3568_v17  ;;  %v2032_v51 = vsel %vm1889_vm2, %v12609_v21, %v12608_v37 }
 0x1f7   : > { %v9732_v29 = vadd.f32 %v4002_v31, %v3570_v14  ;;  %v4326_v54 = vsel %vm3944_vm4, %v4324_v19, %v4325_v36  ;;  %v4541_v18 = vmax.f32 %v3892_v61, %v4321_v53  ;;  %v2035_v41 = vrot.slane %v9742_v46, 1 }
 0x1f8   : > { %v9737_v42 = vmax.f32 %v3894_v43, %v4326_v54  ;;  %v4601_v5 = vadd.f32 %v4217_v13, %v4215_v9  ;;  %v2036_v45 = vrot.slane %v9746_v8, 1  ;;  %v2196_v3 = vadd.f32 %v9749_v57, %v12588_v2 }
 0x1f9   : > { %v4665_v56 = vmax.f32 %v12610_v32, %v4541_v18  ;;  %v2198_v44 = vadd.f32 %v6172_v55, %v2032_v51  ;;  %v12612_v58 = vrot.slane %v12611_v39, 1  ;;  %v12614_v15 = vrot.slane %v12613_v11, 1 }
 0x1fa   : > { %v12616_v27 = vrot.slane %v12615_v47, 1  ;;  %v12618_v16 = vrot.slane %v12617_v20, 1  ;;  %v4633_v25 = vadd.f32 %v4601_v5, %v9732_v29  ;;  %v2037_v2 = vsel %vm1889_vm2, %v2035_v41, %v2036_v45 }
 0x1fb   : > { %v2464_v63 = vsel %vm1889_vm2, %v12614_v15, %v12612_v58  ;;  %v4697_v22 = vmax.f32 %v4665_v56, %v9737_v42  ;;  %v2200_v61 = vadd.f32 %v9742_v46, %v2037_v2  ;;  %v9772_v17 = vrot.slane %v9749_v57, 2 }
 0x1fc   : > { %v2469_v23 = vsel %vm1889_vm2, %v12618_v16, %v12616_v27  ;;  %v2630_v35 = vmax.f32 %v12613_v11, %v2464_v63  ;;  %v4729_v43 = vmul.f32 0.06666667, %v4633_v25  ;;  %v2787_v14 = vrot.slane %v6172_v55, 2 }
 0x1fd   : > { %v2632_v49 = vmax.f32 %v12617_v20, %v2469_v23  ;;  %v2788_v24 = vrot.slane %v9774_v6, 2  ;;  %v2792_v26 = vrot.slane %v9742_v46, 2  ;;  %v2793_v38 = vrot.slane %v9746_v8, 2 }
 0x1fe   : > { %v12619_v10 = vrot.slane %v12611_v39, 2  ;;  %v12620_v53 = vrot.slane %v12613_v11, 2  ;;  %v4761_v4 = vadd.f32 %v4729_v43, %v4697_v22  ;;  %v2784_v31 = vsel %vm283_vm1, %v9772_v17, %v9772_v17 }
 0x1ff   : > { %v2789_v9 = vsel %vm283_vm1, %v2787_v14, %v2788_v24  ;;  %v12621_v13 = vrot.slane %v12615_v47, 2  ;;  %v12622_v54 = vrot.slane %v12617_v20, 2  ;;  %v2794_v21 = vsel %vm283_vm1, %v2792_v26, %v2793_v38 }
 0x200   : > { %v3113_v19 = vsel %vm283_vm1, %v12620_v53, %v12619_v10  ;;  %v2953_v51 = vadd.f32 %v2784_v31, %v2196_v3  ;;  %v2955_v41 = vadd.f32 %v2789_v9, %v2198_v44  ;;  %5979 = vmatprep.mubr.msk.f32.mxu0 %vm4794_vm5, %v4761_v4  ;;  %v2957_v5 = vadd.f32 %v2794_v21, %v2200_v61 }
 0x201   : > { %v3118_v18 = vsel %vm283_vm1, %v12622_v54, %v12621_v13  ;;  %v3279_v56 = vmax.f32 %v2630_v35, %v3113_v19  ;;  %v9800_v15 = vrot.slane %v9749_v57, 3  ;;  %v3436_v63 = vrot.slane %v6172_v55, 3 }
 0x202   : > { %v3281_v58 = vmax.f32 %v2632_v49, %v3118_v18  ;;  %v3437_v27 = vrot.slane %v9774_v6, 3  ;;  %v3441_v16 = vrot.slane %v9742_v46, 3  ;;  %v3442_v23 = vrot.slane %v9746_v8, 3 }
 0x203   : > { %v12623_v25 = vrot.slane %v12611_v39, 3  ;;  %v12624_v3 = vrot.slane %v12613_v11, 3  ;;  %v12625_v22 = vrot.slane %v12615_v47, 3  ;;  %v12626_v2 = vrot.slane %v12617_v20, 3 }
 0x204   : > { %v3433_v35 = vsel %vm3295_vm3, %v9800_v15, %v9800_v15  ;;  %v3438_v49 = vsel %vm3295_vm3, %v3436_v63, %v3437_v27  ;;  %v3443_v14 = vsel %vm3295_vm3, %v3441_v16, %v3442_v23  ;;  %v9825_v4 = vrot.slane %v9749_v57, 4 }
 0x205   : > { %v3762_v44 = vsel %vm3295_vm3, %v12624_v3, %v12623_v25  ;;  %v3767_v61 = vsel %vm3295_vm3, %v12626_v2, %v12625_v22  ;;  %v3602_v26 = vadd.f32 %v3433_v35, %v2953_v51  ;;  %v3604_v10 = vadd.f32 %v3438_v49, %v2955_v41  ;;  %v12629_v3 = vld [vmem:[#allocation14_spill] sm:$0xff] }
 0x206   : > { %v3928_v43 = vmax.f32 %v3279_v56, %v3762_v44  ;;  %v3930_v53 = vmax.f32 %v3281_v58, %v3767_v61  ;;  %v3606_v19 = vadd.f32 %v3443_v14, %v2957_v5  ;;  %v4085_v31 = vrot.slane %v6172_v55, 4  ;;  %v12631_v22 = vld [vmem:[#allocation10_spill] sm:$0xff]  ;;  %v12634_v14 = vld [vmem:[#allocation25_spill] sm:$0xff] }
 0x207   : > { %v4086_v9 = vrot.slane %v9774_v6, 4  ;;  %v4090_v13 = vrot.slane %v9742_v46, 4  ;;  %v4091_v54 = vrot.slane %v9746_v8, 4  ;;  %v4082_v18 = vsel %vm3944_vm4, %v9825_v4, %v9825_v4  ;;  %v12632_v61 = vld [vmem:[#allocation18_spill] sm:$0xff] }
 0x208   : > { %v12627_v21 = vrot.slane %v12611_v39, 4  ;;  %v12628_v51 = vrot.slane %v12613_v11, 4  ;;  %v4414_v5 = vrot.slane %v12617_v20, 4  ;;  %v4415_v55 = vrot.slane %v12615_v47, 4 }
 0x209   : > { %v4087_v46 = vsel %vm3944_vm4, %v4085_v31, %v4086_v9  ;;  %v4092_v56 = vsel %vm3944_vm4, %v4090_v13, %v4091_v54  ;;  %v4251_v58 = vadd.f32 %v4082_v18, %v3602_v26  ;;  %v12630_v44 = vrot.slane %v12629_v3, 1  ;;  %v12636_v18 = vld [vmem:[#allocation87_spill] sm:$0xff] }
 0x20a   : > { %v4411_v41 = vsel %vm3944_vm4, %v12628_v51, %v12627_v21  ;;  %v4253_v63 = vadd.f32 %v4087_v46, %v3604_v10  ;;  %v9846_v16 = vadd.f32 %v4092_v56, %v3606_v19  ;;  %v4416_v11 = vsel %vm3944_vm4, %v4414_v5, %v4415_v55 }
 0x20b   : > { %v4577_v25 = vmax.f32 %v3928_v43, %v4411_v41  ;;  %v9851_v20 = vmax.f32 %v3930_v53, %v4416_v11  ;;  %v1939_v2 = vsel %vm1889_vm2, %v12631_v22, %v12630_v44  ;;  %v12633_v35 = vrot.slane %v12632_v61, 1 }
 0x20c   : > { %v12635_v26 = vrot.slane %v12634_v14, 1  ;;  %v4617_v19 = vadd.f32 %v4253_v63, %v4251_v58  ;;  %v2161_v53 = vadd.f32 %v9749_v57, %v1939_v2  ;;  %v2597_v21 = vmax.f32 %v12594_v62, %v12636_v18  ;;  %v12648_v18 = vld [vmem:[#allocation67_spill] sm:$0xff] }
 0x20d   : > { %v1944_v49 = vsel %vm1889_vm2, %v12586_v7, %v12633_v35  ;;  %v4681_v43 = vmax.f32 %v12610_v32, %v4577_v25  ;;  %v12637_v7 = vrot.slane %v12629_v3, 2  ;;  %v12638_v41 = vrot.slane %v12632_v61, 2  ;;  %v12644_v35 = vld [vmem:[#allocation58_spill] sm:$0xff] }
 0x20e   : > { %v1949_v10 = vsel %vm1889_vm2, %v1946_v60, %v12635_v26  ;;  %v2163_v31 = vadd.f32 %v9660_v28, %v1944_v49  ;;  %v4649_v32 = vadd.f32 %v4617_v19, %v9846_v16  ;;  %v12639_v46 = vrot.slane %v12634_v14, 2  ;;  %v12645_v49 = vld [vmem:[#allocation72_spill] sm:$0xff] }
 0x20f   : > { %v2165_v13 = vadd.f32 %v9634_v40, %v1949_v10  ;;  %v2696_v51 = vsel %vm283_vm1, %v9658_v12, %v12637_v7  ;;  %v2701_v60 = vsel %vm283_vm1, %v2698_v48, %v12638_v41  ;;  %v4713_v5 = vmax.f32 %v4681_v43, %v9851_v20  ;;  %v12640_v12 = vld [vmem:[#allocation84_spill] sm:$0xff]  ;;  %v12643_v48 = vld [vmem:[#allocation75_spill] sm:$0xff]  ;;  %v12647_v43 = vld [vmem:[#allocation70_spill] sm:$0xff] }
 0x210   : > { %v2706_v56 = vsel %vm283_vm1, %v2703_v1, %v12639_v46  ;;  %v2918_v58 = vadd.f32 %v2696_v51, %v2161_v53  ;;  %v2920_v63 = vadd.f32 %v2701_v60, %v2163_v31  ;;  %v12641_v25 = vrot.slane %v12640_v12, 2 }
 0x211   : > { %v2922_v11 = vadd.f32 %v2706_v56, %v2165_v13  ;;  %v12642_v44 = vrot.slane %v12594_v62, 2  ;;  %v12646_v26 = vmax.f32 %v12644_v35, %v12645_v49  ;;  %v4745_v19 = vmul.f32 0.06666667, %v4649_v32  ;;  %v12653_v56 = vld [vmem:[#allocation64_spill] sm:$0xff]  ;;  %v12656_v49 = vld [vmem:[#allocation61_spill] sm:$0xff] }
 0x212   : > { %v12649_v7 = vmax.f32 %v12590_v33, %v12648_v18  ;;  %v12650_v31 = vrot.slane %v12629_v3, 3  ;;  %v12651_v51 = vrot.slane %v12632_v61, 3  ;;  %v12652_v60 = vrot.slane %v12634_v14, 3 }
 0x213   : > { %v3030_v2 = vsel %vm283_vm1, %v12642_v44, %v12641_v25  ;;  %v3242_v10 = vmax.f32 %v12646_v26, %v12643_v48  ;;  %v12655_v25 = vld [vmem:[#allocation59_spill] sm:$0xff]  ;;  %v12657_v26 = vrot.slane %v12656_v49, 3  ;;  %v12659_v14 = vrot.slane %v12640_v12, 3 }
 0x214   : > { %v3244_v1 = vmax.f32 %v12649_v7, %v12647_v43  ;;  %v3246_v53 = vmax.f32 %v2597_v21, %v3030_v2  ;;  %v3345_v13 = vsel %vm3295_vm3, %v9686_v30, %v12650_v31  ;;  %v3350_v41 = vsel %vm3295_vm3, %v3347_v0, %v12651_v51 }
 0x215   : > { %v3355_v32 = vsel %vm3295_vm3, %v3352_v50, %v12652_v60  ;;  %v3567_v46 = vadd.f32 %v3345_v13, %v2918_v58  ;;  %v12654_v21 = vrot.slane %v12653_v56, 3  ;;  %v4777_v2 = vadd.f32 %v4745_v19, %v4713_v5  ;;  %v6174_v13 = vld [vmem:[#allocation7 + $0x130] sm:$0xf] }
 0x216   : > { %v3569_v30 = vadd.f32 %v3350_v41, %v2920_v63  ;;  %v3571_v48 = vadd.f32 %v3355_v32, %v2922_v11  ;;  %v12658_v43 = vrot.slane %v12590_v33, 3  ;;  %v12660_v18 = vrot.slane %v12594_v62, 3 }
 0x217   : > { %v3669_v44 = vsel %vm3295_vm3, %v12655_v25, %v12654_v21  ;;  %v12661_v31 = vrot.slane %v12629_v3, 4  ;;  %6003 = vmatprep.mubr.msk.f32.mxu1 %vm4794_vm5, %v4777_v2  ;;  %v12662_v11 = vrot.slane %v12632_v61, 4  ;;  %v4003_v51 = vrot.slane %v6174_v13, 4 }
 0x218   : > { %v3674_v0 = vsel %vm3295_vm3, %v12658_v43, %v12657_v26  ;;  %v3679_v50 = vsel %vm3295_vm3, %v12660_v18, %v12659_v14  ;;  %v3891_v58 = vmax.f32 %v3242_v10, %v3669_v44  ;;  %v12663_v10 = vrot.slane %v12653_v56, 4  ;;  %v12672_v26 = vld [vmem:[#allocation27_spill] sm:$0xff]  ;;  %v12674_v18 = vld [vmem:[#allocation88_spill] sm:$0xff] }
 0x219   : > { %v3893_v7 = vmax.f32 %v3244_v1, %v3674_v0  ;;  %v3994_v5 = vsel %vm3944_vm4, %v9711_v34, %v12661_v31  ;;  %v3895_v63 = vmax.f32 %v3246_v53, %v3679_v50  ;;  %v3999_v19 = vsel %vm3944_vm4, %v3996_v52, %v12662_v11  ;;  %v12664_v1 = vld [vmem:[#allocation60_spill] sm:$0xff] }
 0x21a   : > { %v4216_v41 = vadd.f32 %v3994_v5, %v3567_v46  ;;  %v4218_v60 = vadd.f32 %v3999_v19, %v3569_v30  ;;  %v4318_v3 = vsel %vm3944_vm4, %v12664_v1, %v12663_v10  ;;  %v12665_v34 = vrot.slane %v12656_v49, 4  ;;  %v12670_v49 = vld [vmem:[#allocation20_spill] sm:$0xff] }
 0x21b   : > { %v12666_v32 = vrot.slane %v12590_v33, 4  ;;  %v12667_v61 = vrot.slane %v12640_v12, 4  ;;  %v4004_v52 = vsel %vm3944_vm4, %v4001_v59, %v4003_v51  ;;  %v4540_v46 = vmax.f32 %v3891_v58, %v4318_v3  ;;  %v12668_v33 = vld [vmem:[#allocation17_spill] sm:$0xff]  ;;  %v12678_v51 = vld [vmem:[#allocation86_spill] sm:$0xff]  ;;  %v12681_v10 = vld [vmem:[#allocation76_spill] sm:$0xff] }
 0x21c   : > { %v9958_v44 = vadd.f32 %v4004_v52, %v3571_v48  ;;  %v4602_v2 = vadd.f32 %v4218_v60, %v4216_v41  ;;  %v12669_v30 = vrot.slane %v12668_v33, 1  ;;  %v12671_v62 = vrot.slane %v12670_v49, 1  ;;  %v12682_v3 = vld [vmem:[#allocation74_spill] sm:$0xff] }
 0x21d   : > { %v4323_v53 = vsel %vm3944_vm4, %v12666_v32, %v12665_v34  ;;  %v4328_v28 = vsel %vm3944_vm4, %v4325_v36, %v12667_v61  ;;  %v12673_v59 = vrot.slane %v12672_v26, 1  ;;  %v2633_v50 = vmax.f32 %v12615_v47, %v12674_v18  ;;  %v12684_v32 = vld [vmem:[#allocation71_spill] sm:$0xff] }
 0x21e   : > { %v4542_v56 = vmax.f32 %v3893_v7, %v4323_v53  ;;  %v9956_v21 = vmax.f32 %v3895_v63, %v4328_v28  ;;  %v2029_v12 = vsel %vm1889_vm2, %v12631_v22, %v12669_v30  ;;  %v2034_v36 = vsel %vm1889_vm2, %v12608_v37, %v12671_v62  ;;  %v12685_v53 = vld [vmem:[#allocation69_spill] sm:$0xff] }
 0x21f   : > { %v2039_v43 = vsel %vm1889_vm2, %v2036_v45, %v12673_v59  ;;  %v2197_v48 = vadd.f32 %v9749_v57, %v2029_v12  ;;  %v2199_v0 = vadd.f32 %v9774_v6, %v2034_v36  ;;  %v4634_v14 = vadd.f32 %v4602_v2, %v9958_v44  ;;  %v12690_v59 = vld [vmem:[#allocation66_spill] sm:$0xff] }
 0x220   : > { %v4666_v40 = vmax.f32 %v4540_v46, %v4542_v56  ;;  %v2201_v22 = vadd.f32 %v9746_v8, %v2039_v43  ;;  %v12675_v37 = vrot.slane %v12668_v33, 2  ;;  %v12676_v45 = vrot.slane %v12670_v49, 2 }
 0x221   : > { %v12677_v31 = vrot.slane %v12672_v26, 2  ;;  %v4730_v11 = vmul.f32 0.06666667, %v4634_v14  ;;  %v12680_v41 = vrot.slane %v12615_v47, 2  ;;  %v12686_v61 = vmax.f32 %v12611_v39, %v12685_v53  ;;  %v12705_v53 = vld [vmem:[#allocation93_spill] sm:$0xff] }
 0x222   : > { %v2786_v58 = vsel %vm283_vm1, %v9772_v17, %v12675_v37  ;;  %v4698_v7 = vmax.f32 %v4666_v40, %v9956_v21  ;;  %v2791_v57 = vsel %vm283_vm1, %v2788_v24, %v12676_v45  ;;  %v12679_v17 = vrot.slane %v12678_v51, 2 }
 0x223   : > { %v2796_v5 = vsel %vm283_vm1, %v2793_v38, %v12677_v31  ;;  %v2954_v63 = vadd.f32 %v2786_v58, %v2197_v48  ;;  %v2956_v19 = vadd.f32 %v2791_v57, %v2199_v0  ;;  %v12683_v24 = vmax.f32 %v12644_v35, %v12682_v3  ;;  %v12692_v48 = vld [vmem:[#allocation63_spill] sm:$0xff] }
 0x224   : > { %v2958_v13 = vadd.f32 %v2796_v5, %v2201_v22  ;;  %v3120_v60 = vsel %vm283_vm1, %v12680_v41, %v12679_v17  ;;  %v3280_v38 = vmax.f32 %v12686_v61, %v12684_v32  ;;  %v12687_v52 = vrot.slane %v12668_v33, 3  ;;  %v6175_v57 = vld [vmem:[#allocation7 + $0x310] sm:$0xf]  ;;  %v10069_v32 = vld [vmem:[#allocation7 + $0x158] sm:$0xff] }
 0x225   : > { %v3278_v34 = vmax.f32 %v12683_v24, %v12681_v10  ;;  %v3282_v28 = vmax.f32 %v2633_v50, %v3120_v60  ;;  %v4762_v56 = vadd.f32 %v4730_v11, %v4698_v7  ;;  %v12688_v2 = vrot.slane %v12670_v49, 3  ;;  %v12704_v3 = vld [vmem:[#allocation23_spill] sm:$0xff] }
 0x226   : > { %v3435_v46 = vsel %vm3295_vm3, %v9800_v15, %v12687_v52  ;;  %v12689_v35 = vrot.slane %v12672_v26, 3  ;;  %v12691_v43 = vrot.slane %v12690_v59, 3  ;;  %v12693_v0 = vrot.slane %v12692_v48, 3 }
 0x227   : > { %v3440_v30 = vsel %vm3295_vm3, %v3437_v27, %v12688_v2  ;;  %v3603_v62 = vadd.f32 %v3435_v46, %v2954_v63  ;;  %v12694_v14 = vrot.slane %v12611_v39, 3  ;;  %5980 = vmatmul.mubr.msk.f32.gmra.mrb[8].mxu0 %vm4794_vm5, %v4762_v56  ;;  %v12695_v26 = vrot.slane %v12678_v51, 3  ;;  %v12709_v56 = vld [vmem:[#allocation100_spill] sm:$0xff] }
 0x228   : > { %v3445_v12 = vsel %vm3295_vm3, %v3442_v23, %v12689_v35  ;;  %v3605_v36 = vadd.f32 %v3440_v30, %v2956_v19  ;;  %v3759_v15 = vsel %vm3295_vm3, %v12655_v25, %v12691_v43  ;;  %v12696_v23 = vrot.slane %v12615_v47, 3  ;;  %v12711_v30 = vld [vmem:[#allocation105_spill] sm:$0xff] }
 0x229   : > { %v3607_v40 = vadd.f32 %v3445_v12, %v2958_v13  ;;  %v3764_v27 = vsel %vm3295_vm3, %v12694_v14, %v12693_v0  ;;  %v3927_v18 = vmax.f32 %v3278_v34, %v3759_v15  ;;  %v12697_v37 = vrot.slane %v12668_v33, 4  ;;  %v10089_v15 = vld [vmem:[#allocation7 + $0x140] sm:$0xff] }
 0x22a   : > { %v3769_v22 = vsel %vm3295_vm3, %v12696_v23, %v12695_v26  ;;  %v3929_v50 = vmax.f32 %v3280_v38, %v3764_v27  ;;  %v12698_v7 = vrot.slane %v12670_v49, 4  ;;  %v4093_v31 = vrot.slane %v6175_v57, 4  ;;  %v12707_v38 = vld [vmem:[#allocation82_spill] sm:$0xff] }
 0x22b   : > { %v4084_v25 = vsel %vm3944_vm4, %v9825_v4, %v12697_v37  ;;  %v3931_v58 = vmax.f32 %v3282_v28, %v3769_v22  ;;  %v12699_v11 = vrot.slane %v12690_v59, 4  ;;  %v12700_v33 = vrot.slane %v12692_v48, 4 }
 0x22c   : > { %v4089_v45 = vsel %vm3944_vm4, %v4086_v9, %v12698_v7  ;;  %v4252_v5 = vadd.f32 %v4084_v25, %v3603_v62  ;;  %v12701_v4 = vrot.slane %v12611_v39, 4  ;;  %v12702_v49 = vrot.slane %v12678_v51, 4  ;;  %v12703_v39 = vld [vmem:[#allocation28_spill] sm:$0xff]  ;;  %v6176_v51 = vld [vmem:[#allocation7 + $0x150] sm:$0xff] }
 0x22d   : > { %v4254_v63 = vadd.f32 %v4089_v45, %v3605_v36  ;;  %v4408_v19 = vsel %vm3944_vm4, %v12664_v1, %v12699_v11  ;;  %v4094_v9 = vsel %vm3944_vm4, %v4091_v54, %v4093_v31  ;;  %v1952_v24 = vsel %vm1889_vm2, %v12704_v3, %v12703_v39 }
 0x22e   : > { %v4413_v13 = vsel %vm3944_vm4, %v12701_v4, %v12700_v33  ;;  %v4418_v6 = vsel %vm3944_vm4, %v4415_v55, %v12702_v49  ;;  %v4576_v17 = vmax.f32 %v3927_v18, %v4408_v19  ;;  %v10064_v1 = vadd.f32 %v4094_v9, %v3607_v40  ;;  %v6178_v55 = vld [vmem:[#allocation7 + $0x138] sm:$0xff] }
 0x22f   : > { %v4578_v41 = vmax.f32 %v3929_v50, %v4413_v13  ;;  %v10062_v60 = vmax.f32 %v3931_v58, %v4418_v6  ;;  %v4618_v10 = vadd.f32 %v4254_v63, %v4252_v5  ;;  %v1955_v34 = vrot.slane %v6176_v51, 1 }
 0x230   : > { %v1956_v8 = vrot.slane %v10069_v32, 1  ;;  %v2166_v54 = vadd.f32 %v6178_v55, %v1952_v24  ;;  %v12706_v61 = vrot.slane %v12705_v53, 1  ;;  %v12708_v28 = vrot.slane %v12707_v38, 1 }
 0x231   : > { %v4682_v47 = vmax.f32 %v4576_v17, %v4578_v41  ;;  %v4650_v46 = vadd.f32 %v4618_v10, %v10064_v1  ;;  %v12710_v2 = vrot.slane %v12709_v56, 1  ;;  %v12712_v35 = vrot.slane %v12711_v30, 1 }
 0x232   : > { %v2384_v52 = vsel %vm1889_vm2, %v12708_v28, %v12706_v61  ;;  %v2707_v36 = vrot.slane %v6178_v55, 2  ;;  %v1957_v59 = vsel %vm1889_vm2, %v1955_v34, %v1956_v8  ;;  %v2708_v48 = vrot.slane %v10089_v15, 2 }
 0x233   : > { %v2389_v12 = vsel %vm1889_vm2, %v12712_v35, %v12710_v2  ;;  %v2598_v62 = vmax.f32 %v12707_v38, %v2384_v52  ;;  %v4714_v40 = vmax.f32 %v4682_v47, %v10062_v60  ;;  %v4746_v0 = vmul.f32 0.06666667, %v4650_v46 }
 0x234   : > { %v2600_v43 = vmax.f32 %v12711_v30, %v2389_v12  ;;  %v2168_v14 = vadd.f32 %v6176_v51, %v1957_v59  ;;  %v2712_v27 = vrot.slane %v6176_v51, 2  ;;  %v2713_v26 = vrot.slane %v10069_v32, 2 }
 0x235   : > { %v2709_v23 = vsel %vm283_vm1, %v2707_v36, %v2708_v48  ;;  %v12713_v22 = vrot.slane %v12705_v53, 2  ;;  %v12714_v18 = vrot.slane %v12707_v38, 2  ;;  %v12715_v37 = vrot.slane %v12709_v56, 2 }
 0x236   : > { %v12716_v25 = vrot.slane %v12711_v30, 2  ;;  %v3356_v7 = vrot.slane %v6178_v55, 3  ;;  %v4778_v45 = vadd.f32 %v4746_v0, %v4714_v40  ;;  %v2714_v57 = vsel %vm283_vm1, %v2712_v27, %v2713_v26  ;;  %v12723_v0 = vld [vmem:[#allocation31_spill] sm:$0xff] }
 0x237   : > { %v3033_v50 = vsel %vm283_vm1, %v12714_v18, %v12713_v22  ;;  %v2923_v31 = vadd.f32 %v2709_v23, %v2166_v54  ;;  %v2925_v63 = vadd.f32 %v2714_v57, %v2168_v14  ;;  %v3357_v19 = vrot.slane %v10089_v15, 3  ;;  %v12724_v14 = vld [vmem:[#allocation24_spill] sm:$0xff]  ;;  %v6180_v23 = vld [vmem:[#allocation7 + $0x330] sm:$0xff]  ;;  %v12725_v57 = vld [vmem:[#allocation94_spill] sm:$0xff] }
 0x238   : > { %v3038_v58 = vsel %vm283_vm1, %v12716_v25, %v12715_v37  ;;  %v3247_v5 = vmax.f32 %v2598_v62, %v3033_v50  ;;  %v3361_v33 = vrot.slane %v6176_v51, 3  ;;  %6004 = vmatmul.mubr.msk.f32.gmra.mrb[8].mxu1 %vm4794_vm5, %v4778_v45  ;;  %v3362_v4 = vrot.slane %v10069_v32, 3  ;;  %v10148_v22 = vld [vmem:[#allocation7 + $0x338] sm:$0xff] }
 0x239   : > { %v3249_v11 = vmax.f32 %v2600_v43, %v3038_v58  ;;  %v12717_v13 = vrot.slane %v12705_v53, 3  ;;  %v12718_v49 = vrot.slane %v12707_v38, 3  ;;  %v12719_v9 = vrot.slane %v12709_v56, 3  ;;  %v6182_v25 = vld [vmem:[#allocation7 + $0x318] sm:$0xff] }
 0x23a   : > { %v12720_v17 = vrot.slane %v12711_v30, 3  ;;  %v4005_v10 = vrot.slane %v6178_v55, 4  ;;  %v3358_v3 = vsel %vm3295_vm3, %v3356_v7, %v3357_v19  ;;  %v4006_v47 = vrot.slane %v10089_v15, 4 }
 0x23b   : > { %v3682_v6 = vsel %vm3295_vm3, %v12718_v49, %v12717_v13  ;;  %v3363_v54 = vsel %vm3295_vm3, %v3361_v33, %v3362_v4  ;;  %v3572_v61 = vadd.f32 %v3358_v3, %v2923_v31  ;;  %v4010_v28 = vrot.slane %v6176_v51, 4  ;;  %v12729_v33 = vld [vmem:[#allocation102_spill] sm:$0xff]  ;;  %v12731_v49 = vld [vmem:[#allocation107_spill] sm:$0xff]  ;;  %v10176_v3 = vpop.f32.mrb[0].mxu1 }
 0x23c   : > { %v3687_v41 = vsel %vm3295_vm3, %v12720_v17, %v12719_v9  ;;  %v3896_v24 = vmax.f32 %v3247_v5, %v3682_v6  ;;  %v4011_v52 = vrot.slane %v10069_v32, 4  ;;  %v3574_v46 = vadd.f32 %v3363_v54, %v2925_v63  ;;  %v12727_v5 = vld [vmem:[#allocation83_spill] sm:$0xff]  ;;  %v10179_v54 = vld [vmem:[#allocation7 + $0x320] sm:$0xff] }
 0x23d   : > { %v3898_v34 = vmax.f32 %v3249_v11, %v3687_v41  ;;  %v4007_v55 = vsel %vm3944_vm4, %v4005_v10, %v4006_v47  ;;  %v12721_v2 = vrot.slane %v12705_v53, 4  ;;  %v12722_v35 = vrot.slane %v12707_v38, 4  ;;  %v10174_v10 = vpop.f32.mrb[0].mxu0 }
 0x23e   : > { %v4334_v62 = vrot.slane %v12711_v30, 4  ;;  %v4012_v36 = vsel %vm3944_vm4, %v4010_v28, %v4011_v52  ;;  %v4221_v51 = vadd.f32 %v4007_v55, %v3572_v61  ;;  %v4335_v40 = vrot.slane %v12709_v56, 4  ;;  %v10184_v55 = vpop.f32.mrb[1].mxu1 }
 0x23f   : > { %v4331_v12 = vsel %vm3944_vm4, %v12722_v35, %v12721_v2  ;;  %v10143_v43 = vadd.f32 %v4012_v36, %v3574_v46  ;;  %v2042_v27 = vsel %vm1889_vm2, %v12724_v14, %v12723_v0  ;;  %v2045_v38 = vrot.slane %v6180_v23, 1  ;;  %v10182_v46 = vpop.f32.mrb[1].mxu0 }
 0x240   : > { %v4545_v59 = vmax.f32 %v3896_v24, %v4331_v12  ;;  %v2046_v30 = vrot.slane %v10148_v22, 1  ;;  %v4336_v18 = vsel %vm3944_vm4, %v4334_v62, %v4335_v40  ;;  %v4603_v50 = vadd.f32 %v4221_v51, %v9732_v29 }
 0x241   : > { %v2202_v58 = vadd.f32 %v6182_v25, %v2042_v27  ;;  %v10156_v7 = vmax.f32 %v3898_v34, %v4336_v18  ;;  %v12726_v31 = vrot.slane %v12725_v57, 1  ;;  %v12728_v63 = vrot.slane %v12727_v5, 1 }
 0x242   : > { %v4667_v37 = vmax.f32 %v9737_v42, %v4545_v59  ;;  %v2047_v45 = vsel %vm1889_vm2, %v2045_v38, %v2046_v30  ;;  %v12730_v13 = vrot.slane %v12729_v33, 1  ;;  %v12732_v29 = vrot.slane %v12731_v49, 1 }
 0x243   : > { %v2474_v11 = vsel %vm1889_vm2, %v12728_v63, %v12726_v31  ;;  %v4635_v6 = vadd.f32 %v4603_v50, %v10143_v43  ;;  %v2204_v9 = vadd.f32 %v6180_v23, %v2047_v45  ;;  %v2797_v34 = vrot.slane %v6182_v25, 2 }
 0x244   : > { %v2479_v42 = vsel %vm1889_vm2, %v12732_v29, %v12730_v13  ;;  %v2634_v17 = vmax.f32 %v12727_v5, %v2474_v11  ;;  %v4699_v24 = vmax.f32 %v4667_v37, %v10156_v7  ;;  %v2798_v61 = vrot.slane %v10179_v54, 2 }
 0x245   : > { %v2636_v41 = vmax.f32 %v12731_v49, %v2479_v42  ;;  %v2802_v28 = vrot.slane %v6180_v23, 2  ;;  %v4731_v2 = vmul.f32 0.06666667, %v4635_v6  ;;  %v2803_v35 = vrot.slane %v10148_v22, 2 }
 0x246   : > { %v12733_v12 = vrot.slane %v12725_v57, 2  ;;  %v12734_v62 = vrot.slane %v12727_v5, 2  ;;  %v12735_v51 = vrot.slane %v12729_v33, 2  ;;  %v12736_v59 = vrot.slane %v12731_v49, 2 }
 0x247   : > { %v2799_v27 = vsel %vm283_vm1, %v2797_v34, %v2798_v61  ;;  %v3446_v50 = vrot.slane %v6182_v25, 3  ;;  %v4763_v37 = vadd.f32 %v4731_v2, %v4699_v24  ;;  %v2804_v45 = vsel %vm283_vm1, %v2802_v28, %v2803_v35 }
 0x248   : > { %v3123_v36 = vsel %vm283_vm1, %v12734_v62, %v12733_v12  ;;  %v3128_v14 = vsel %vm283_vm1, %v12736_v59, %v12735_v51  ;;  %v2959_v31 = vadd.f32 %v2799_v27, %v2202_v58  ;;  %v3447_v63 = vrot.slane %v10179_v54, 3 }
 0x249   : > { %v3283_v38 = vmax.f32 %v2634_v17, %v3123_v36  ;;  %v3285_v18 = vmax.f32 %v2636_v41, %v3128_v14  ;;  %v2961_v11 = vadd.f32 %v2804_v45, %v2204_v9  ;;  %v3451_v13 = vrot.slane %v6180_v23, 3  ;;  %5982 = vmatprep.mubr.msk.f32.mxu0 %vm4794_vm5, %v4763_v37 }
 0x24a   : > { %v3452_v29 = vrot.slane %v10148_v22, 3  ;;  %v12737_v42 = vrot.slane %v12725_v57, 3  ;;  %v12738_v6 = vrot.slane %v12727_v5, 3  ;;  %v3448_v41 = vsel %vm3295_vm3, %v3446_v50, %v3447_v63 }
 0x24b   : > { %v12739_v58 = vrot.slane %v12729_v33, 3  ;;  %v12740_v24 = vrot.slane %v12731_v49, 3  ;;  %v4095_v28 = vrot.slane %v6182_v25, 4  ;;  %v3608_v12 = vadd.f32 %v3448_v41, %v2959_v31 }
 0x24c   : > { %v3772_v17 = vsel %vm3295_vm3, %v12738_v6, %v12737_v42  ;;  %v3453_v2 = vsel %vm3295_vm3, %v3451_v13, %v3452_v29  ;;  %v4096_v36 = vrot.slane %v10179_v54, 4  ;;  %v4100_v59 = vrot.slane %v6180_v23, 4  ;;  %v12745_v42 = vld [vmem:[#allocation35_spill] sm:$0xff] }
 0x24d   : > { %v3777_v9 = vsel %vm3295_vm3, %v12740_v24, %v12739_v58  ;;  %v3932_v34 = vmax.f32 %v3283_v38, %v3772_v17  ;;  %v3610_v51 = vadd.f32 %v3453_v2, %v2961_v11  ;;  %v4101_v14 = vrot.slane %v10148_v22, 4  ;;  %v12743_v11 = vld [vmem:[#allocation30_spill] sm:$0xff] }
 0x24e   : > { %v3934_v62 = vmax.f32 %v3285_v18, %v3777_v9  ;;  %v12741_v27 = vrot.slane %v12725_v57, 4  ;;  %v12742_v50 = vrot.slane %v12727_v5, 4  ;;  %v4097_v25 = vsel %vm3944_vm4, %v4095_v28, %v4096_v36  ;;  %v12747_v28 = vld [vmem:[#allocation116_spill] sm:$0xff] }
 0x24f   : > { %v4424_v38 = vrot.slane %v12731_v49, 4  ;;  %v4425_v18 = vrot.slane %v12729_v33, 4  ;;  %v4102_v23 = vsel %vm3944_vm4, %v4100_v59, %v4101_v14  ;;  %v4257_v31 = vadd.f32 %v4097_v25, %v3608_v12 }
 0x250   : > { %v4421_v37 = vsel %vm3944_vm4, %v12742_v50, %v12741_v27  ;;  %v12744_v13 = vrot.slane %v12743_v11, 1  ;;  %v12746_v6 = vrot.slane %v12745_v42, 1  ;;  %v10246_v49 = vadd.f32 %v4102_v23, %v3610_v51  ;;  %v12753_v50 = vld [vmem:[#allocation113_spill] sm:$0xff] }
 0x251   : > { %v4581_v45 = vmax.f32 %v3932_v34, %v4421_v37  ;;  %v4426_v41 = vsel %vm3944_vm4, %v4424_v38, %v4425_v18  ;;  %v2601_v2 = vmax.f32 %v12709_v56, %v12747_v28  ;;  %v12749_v51 = vrot.slane %v12745_v42, 2 }
 0x252   : > { %v1954_v5 = vsel %vm1889_vm2, %v12703_v39, %v12744_v13  ;;  %v1959_v17 = vsel %vm1889_vm2, %v1956_v8, %v12746_v6  ;;  %v10253_v9 = vmax.f32 %v3934_v62, %v4426_v41  ;;  %v4619_v39 = vadd.f32 %v4257_v31, %v9846_v16  ;;  %v12750_v62 = vld [vmem:[#allocation90_spill] sm:$0xff] }
 0x253   : > { %v4683_v58 = vmax.f32 %v9851_v20, %v4581_v45  ;;  %v2167_v24 = vadd.f32 %v10089_v15, %v1954_v5  ;;  %v2169_v34 = vadd.f32 %v10069_v32, %v1959_v17  ;;  %v12748_v8 = vrot.slane %v12743_v11, 2 }
 0x254   : > { %v2716_v20 = vsel %vm283_vm1, %v2713_v26, %v12749_v51  ;;  %v12751_v59 = vrot.slane %v12750_v62, 2  ;;  %v12752_v16 = vrot.slane %v12705_v53, 2  ;;  %v12754_v37 = vrot.slane %v12753_v50, 2  ;;  %v12756_v26 = vld [vmem:[#allocation96_spill] sm:$0xff] }
 0x255   : > { %v2711_v12 = vsel %vm283_vm1, %v2708_v48, %v12748_v8  ;;  %v12755_v25 = vrot.slane %v12709_v56, 2  ;;  %v4651_v48 = vadd.f32 %v4619_v39, %v10246_v49  ;;  %v4715_v45 = vmax.f32 %v4683_v58, %v10253_v9 }
 0x256   : > { %v3035_v27 = vsel %vm283_vm1, %v12752_v16, %v12751_v59  ;;  %v2924_v23 = vadd.f32 %v2711_v12, %v2167_v24  ;;  %v2926_v31 = vadd.f32 %v2716_v20, %v2169_v34  ;;  %v12757_v13 = vmax.f32 %v12705_v53, %v12756_v26  ;;  %v6184_v16 = vld [vmem:[#allocation7 + $0x160] sm:$0xf]  ;;  %v10314_v26 = vpop.f32.mrb[2].mxu0 }
 0x257   : > { %v3040_v38 = vsel %vm283_vm1, %v12755_v25, %v12754_v37  ;;  %v12758_v17 = vrot.slane %v12743_v11, 3  ;;  %v12759_v28 = vrot.slane %v12745_v42, 3  ;;  %v4747_v58 = vmul.f32 0.06666667, %v4651_v48 }
 0x258   : > { %v3248_v5 = vmax.f32 %v12757_v13, %v3035_v27  ;;  %v3250_v6 = vmax.f32 %v2601_v2, %v3040_v38  ;;  %v12760_v8 = vrot.slane %v12750_v62, 3  ;;  %v12761_v12 = vrot.slane %v12705_v53, 3  ;;  %v12768_v13 = vld [vmem:[#allocation33_spill] sm:$0xff] }
 0x259   : > { %v3360_v41 = vsel %vm3295_vm3, %v3357_v19, %v12758_v17  ;;  %v3365_v39 = vsel %vm3295_vm3, %v3362_v4, %v12759_v28  ;;  %v12762_v51 = vrot.slane %v12753_v50, 3  ;;  %v12763_v20 = vrot.slane %v12709_v56, 3  ;;  %v12772_v28 = vld [vmem:[#allocation118_spill] sm:$0xff] }
 0x25a   : > { %v3573_v24 = vadd.f32 %v3360_v41, %v2924_v23  ;;  %v3575_v34 = vadd.f32 %v3365_v39, %v2926_v31  ;;  %v3684_v2 = vsel %vm3295_vm3, %v12761_v12, %v12760_v8  ;;  %v12764_v59 = vrot.slane %v12743_v11, 4 }
 0x25b   : > { %v3689_v19 = vsel %vm3295_vm3, %v12763_v20, %v12762_v51  ;;  %v3897_v42 = vmax.f32 %v3248_v5, %v3684_v2  ;;  %v4013_v27 = vrot.slane %v6184_v16, 4  ;;  %v4779_v37 = vadd.f32 %v4747_v58, %v4715_v45 }
 0x25c   : > { %v4009_v4 = vsel %vm3944_vm4, %v4006_v47, %v12764_v59  ;;  %v3899_v25 = vmax.f32 %v3250_v6, %v3689_v19  ;;  %v12765_v48 = vrot.slane %v12750_v62, 4  ;;  %v12766_v23 = vrot.slane %v12705_v53, 4  ;;  %v10328_v62 = vpop.f32.mrb[3].mxu0 }
 0x25d   : > { %v4222_v38 = vadd.f32 %v4009_v4, %v3573_v24  ;;  %v4014_v11 = vsel %vm3944_vm4, %v4011_v52, %v4013_v27  ;;  %v12767_v15 = vrot.slane %v12753_v50, 4  ;;  %v12769_v5 = vrot.slane %v12768_v13, 1  ;;  %6006 = vmatprep.mubr.msk.f32.mxu1 %vm4794_vm5, %v4779_v37  ;;  %v12770_v50 = vld [vmem:[#allocation42_spill] sm:$0xff] }
 0x25e   : > { %v4333_v31 = vsel %vm3944_vm4, %v12766_v23, %v12765_v48  ;;  %v10331_v6 = vadd.f32 %v4014_v11, %v3575_v34  ;;  %v12771_v56 = vrot.slane %v12770_v50, 1  ;;  %v2637_v39 = vmax.f32 %v12729_v33, %v12772_v28  ;;  %v12781_v27 = vld [vmem:[#allocation98_spill] sm:$0xff] }
 0x25f   : > { %v4338_v47 = vsel %vm3944_vm4, %v4335_v40, %v12767_v15  ;;  %v4546_v45 = vmax.f32 %v3897_v42, %v4333_v31  ;;  %v2044_v53 = vsel %vm1889_vm2, %v12723_v0, %v12769_v5  ;;  %v4604_v52 = vadd.f32 %v4222_v38, %v9958_v44  ;;  %v12778_v42 = vld [vmem:[#allocation115_spill] sm:$0xff] }
 0x260   : > { %v10333_v32 = vmax.f32 %v3899_v25, %v4338_v47  ;;  %v2049_v40 = vsel %vm1889_vm2, %v2046_v30, %v12771_v56  ;;  %v2203_v0 = vadd.f32 %v10179_v54, %v2044_v53  ;;  %v12773_v24 = vrot.slane %v12768_v13, 2  ;;  %v12775_v30 = vld [vmem:[#allocation92_spill] sm:$0xff] }
 0x261   : > { %v4668_v17 = vmax.f32 %v9956_v21, %v4546_v45  ;;  %v2205_v41 = vadd.f32 %v10148_v22, %v2049_v40  ;;  %v4636_v58 = vadd.f32 %v4604_v52, %v10331_v6  ;;  %v12774_v34 = vrot.slane %v12770_v50, 2 }
 0x262   : > { %v2801_v44 = vsel %vm283_vm1, %v2798_v61, %v12773_v24  ;;  %v12776_v8 = vrot.slane %v12775_v30, 2  ;;  %v12777_v12 = vrot.slane %v12725_v57, 2  ;;  %v12779_v59 = vrot.slane %v12778_v42, 2 }
 0x263   : > { %v2806_v21 = vsel %vm283_vm1, %v2803_v35, %v12774_v34  ;;  %v4700_v51 = vmax.f32 %v4668_v17, %v10333_v32  ;;  %v2960_v20 = vadd.f32 %v2801_v44, %v2203_v0  ;;  %v12780_v61 = vrot.slane %v12729_v33, 2  ;;  %v10391_v17 = vpop.f32.mrb[2].mxu1 }
 0x264   : > { %v3125_v2 = vsel %vm283_vm1, %v12777_v12, %v12776_v8  ;;  %v2962_v19 = vadd.f32 %v2806_v21, %v2205_v41  ;;  %v4732_v16 = vmul.f32 0.06666667, %v4636_v58  ;;  %v12782_v35 = vmax.f32 %v12725_v57, %v12781_v27  ;;  %v6185_v41 = vld [vmem:[#allocation7 + $0x340] sm:$0xf]  ;;  %v10408_v21 = vpop.f32.mrb[3].mxu1  ;;  %v12793_v8 = vld [vmem:[#allocation46_spill] sm:$0xff] }
 0x265   : > { %v3130_v4 = vsel %vm283_vm1, %v12780_v61, %v12779_v59  ;;  %v12783_v38 = vrot.slane %v12768_v13, 3  ;;  %v12784_v23 = vrot.slane %v12770_v50, 3  ;;  %v12785_v15 = vrot.slane %v12775_v30, 3  ;;  %v12795_v12 = vld [vmem:[#allocation37_spill] sm:$0xff] }
 0x266   : > { %v3284_v37 = vmax.f32 %v12782_v35, %v3125_v2  ;;  %v3286_v25 = vmax.f32 %v2637_v39, %v3130_v4  ;;  %v12786_v47 = vrot.slane %v12725_v57, 3  ;;  %v12787_v5 = vrot.slane %v12778_v42, 3  ;;  %v12798_v35 = vld [vmem:[#allocation109_spill] sm:$0xff] }
 0x267   : > { %v3450_v48 = vsel %vm3295_vm3, %v3447_v63, %v12783_v38  ;;  %v3455_v31 = vsel %vm3295_vm3, %v3452_v29, %v12784_v23  ;;  %v12788_v53 = vrot.slane %v12729_v33, 3  ;;  %v4764_v63 = vadd.f32 %v4732_v16, %v4700_v51  ;;  %v6186_v33 = vld [vmem:[#allocation7 + $0x180] sm:$0xff]  ;;  %v12796_v16 = vld [vmem:[#allocation123_spill] sm:$0xff] }
 0x268   : > { %v3609_v11 = vadd.f32 %v3450_v48, %v2960_v20  ;;  %v3774_v45 = vsel %vm3295_vm3, %v12786_v47, %v12785_v15  ;;  %v3611_v56 = vadd.f32 %v3455_v31, %v2962_v19  ;;  %v12789_v29 = vrot.slane %v12768_v13, 4  ;;  %v6188_v19 = vld [vmem:[#allocation7 + $0x168] sm:$0xff]  ;;  %v12802_v48 = vld [vmem:[#allocation52_spill] sm:$0xff] }
 0x269   : > { %v3779_v52 = vsel %vm3295_vm3, %v12788_v53, %v12787_v5  ;;  %v3933_v50 = vmax.f32 %v3284_v37, %v3774_v45  ;;  %v4103_v28 = vrot.slane %v6185_v41, 4  ;;  %v12790_v39 = vrot.slane %v12775_v30, 4  ;;  %5983 = vmatmul.mubr.msk.f32.gmra.mrb[10].mxu0 %vm4794_vm5, %v4764_v63  ;;  %v10444_v5 = vld [vmem:[#allocation7 + $0x170] sm:$0xff] }
 0x26a   : > { %v3935_v40 = vmax.f32 %v3286_v25, %v3779_v52  ;;  %v4099_v0 = vsel %vm3944_vm4, %v4096_v36, %v12789_v29  ;;  %v12791_v58 = vrot.slane %v12725_v57, 4  ;;  %v12792_v44 = vrot.slane %v12778_v42, 4  ;;  %v12800_v25 = vld [vmem:[#allocation26_spill] sm:$0xff] }
 0x26b   : > { %v4258_v54 = vadd.f32 %v4099_v0, %v3609_v11  ;;  %v12794_v30 = vrot.slane %v12793_v8, 1  ;;  %v4104_v2 = vsel %vm3944_vm4, %v4101_v14, %v4103_v28  ;;  %v1965_v51 = vrot.slane %v6186_v33, 1 }
 0x26c   : > { %v4423_v24 = vsel %vm3944_vm4, %v12791_v58, %v12790_v39  ;;  %v4428_v34 = vsel %vm3944_vm4, %v4425_v18, %v12792_v44  ;;  %v10420_v18 = vld [vmem:[#allocation7 + $0x188] sm:$0xff]  ;;  %v10423_v59 = vadd.f32 %v4104_v2, %v3611_v56  ;;  %v12797_v27 = vrot.slane %v12796_v16, 1 }
 0x26d   : > { %v4582_v36 = vmax.f32 %v3933_v50, %v4423_v24  ;;  %v10411_v13 = vmax.f32 %v3935_v40, %v4428_v34  ;;  %v1962_v57 = vsel %vm1889_vm2, %v12795_v12, %v12794_v30  ;;  %v1966_v20 = vrot.slane %v10420_v18, 1 }
 0x26e   : > { %v2170_v42 = vadd.f32 %v6188_v19, %v1962_v57  ;;  %v4620_v61 = vadd.f32 %v4258_v54, %v10064_v1  ;;  %v12799_v22 = vrot.slane %v12798_v35, 1  ;;  %v12801_v38 = vrot.slane %v12800_v25, 1 }
 0x26f   : > { %v4684_v4 = vmax.f32 %v10062_v60, %v4582_v36  ;;  %v1967_v37 = vsel %vm1889_vm2, %v1965_v51, %v1966_v20  ;;  %v12803_v23 = vrot.slane %v12802_v48, 1  ;;  %v2717_v11 = vrot.slane %v6188_v19, 2 }
 0x270   : > { %v2394_v14 = vsel %vm1889_vm2, %v12799_v22, %v12797_v27  ;;  %v4652_v60 = vadd.f32 %v4620_v61, %v10423_v59  ;;  %v2172_v47 = vadd.f32 %v6186_v33, %v1967_v37  ;;  %v2718_v53 = vrot.slane %v10444_v5, 2 }
 0x271   : > { %v2399_v31 = vsel %vm1889_vm2, %v12803_v23, %v12801_v38  ;;  %v2602_v1 = vmax.f32 %v12798_v35, %v2394_v14  ;;  %v4716_v15 = vmax.f32 %v4684_v4, %v10411_v13  ;;  %v2722_v52 = vrot.slane %v6186_v33, 2 }
 0x272   : > { %v2604_v45 = vmax.f32 %v12802_v48, %v2399_v31  ;;  %v2723_v63 = vrot.slane %v10420_v18, 2  ;;  %v12804_v56 = vrot.slane %v12796_v16, 2  ;;  %v12805_v50 = vrot.slane %v12798_v35, 2 }
 0x273   : > { %v4748_v29 = vmul.f32 0.06666667, %v4652_v60  ;;  %v12806_v0 = vrot.slane %v12800_v25, 2  ;;  %v12807_v41 = vrot.slane %v12802_v48, 2  ;;  %v3366_v58 = vrot.slane %v6188_v19, 3 }
 0x274   : > { %v3043_v40 = vsel %vm283_vm1, %v12805_v50, %v12804_v56  ;;  %v2719_v24 = vsel %vm283_vm1, %v2717_v11, %v2718_v53  ;;  %v2724_v44 = vsel %vm283_vm1, %v2722_v52, %v2723_v63  ;;  %v3367_v54 = vrot.slane %v10444_v5, 3 }
 0x275   : > { %v3048_v28 = vsel %vm283_vm1, %v12807_v41, %v12806_v0  ;;  %v3251_v39 = vmax.f32 %v2602_v1, %v3043_v40  ;;  %v4780_v36 = vadd.f32 %v4748_v29, %v4716_v15  ;;  %v2927_v30 = vadd.f32 %v2719_v24, %v2170_v42  ;;  %v12814_v0 = vld [vmem:[#allocation48_spill] sm:$0xff]  ;;  %v6190_v24 = vld [vmem:[#allocation7 + $0x360] sm:$0xff] }
 0x276   : > { %v3253_v34 = vmax.f32 %v2604_v45, %v3048_v28  ;;  %v2929_v12 = vadd.f32 %v2724_v44, %v2172_v47  ;;  %v3371_v57 = vrot.slane %v6186_v33, 3  ;;  %v3368_v2 = vsel %vm3295_vm3, %v3366_v58, %v3367_v54  ;;  %v12816_v28 = vld [vmem:[#allocation39_spill] sm:$0xff] }
 0x277   : > { %v3372_v51 = vrot.slane %v10420_v18, 3  ;;  %v12808_v61 = vrot.slane %v12796_v16, 3  ;;  %v12809_v4 = vrot.slane %v12798_v35, 3  ;;  %v12810_v22 = vrot.slane %v12800_v25, 3  ;;  %6007 = vmatmul.mubr.msk.f32.gmra.mrb[10].mxu1 %vm4794_vm5, %v4780_v36 }
 0x278   : > { %v12811_v14 = vrot.slane %v12802_v48, 3  ;;  %v3576_v37 = vadd.f32 %v3368_v2, %v2927_v30  ;;  %v4015_v31 = vrot.slane %v6188_v19, 4  ;;  %v4016_v11 = vrot.slane %v10444_v5, 4  ;;  %v10510_v30 = vld [vmem:[#allocation7 + $0x368] sm:$0xff] }
 0x279   : > { %v3692_v27 = vsel %vm3295_vm3, %v12809_v4, %v12808_v61  ;;  %v3373_v1 = vsel %vm3295_vm3, %v3371_v57, %v3372_v51  ;;  %v4020_v60 = vrot.slane %v6186_v33, 4  ;;  %v4021_v15 = vrot.slane %v10420_v18, 4  ;;  %v6192_v57 = vld [vmem:[#allocation7 + $0x348] sm:$0xff]  ;;  %v12817_v4 = vld [vmem:[#allocation124_spill] sm:$0xff] }
 0x27a   : > { %v3697_v42 = vsel %vm3295_vm3, %v12811_v14, %v12810_v22  ;;  %v3900_v38 = vmax.f32 %v3251_v39, %v3692_v27  ;;  %v3578_v47 = vadd.f32 %v3373_v1, %v2929_v12  ;;  %v12812_v45 = vrot.slane %v12796_v16, 4  ;;  %v12819_v22 = vld [vmem:[#allocation111_spill] sm:$0xff] }
 0x27b   : > { %v3902_v23 = vmax.f32 %v3253_v34, %v3697_v42  ;;  %v12813_v52 = vrot.slane %v12798_v35, 4  ;;  %v4344_v50 = vrot.slane %v12802_v48, 4  ;;  %v4345_v19 = vrot.slane %v12800_v25, 4 }
 0x27c   : > { %v4017_v40 = vsel %vm3944_vm4, %v4015_v31, %v4016_v11  ;;  %v4022_v33 = vsel %vm3944_vm4, %v4020_v60, %v4021_v15  ;;  %v12815_v41 = vrot.slane %v12814_v0, 1  ;;  %v2055_v44 = vrot.slane %v6190_v24, 1 }
 0x27d   : > { %v4341_v56 = vsel %vm3944_vm4, %v12813_v52, %v12812_v45  ;;  %v4225_v39 = vadd.f32 %v4017_v40, %v3576_v37  ;;  %v10502_v58 = vadd.f32 %v4022_v33, %v3578_v47  ;;  %v4346_v48 = vsel %vm3944_vm4, %v4344_v50, %v4345_v19  ;;  %v12821_v37 = vld [vmem:[#allocation19_spill] sm:$0xff] }
 0x27e   : > { %v4549_v29 = vmax.f32 %v3900_v38, %v4341_v56  ;;  %v2052_v35 = vsel %vm1889_vm2, %v12816_v28, %v12815_v41  ;;  %v10507_v34 = vmax.f32 %v3902_v23, %v4346_v48  ;;  %v2056_v12 = vrot.slane %v10510_v30, 1  ;;  %v12823_v23 = vld [vmem:[#allocation56_spill] sm:$0xff]  ;;  %v10531_v50 = vld [vmem:[#allocation7 + $0x350] sm:$0xff] }
 0x27f   : > { %v2206_v2 = vadd.f32 %v6192_v57, %v2052_v35  ;;  %v4605_v61 = vadd.f32 %v4225_v39, %v10143_v43  ;;  %v12818_v27 = vrot.slane %v12817_v4, 1  ;;  %v12820_v14 = vrot.slane %v12819_v22, 1 }
 0x280   : > { %v4669_v36 = vmax.f32 %v10156_v7, %v4549_v29  ;;  %v12822_v38 = vrot.slane %v12821_v37, 1  ;;  %v12824_v31 = vrot.slane %v12823_v23, 1  ;;  %v2807_v1 = vrot.slane %v6192_v57, 2 }
 0x281   : > { %v2484_v42 = vsel %vm1889_vm2, %v12820_v14, %v12818_v27  ;;  %v2057_v47 = vsel %vm1889_vm2, %v2055_v44, %v2056_v12  ;;  %v4637_v52 = vadd.f32 %v4605_v61, %v10502_v58  ;;  %v2808_v40 = vrot.slane %v10531_v50, 2 }
 0x282   : > { %v2489_v7 = vsel %vm1889_vm2, %v12824_v31, %v12822_v38  ;;  %v4701_v60 = vmax.f32 %v4669_v36, %v10507_v34  ;;  %v2638_v43 = vmax.f32 %v12819_v22, %v2484_v42  ;;  %v2208_v56 = vadd.f32 %v6190_v24, %v2057_v47 }
 0x283   : > { %v2640_v45 = vmax.f32 %v12823_v23, %v2489_v7  ;;  %v2812_v33 = vrot.slane %v6190_v24, 2  ;;  %v2813_v29 = vrot.slane %v10510_v30, 2  ;;  %v12825_v41 = vrot.slane %v12817_v4, 2 }
 0x284   : > { %v12826_v28 = vrot.slane %v12819_v22, 2  ;;  %v12827_v39 = vrot.slane %v12821_v37, 2  ;;  %v12828_v48 = vrot.slane %v12823_v23, 2  ;;  %v3456_v36 = vrot.slane %v6192_v57, 3 }
 0x285   : > { %v4733_v61 = vmul.f32 0.06666667, %v4637_v52  ;;  %v2809_v27 = vsel %vm283_vm1, %v2807_v1, %v2808_v40  ;;  %v2814_v38 = vsel %vm283_vm1, %v2812_v33, %v2813_v29  ;;  %v3457_v7 = vrot.slane %v10531_v50, 3 }
 0x286   : > { %v3133_v35 = vsel %vm283_vm1, %v12826_v28, %v12825_v41  ;;  %v3138_v44 = vsel %vm283_vm1, %v12828_v48, %v12827_v39  ;;  %v2963_v31 = vadd.f32 %v2809_v27, %v2206_v2  ;;  %v3461_v47 = vrot.slane %v6190_v24, 3 }
 0x287   : > { %v3287_v14 = vmax.f32 %v2638_v43, %v3133_v35  ;;  %v3289_v42 = vmax.f32 %v2640_v45, %v3138_v44  ;;  %v4765_v41 = vadd.f32 %v4733_v61, %v4701_v60  ;;  %v2965_v28 = vadd.f32 %v2814_v38, %v2208_v56 }
 0x288   : > { %v3462_v39 = vrot.slane %v10510_v30, 3  ;;  %v12829_v52 = vrot.slane %v12817_v4, 3  ;;  %v12830_v48 = vrot.slane %v12819_v22, 3  ;;  %v3458_v43 = vsel %vm3295_vm3, %v3456_v36, %v3457_v7 }
 0x289   : > { %v12831_v45 = vrot.slane %v12821_v37, 3  ;;  %v12832_v2 = vrot.slane %v12823_v23, 3  ;;  %v4105_v56 = vrot.slane %v6192_v57, 4  ;;  %5985 = vmatprep.mubr.msk.f32.mxu0 %vm4794_vm5, %v4765_v41  ;;  %v3612_v44 = vadd.f32 %v3458_v43, %v2963_v31 }
 0x28a   : > { %v3782_v1 = vsel %vm3295_vm3, %v12830_v48, %v12829_v52  ;;  %v3463_v35 = vsel %vm3295_vm3, %v3461_v47, %v3462_v39  ;;  %v4106_v27 = vrot.slane %v10531_v50, 4  ;;  %v4110_v36 = vrot.slane %v6190_v24, 4 }
 0x28b   : > { %v3787_v33 = vsel %vm3295_vm3, %v12832_v2, %v12831_v45  ;;  %v3936_v60 = vmax.f32 %v3287_v14, %v3782_v1  ;;  %v3614_v38 = vadd.f32 %v3463_v35, %v2965_v28  ;;  %v4111_v52 = vrot.slane %v10510_v30, 4  ;;  %v12835_v28 = vld [vmem:[#allocation49_spill] sm:$0xff]  ;;  %v12838_v2 = vld [vmem:[#allocation43_spill] sm:$0xff] }
 0x28c   : > { %v3938_v61 = vmax.f32 %v3289_v42, %v3787_v33  ;;  %v12833_v48 = vrot.slane %v12817_v4, 4  ;;  %v12834_v45 = vrot.slane %v12819_v22, 4  ;;  %v4107_v14 = vsel %vm3944_vm4, %v4105_v56, %v4106_v27 }
 0x28d   : > { %v4434_v47 = vrot.slane %v12823_v23, 4  ;;  %v4435_v42 = vrot.slane %v12821_v37, 4  ;;  %v4112_v24 = vsel %vm3944_vm4, %v4110_v36, %v4111_v52  ;;  %v4261_v41 = vadd.f32 %v4107_v14, %v3612_v44 }
 0x28e   : > { %v4431_v57 = vsel %vm3944_vm4, %v12834_v45, %v12833_v48  ;;  %v12836_v1 = vrot.slane %v12835_v28, 1  ;;  %v12837_v22 = vrot.slane %v12793_v8, 1  ;;  %v12839_v33 = vrot.slane %v12838_v2, 1  ;;  %v12840_v45 = vld [vmem:[#allocation106_spill] sm:$0xff] }
 0x28f   : > { %v4585_v31 = vmax.f32 %v3936_v60, %v4431_v57  ;;  %v10595_v56 = vadd.f32 %v4112_v24, %v3614_v38  ;;  %v4436_v60 = vsel %vm3944_vm4, %v4434_v47, %v4435_v42  ;;  %v4621_v8 = vadd.f32 %v4261_v41, %v10246_v49  ;;  %v12846_v24 = vld [vmem:[#allocation9_spill] sm:$0xff] }
 0x290   : > { %v1964_v43 = vsel %vm1889_vm2, %v12837_v22, %v12836_v1  ;;  %v1969_v23 = vsel %vm1889_vm2, %v1966_v20, %v12839_v33  ;;  %v10602_v36 = vmax.f32 %v3938_v61, %v4436_v60  ;;  %v2605_v57 = vmax.f32 %v12800_v25, %v12840_v45  ;;  %v12843_v61 = vld [vmem:[#allocation120_spill] sm:$0xff] }
 0x291   : > { %v4685_v35 = vmax.f32 %v10253_v9, %v4585_v31  ;;  %v2171_v44 = vadd.f32 %v10444_v5, %v1964_v43  ;;  %v2173_v48 = vadd.f32 %v10420_v18, %v1969_v23  ;;  %v12841_v20 = vrot.slane %v12835_v28, 2 }
 0x292   : > { %v12842_v14 = vrot.slane %v12838_v2, 2  ;;  %v12844_v47 = vrot.slane %v12843_v61, 2  ;;  %v12845_v49 = vrot.slane %v12796_v16, 2  ;;  %v12847_v41 = vrot.slane %v12846_v24, 2 }
 0x293   : > { %v2721_v38 = vsel %vm283_vm1, %v2718_v53, %v12841_v20  ;;  %v12848_v1 = vrot.slane %v12800_v25, 2  ;;  %v4653_v53 = vadd.f32 %v4621_v8, %v10595_v56  ;;  %v4717_v43 = vmax.f32 %v4685_v35, %v10602_v36 }
 0x294   : > { %v2726_v9 = vsel %vm283_vm1, %v2723_v63, %v12842_v14  ;;  %v3045_v31 = vsel %vm283_vm1, %v12845_v49, %v12844_v47  ;;  %v2928_v33 = vadd.f32 %v2721_v38, %v2171_v44  ;;  %v12849_v63 = vld [vmem:[#allocation125_spill] sm:$0xff]  ;;  %v12851_v14 = vrot.slane %v12835_v28, 3 }
 0x295   : > { %v3050_v22 = vsel %vm283_vm1, %v12848_v1, %v12847_v41  ;;  %v2930_v23 = vadd.f32 %v2726_v9, %v2173_v48  ;;  %v12850_v60 = vmax.f32 %v12796_v16, %v12849_v63  ;;  %v12852_v49 = vrot.slane %v12838_v2, 3 }
 0x296   : > { %v3254_v20 = vmax.f32 %v2605_v57, %v3050_v22  ;;  %v3370_v47 = vsel %vm3295_vm3, %v3367_v54, %v12851_v14  ;;  %v4749_v35 = vmul.f32 0.06666667, %v4653_v53  ;;  %v12853_v38 = vrot.slane %v12843_v61, 3  ;;  %v6194_v22 = vld [vmem:[#allocation7 + $0x190] sm:$0xf] }
 0x297   : > { %v3252_v45 = vmax.f32 %v12850_v60, %v3045_v31  ;;  %v3375_v8 = vsel %vm3295_vm3, %v3372_v51, %v12852_v49  ;;  %v3577_v44 = vadd.f32 %v3370_v47, %v2928_v33  ;;  %v12854_v9 = vrot.slane %v12796_v16, 3 }
 0x298   : > { %v3579_v48 = vadd.f32 %v3375_v8, %v2930_v23  ;;  %v12855_v31 = vrot.slane %v12846_v24, 3  ;;  %v12856_v41 = vrot.slane %v12800_v25, 3  ;;  %v12857_v1 = vrot.slane %v12835_v28, 4 }
 0x299   : > { %v3694_v57 = vsel %vm3295_vm3, %v12854_v9, %v12853_v38  ;;  %v4023_v53 = vrot.slane %v6194_v22, 4  ;;  %v4781_v33 = vadd.f32 %v4749_v35, %v4717_v43  ;;  %v12858_v60 = vrot.slane %v12843_v61, 4  ;;  %v12861_v43 = vld [vmem:[#allocation51_spill] sm:$0xff]  ;;  %v12872_v22 = vld [vmem:[#allocation104_spill] sm:$0xff] }
 0x29a   : > { %v3699_v54 = vsel %vm3295_vm3, %v12856_v41, %v12855_v31  ;;  %v3901_v2 = vmax.f32 %v3252_v45, %v3694_v57  ;;  %v4019_v51 = vsel %vm3944_vm4, %v4016_v11, %v12857_v1  ;;  %v12859_v14 = vrot.slane %v12796_v16, 4 }
 0x29b   : > { %v3903_v23 = vmax.f32 %v3254_v20, %v3699_v54  ;;  %v4226_v63 = vadd.f32 %v4019_v51, %v3577_v44  ;;  %v4024_v45 = vsel %vm3944_vm4, %v4021_v15, %v4023_v53  ;;  %v12860_v28 = vrot.slane %v12846_v24, 4  ;;  %6009 = vmatprep.mubr.msk.f32.mxu1 %vm4794_vm5, %v4781_v33  ;;  %v12864_v24 = vld [vmem:[#allocation103_spill] sm:$0xff]  ;;  %v12866_v44 = vld [vmem:[#allocation128_spill] sm:$0xff] }
 0x29c   : > { %v4343_v47 = vsel %vm3944_vm4, %v12859_v14, %v12858_v60  ;;  %v12862_v20 = vrot.slane %v12861_v43, 1  ;;  %v12863_v49 = vrot.slane %v12814_v0, 1  ;;  %v10677_v16 = vadd.f32 %v4024_v45, %v3579_v48 }
 0x29d   : > { %v4348_v5 = vsel %vm3944_vm4, %v4345_v19, %v12860_v28  ;;  %v4550_v11 = vmax.f32 %v3901_v2, %v4343_v47  ;;  %v4606_v15 = vadd.f32 %v4226_v63, %v10331_v6  ;;  %v12865_v8 = vrot.slane %v12864_v24, 1  ;;  %v12875_v63 = vld [vmem:[#allocation127_spill] sm:$0xff] }
 0x29e   : > { %v2054_v61 = vsel %vm1889_vm2, %v12863_v49, %v12862_v20  ;;  %v10679_v18 = vmax.f32 %v3903_v23, %v4348_v5  ;;  %v2641_v48 = vmax.f32 %v12821_v37, %v12866_v44  ;;  %v12867_v9 = vrot.slane %v12861_v43, 2  ;;  %v6195_v44 = vld [vmem:[#allocation7 + $0x370] sm:$0xf] }
 0x29f   : > { %v2059_v25 = vsel %vm1889_vm2, %v2056_v12, %v12865_v8  ;;  %v4670_v19 = vmax.f32 %v10333_v32, %v4550_v11  ;;  %v2207_v0 = vadd.f32 %v10531_v50, %v2054_v61  ;;  %v4638_v38 = vadd.f32 %v4606_v15, %v10677_v16  ;;  %v12869_v12 = vld [vmem:[#allocation122_spill] sm:$0xff] }
 0x2a0   : > { %v2209_v35 = vadd.f32 %v10510_v30, %v2059_v25  ;;  %v2811_v6 = vsel %vm283_vm1, %v2808_v40, %v12867_v9  ;;  %v12868_v57 = vrot.slane %v12864_v24, 2  ;;  %v12870_v31 = vrot.slane %v12869_v12, 2 }
 0x2a1   : > { %v12871_v41 = vrot.slane %v12817_v4, 2  ;;  %v4702_v2 = vmax.f32 %v4670_v19, %v10679_v18  ;;  %v2964_v1 = vadd.f32 %v2811_v6, %v2207_v0  ;;  %v12873_v53 = vrot.slane %v12872_v22, 2 }
 0x2a2   : > { %v2816_v32 = vsel %vm283_vm1, %v2813_v29, %v12868_v57  ;;  %v12874_v40 = vrot.slane %v12821_v37, 2  ;;  %v4734_v23 = vmul.f32 0.06666667, %v4638_v38  ;;  %v12876_v29 = vmax.f32 %v12817_v4, %v12875_v63  ;;  %v12891_v63 = vld [vmem:[#allocation131_spill] sm:$0xff] }
 0x2a3   : > { %v3135_v54 = vsel %vm283_vm1, %v12871_v41, %v12870_v31  ;;  %v2966_v51 = vadd.f32 %v2816_v32, %v2209_v35  ;;  %v12877_v47 = vrot.slane %v12861_v43, 3  ;;  %v12878_v28 = vrot.slane %v12864_v24, 3 }
 0x2a4   : > { %v3140_v33 = vsel %vm283_vm1, %v12874_v40, %v12873_v53  ;;  %v3288_v60 = vmax.f32 %v12876_v29, %v3135_v54  ;;  %v12879_v20 = vrot.slane %v12869_v12, 3  ;;  %v12880_v49 = vrot.slane %v12817_v4, 3  ;;  %v12889_v54 = vld [vmem:[#allocation85_spill] sm:$0xff] }
 0x2a5   : > { %v3290_v14 = vmax.f32 %v2641_v48, %v3140_v33  ;;  %v3460_v45 = vsel %vm3295_vm3, %v3457_v7, %v12877_v47  ;;  %v3465_v5 = vsel %vm3295_vm3, %v3462_v39, %v12878_v28  ;;  %v12881_v15 = vrot.slane %v12872_v22, 3  ;;  %v12895_v47 = vld [vmem:[#allocation89_spill] sm:$0xff]  ;;  %v12897_v28 = vld [vmem:[#allocation32_spill] sm:$0xff] }
 0x2a6   : > { %v3613_v11 = vadd.f32 %v3460_v45, %v2964_v1  ;;  %v3784_v61 = vsel %vm3295_vm3, %v12880_v49, %v12879_v20  ;;  %v12882_v8 = vrot.slane %v12821_v37, 3  ;;  %v4766_v7 = vadd.f32 %v4734_v23, %v4702_v2  ;;  %v6196_v1 = vld [vmem:[#allocation7 + $0x1b0] sm:$0xff] }
 0x2a7   : > { %v3615_v19 = vadd.f32 %v3465_v5, %v2966_v51  ;;  %v3937_v24 = vmax.f32 %v3288_v60, %v3784_v61  ;;  %v12883_v35 = vrot.slane %v12861_v43, 4  ;;  %v4113_v48 = vrot.slane %v6195_v44, 4  ;;  %v10763_v51 = vld [vmem:[#allocation7 + $0x1b8] sm:$0xff]  ;;  %v12893_v60 = vld [vmem:[#allocation62_spill] sm:$0xff] }
 0x2a8   : > { %v3789_v25 = vsel %vm3295_vm3, %v12882_v8, %v12881_v15  ;;  %v12884_v38 = vrot.slane %v12869_v12, 4  ;;  %v12885_v9 = vrot.slane %v12817_v4, 4  ;;  %v12886_v57 = vrot.slane %v12872_v22, 4  ;;  %5986 = vmatmul.mubr.msk.f32.gmra.mrb[12].mxu0 %vm4794_vm5, %v4766_v7  ;;  %v6198_v22 = vld [vmem:[#allocation7 + $0x198] sm:$0xff]  ;;  %v10787_v8 = vld [vmem:[#allocation7 + $0x1a0] sm:$0xff] }
 0x2a9   : > { %v3939_v0 = vmax.f32 %v3290_v14, %v3789_v25  ;;  %v4109_v39 = vsel %vm3944_vm4, %v4106_v27, %v12883_v35  ;;  %v12887_v27 = vld [vmem:[#allocation47_spill] sm:$0xff]  ;;  %v12890_v12 = vrot.slane %v12889_v54, 1  ;;  %v4114_v2 = vsel %vm3944_vm4, %v4111_v52, %v4113_v48 }
 0x2aa   : > { %v4433_v6 = vsel %vm3944_vm4, %v12885_v9, %v12884_v38  ;;  %v4438_v32 = vsel %vm3944_vm4, %v4435_v42, %v12886_v57  ;;  %v4262_v43 = vadd.f32 %v4109_v39, %v3613_v11  ;;  %v12888_v41 = vrot.slane %v12887_v27, 1 }
 0x2ab   : > { %v4586_v50 = vmax.f32 %v3937_v24, %v4433_v6  ;;  %v10753_v31 = vmax.f32 %v3939_v0, %v4438_v32  ;;  %v1975_v37 = vrot.slane %v6196_v1, 1  ;;  %v1976_v42 = vrot.slane %v10763_v51, 1 }
 0x2ac   : > { %v1972_v4 = vsel %vm1889_vm2, %v12890_v12, %v12888_v41  ;;  %v10766_v40 = vadd.f32 %v4114_v2, %v3615_v19  ;;  %v4622_v33 = vadd.f32 %v4262_v43, %v10423_v59  ;;  %v12892_v29 = vrot.slane %v12891_v63, 1 }
 0x2ad   : > { %v2174_v53 = vadd.f32 %v6198_v22, %v1972_v4  ;;  %v4686_v23 = vmax.f32 %v10411_v13, %v4586_v50  ;;  %v12894_v30 = vrot.slane %v12893_v60, 1  ;;  %v1977_v14 = vsel %vm1889_vm2, %v1975_v37, %v1976_v42 }
 0x2ae   : > { %v12896_v45 = vrot.slane %v12895_v47, 1  ;;  %v12898_v5 = vrot.slane %v12897_v28, 1  ;;  %v2727_v20 = vrot.slane %v6198_v22, 2  ;;  %v4654_v13 = vadd.f32 %v4622_v33, %v10766_v40 }
 0x2af   : > { %v2404_v52 = vsel %vm1889_vm2, %v12894_v30, %v12892_v29  ;;  %v4718_v49 = vmax.f32 %v4686_v23, %v10753_v31  ;;  %v2176_v61 = vadd.f32 %v6196_v1, %v1977_v14  ;;  %v2728_v25 = vrot.slane %v10787_v8, 2 }
 0x2b0   : > { %v2409_v11 = vsel %vm1889_vm2, %v12898_v5, %v12896_v45  ;;  %v2606_v59 = vmax.f32 %v12893_v60, %v2404_v52  ;;  %v2732_v7 = vrot.slane %v6196_v1, 2  ;;  %v2733_v19 = vrot.slane %v10763_v51, 2 }
 0x2b1   : > { %v2608_v15 = vmax.f32 %v12897_v28, %v2409_v11  ;;  %v12899_v24 = vrot.slane %v12891_v63, 2  ;;  %v12900_v0 = vrot.slane %v12893_v60, 2  ;;  %v4750_v39 = vmul.f32 0.06666667, %v4654_v13 }
 0x2b2   : > { %v12901_v44 = vrot.slane %v12895_v47, 2  ;;  %v12902_v48 = vrot.slane %v12897_v28, 2  ;;  %v3376_v6 = vrot.slane %v6198_v22, 3  ;;  %v2729_v57 = vsel %vm283_vm1, %v2727_v20, %v2728_v25 }
 0x2b3   : > { %v3053_v35 = vsel %vm283_vm1, %v12900_v0, %v12899_v24  ;;  %v2734_v32 = vsel %vm283_vm1, %v2732_v7, %v2733_v19  ;;  %v3377_v50 = vrot.slane %v10787_v8, 3  ;;  %v4782_v41 = vadd.f32 %v4750_v39, %v4718_v49 }
 0x2b4   : > { %v3058_v38 = vsel %vm283_vm1, %v12902_v48, %v12901_v44  ;;  %v3255_v9 = vmax.f32 %v2606_v59, %v3053_v35  ;;  %v2931_v54 = vadd.f32 %v2729_v57, %v2174_v53  ;;  %v2933_v12 = vadd.f32 %v2734_v32, %v2176_v61  ;;  %v12909_v44 = vld [vmem:[#allocation130_spill] sm:$0xff]  ;;  %v6200_v32 = vld [vmem:[#allocation7 + $0x390] sm:$0xff] }
 0x2b5   : > { %v3257_v43 = vmax.f32 %v2608_v15, %v3058_v38  ;;  %v3381_v4 = vrot.slane %v6196_v1, 3  ;;  %v3378_v2 = vsel %vm3295_vm3, %v3376_v6, %v3377_v50  ;;  %v3382_v37 = vrot.slane %v10763_v51, 3  ;;  %6010 = vmatmul.mubr.msk.f32.gmra.mrb[12].mxu1 %vm4794_vm5, %v4782_v41  ;;  %v12911_v38 = vld [vmem:[#allocation65_spill] sm:$0xff]  ;;  %v10849_v41 = vpop.f32.mrb[4].mxu0 }
 0x2b6   : > { %v12903_v33 = vrot.slane %v12891_v63, 3  ;;  %v12904_v23 = vrot.slane %v12893_v60, 3  ;;  %v12905_v30 = vrot.slane %v12895_v47, 3  ;;  %v12906_v52 = vrot.slane %v12897_v28, 3 }
 0x2b7   : > { %v3580_v14 = vadd.f32 %v3378_v2, %v2931_v54  ;;  %v4025_v11 = vrot.slane %v6198_v22, 4  ;;  %v3383_v59 = vsel %vm3295_vm3, %v3381_v4, %v3382_v37  ;;  %v4026_v20 = vrot.slane %v10787_v8, 4  ;;  %v10852_v4 = vld [vmem:[#allocation7 + $0x398] sm:$0xff] }
 0x2b8   : > { %v3702_v29 = vsel %vm3295_vm3, %v12904_v23, %v12903_v33  ;;  %v3707_v53 = vsel %vm3295_vm3, %v12906_v52, %v12905_v30  ;;  %v4030_v13 = vrot.slane %v6196_v1, 4  ;;  %v4031_v49 = vrot.slane %v10763_v51, 4  ;;  %v6202_v33 = vld [vmem:[#allocation7 + $0x378] sm:$0xff] }
 0x2b9   : > { %v3904_v45 = vmax.f32 %v3255_v9, %v3702_v29  ;;  %v3906_v5 = vmax.f32 %v3257_v43, %v3707_v53  ;;  %v3582_v61 = vadd.f32 %v3383_v59, %v2933_v12  ;;  %v12907_v15 = vrot.slane %v12891_v63, 4  ;;  %v10855_v29 = vpop.f32.mrb[5].mxu0  ;;  %v12913_v52 = vld [vmem:[#allocation132_spill] sm:$0xff] }
 0x2ba   : > { %v12908_v7 = vrot.slane %v12893_v60, 4  ;;  %v4354_v0 = vrot.slane %v12897_v28, 4  ;;  %v4355_v22 = vrot.slane %v12895_v47, 4  ;;  %v4027_v35 = vsel %vm3944_vm4, %v4025_v11, %v4026_v20  ;;  %v12917_v59 = vld [vmem:[#allocation112_spill] sm:$0xff] }
 0x2bb   : > { %v4032_v1 = vsel %vm3944_vm4, %v4030_v13, %v4031_v49  ;;  %v12910_v48 = vrot.slane %v12909_v44, 1  ;;  %v12912_v9 = vrot.slane %v12911_v38, 1  ;;  %v4229_v6 = vadd.f32 %v4027_v35, %v3580_v14  ;;  %v12915_v14 = vld [vmem:[#allocation68_spill] sm:$0xff]  ;;  %v12919_v13 = vld [vmem:[#allocation22_spill] sm:$0xff] }
 0x2bc   : > { %v4351_v24 = vsel %vm3944_vm4, %v12908_v7, %v12907_v15  ;;  %v4231_v57 = vadd.f32 %v4032_v1, %v3582_v61  ;;  %v4356_v28 = vsel %vm3944_vm4, %v4354_v0, %v4355_v22  ;;  %v2065_v43 = vrot.slane %v6200_v32, 1 }
 0x2bd   : > { %v4553_v39 = vmax.f32 %v3904_v45, %v4351_v24  ;;  %v2062_v60 = vsel %vm1889_vm2, %v12912_v9, %v12910_v48  ;;  %v4555_v54 = vmax.f32 %v3906_v5, %v4356_v28  ;;  %v2066_v2 = vrot.slane %v10852_v4, 1 }
 0x2be   : > { %v2210_v23 = vadd.f32 %v6202_v33, %v2062_v60  ;;  %v4607_v30 = vadd.f32 %v4229_v6, %v10502_v58  ;;  %v12914_v53 = vrot.slane %v12913_v52, 1  ;;  %v12916_v45 = vrot.slane %v12915_v14, 1 }
 0x2bf   : > { %v4671_v12 = vmax.f32 %v10507_v34, %v4553_v39  ;;  %v12918_v5 = vrot.slane %v12917_v59, 1  ;;  %v12920_v34 = vrot.slane %v12919_v13, 1  ;;  %v2817_v15 = vrot.slane %v6202_v33, 2  ;;  %v10873_v39 = vld [vmem:[#allocation7 + $0x380] sm:$0xff] }
 0x2c0   : > { %v2494_v11 = vsel %vm1889_vm2, %v12916_v45, %v12914_v53  ;;  %v2067_v24 = vsel %vm1889_vm2, %v2065_v43, %v2066_v2  ;;  %v4639_v35 = vadd.f32 %v4607_v30, %v4231_v57  ;;  %v2818_v48 = vrot.slane %v10873_v39, 2 }
 0x2c1   : > { %v2499_v61 = vsel %vm1889_vm2, %v12920_v34, %v12918_v5  ;;  %v4703_v7 = vmax.f32 %v4671_v12, %v4555_v54  ;;  %v2642_v58 = vmax.f32 %v12915_v14, %v2494_v11  ;;  %v2212_v1 = vadd.f32 %v6200_v32, %v2067_v24 }
 0x2c2   : > { %v2644_v0 = vmax.f32 %v12919_v13, %v2499_v61  ;;  %v2822_v38 = vrot.slane %v6200_v32, 2  ;;  %v2823_v9 = vrot.slane %v10852_v4, 2  ;;  %v12921_v60 = vrot.slane %v12913_v52, 2 }
 0x2c3   : > { %v12922_v6 = vrot.slane %v12915_v14, 2  ;;  %v12923_v43 = vrot.slane %v12917_v59, 2  ;;  %v12924_v54 = vrot.slane %v12919_v13, 2  ;;  %v3466_v12 = vrot.slane %v6202_v33, 3 }
 0x2c4   : > { %v4735_v30 = vmul.f32 0.06666667, %v4639_v35  ;;  %v2819_v53 = vsel %vm283_vm1, %v2817_v15, %v2818_v48  ;;  %v2824_v5 = vsel %vm283_vm1, %v2822_v38, %v2823_v9  ;;  %v3467_v61 = vrot.slane %v10873_v39, 3 }
 0x2c5   : > { %v3143_v28 = vsel %vm283_vm1, %v12922_v6, %v12921_v60  ;;  %v3148_v57 = vsel %vm283_vm1, %v12924_v54, %v12923_v43  ;;  %v2967_v34 = vadd.f32 %v2819_v53, %v2210_v23  ;;  %v3471_v24 = vrot.slane %v6200_v32, 3 }
 0x2c6   : > { %v3291_v45 = vmax.f32 %v2642_v58, %v3143_v28  ;;  %v3293_v11 = vmax.f32 %v2644_v0, %v3148_v57  ;;  %v4767_v60 = vadd.f32 %v4735_v30, %v4703_v7  ;;  %v2969_v6 = vadd.f32 %v2824_v5, %v2212_v1  ;;  %v10913_v5 = vpop.f32.mrb[4].mxu1 }
 0x2c7   : > { %v3472_v43 = vrot.slane %v10852_v4, 3  ;;  %v12925_v35 = vrot.slane %v12913_v52, 3  ;;  %v12926_v54 = vrot.slane %v12915_v14, 3  ;;  %v3468_v58 = vsel %vm3295_vm3, %v3466_v12, %v3467_v61 }
 0x2c8   : > { %v12927_v0 = vrot.slane %v12917_v59, 3  ;;  %v12928_v23 = vrot.slane %v12919_v13, 3  ;;  %v4115_v1 = vrot.slane %v6202_v33, 4  ;;  %5988 = vmatprep.mubr.msk.f32.mxu0 %vm4794_vm5, %v4767_v60  ;;  %v3616_v57 = vadd.f32 %v3468_v58, %v2967_v34  ;;  %v10921_v60 = vpop.f32.mrb[5].mxu1  ;;  %v12931_v58 = vld [vmem:[#allocation134_spill] sm:$0xff] }
 0x2c9   : > { %v3792_v15 = vsel %vm3295_vm3, %v12926_v54, %v12925_v35  ;;  %v3473_v28 = vsel %vm3295_vm3, %v3471_v24, %v3472_v43  ;;  %v4116_v53 = vrot.slane %v10873_v39, 4  ;;  %v4120_v35 = vrot.slane %v6200_v32, 4 }
 0x2ca   : > { %v3797_v38 = vsel %vm3295_vm3, %v12928_v23, %v12927_v0  ;;  %v3940_v7 = vmax.f32 %v3291_v45, %v3792_v15  ;;  %v3618_v12 = vadd.f32 %v3473_v28, %v2969_v6  ;;  %v11997_v54 = vrot.slane %v10852_v4, 4  ;;  %v12934_v28 = vld [vmem:[#allocation117_spill] sm:$0xff] }
 0x2cb   : > { %v3942_v30 = vmax.f32 %v3293_v11, %v3797_v38  ;;  %v12929_v0 = vrot.slane %v12913_v52, 4  ;;  %v12930_v33 = vrot.slane %v12915_v14, 4  ;;  %v4117_v11 = vsel %vm3944_vm4, %v4115_v1, %v4116_v53 }
 0x2cc   : > { %v4444_v34 = vrot.slane %v12919_v13, 4  ;;  %v11998_v24 = vrot.slane %v12917_v59, 4  ;;  %v4122_v32 = vsel %vm3944_vm4, %v4120_v35, %v11997_v54  ;;  %v4265_v15 = vadd.f32 %v4117_v11, %v3616_v57  ;;  %v12936_v11 = vld [vmem:[#allocation145_spill] sm:$0xff] }
 0x2cd   : > { %v4441_v45 = vsel %vm3944_vm4, %v12930_v33, %v12929_v0  ;;  %v12932_v14 = vrot.slane %v12931_v58, 1  ;;  %v12933_v23 = vrot.slane %v12887_v27, 1  ;;  %v12935_v0 = vrot.slane %v12934_v28, 1 }
 0x2ce   : > { %v4589_v6 = vmax.f32 %v3940_v7, %v4441_v45  ;;  %v4267_v1 = vadd.f32 %v4122_v32, %v3618_v12  ;;  %v4446_v7 = vsel %vm3944_vm4, %v4444_v34, %v11998_v24  ;;  %v4623_v27 = vadd.f32 %v4265_v15, %v10595_v56  ;;  %v12942_v32 = vld [vmem:[#allocation97_spill] sm:$0xff] }
 0x2cf   : > { %v1974_v38 = vsel %vm1889_vm2, %v12933_v23, %v12932_v14  ;;  %v1979_v13 = vsel %vm1889_vm2, %v1976_v42, %v12935_v0  ;;  %v4591_v33 = vmax.f32 %v3942_v30, %v4446_v7  ;;  %v2609_v14 = vmax.f32 %v12895_v47, %v12936_v11  ;;  %v12939_v30 = vld [vmem:[#allocation29_spill] sm:$0xff] }
 0x2d0   : > { %v4687_v35 = vmax.f32 %v10602_v36, %v4589_v6  ;;  %v2175_v57 = vadd.f32 %v10787_v8, %v1974_v38  ;;  %v2177_v45 = vadd.f32 %v10763_v51, %v1979_v13  ;;  %v12937_v23 = vrot.slane %v12931_v58, 2 }
 0x2d1   : > { %v12938_v12 = vrot.slane %v12934_v28, 2  ;;  %v12940_v34 = vrot.slane %v12939_v30, 2  ;;  %v12941_v56 = vrot.slane %v12891_v63, 2  ;;  %v12943_v15 = vrot.slane %v12942_v32, 2 }
 0x2d2   : > { %v2731_v42 = vsel %vm283_vm1, %v2728_v25, %v12937_v23  ;;  %v12944_v38 = vrot.slane %v12895_v47, 2  ;;  %v4655_v13 = vadd.f32 %v4623_v27, %v4267_v1  ;;  %v4719_v25 = vmax.f32 %v4687_v35, %v4591_v33  ;;  %v12945_v23 = vld [vmem:[#allocation140_spill] sm:$0xff] }
 0x2d3   : > { %v2736_v36 = vsel %vm283_vm1, %v2733_v19, %v12938_v12  ;;  %v3055_v6 = vsel %vm283_vm1, %v12941_v56, %v12940_v34  ;;  %v2932_v7 = vadd.f32 %v2731_v42, %v2175_v57  ;;  %v12946_v54 = vmax.f32 %v12891_v63, %v12945_v23 }
 0x2d4   : > { %v3060_v0 = vsel %vm283_vm1, %v12944_v38, %v12943_v15  ;;  %v2934_v11 = vadd.f32 %v2736_v36, %v2177_v45  ;;  %v12947_v24 = vrot.slane %v12931_v58, 3  ;;  %v12948_v56 = vrot.slane %v12934_v28, 3  ;;  %v6204_v36 = vld [vmem:[#allocation7 + $0x1c0] sm:$0xf] }
 0x2d5   : > { %v3256_v19 = vmax.f32 %v12946_v54, %v3055_v6  ;;  %v3258_v12 = vmax.f32 %v2609_v14, %v3060_v0  ;;  %v4751_v35 = vmul.f32 0.06666667, %v4655_v13  ;;  %v12949_v27 = vrot.slane %v12939_v30, 3 }
 0x2d6   : > { %v3380_v34 = vsel %vm3295_vm3, %v3377_v50, %v12947_v24  ;;  %v3385_v1 = vsel %vm3295_vm3, %v3382_v37, %v12948_v56  ;;  %v12950_v54 = vrot.slane %v12891_v63, 3  ;;  %v12951_v14 = vrot.slane %v12942_v32, 3 }
 0x2d7   : > { %v3581_v57 = vadd.f32 %v3380_v34, %v2932_v7  ;;  %v3583_v33 = vadd.f32 %v3385_v1, %v2934_v11  ;;  %v12952_v42 = vrot.slane %v12895_v47, 3  ;;  %v12953_v28 = vrot.slane %v12931_v58, 4  ;;  %v12962_v1 = vld [vmem:[#allocation147_spill] sm:$0xff] }
 0x2d8   : > { %v3704_v45 = vsel %vm3295_vm3, %v12950_v54, %v12949_v27  ;;  %v4033_v6 = vrot.slane %v6204_v36, 4  ;;  %v4783_v15 = vadd.f32 %v4751_v35, %v4719_v25  ;;  %v12954_v13 = vrot.slane %v12939_v30, 4  ;;  %v12957_v25 = vld [vmem:[#allocation137_spill] sm:$0xff] }
 0x2d9   : > { %v3709_v50 = vsel %vm3295_vm3, %v12952_v42, %v12951_v14  ;;  %v3905_v24 = vmax.f32 %v3256_v19, %v3704_v45  ;;  %v4029_v37 = vsel %vm3944_vm4, %v4026_v20, %v12953_v28  ;;  %v12955_v7 = vrot.slane %v12891_v63, 4  ;;  %v12968_v28 = vld [vmem:[#allocation143_spill] sm:$0xff] }
 0x2da   : > { %v3907_v38 = vmax.f32 %v3258_v12, %v3709_v50  ;;  %v4230_v0 = vadd.f32 %v4029_v37, %v3581_v57  ;;  %v4034_v23 = vsel %vm3944_vm4, %v4031_v49, %v4033_v6  ;;  %v12956_v58 = vrot.slane %v12942_v32, 4  ;;  %6012 = vmatprep.mubr.msk.f32.mxu1 %vm4794_vm5, %v4783_v15  ;;  %v12960_v49 = vld [vmem:[#allocation36_spill] sm:$0xff]  ;;  %v12971_v15 = vld [vmem:[#allocation142_spill] sm:$0xff] }
 0x2db   : > { %v4353_v11 = vsel %vm3944_vm4, %v12955_v7, %v12954_v13  ;;  %v12958_v19 = vrot.slane %v12957_v25, 1  ;;  %v12959_v12 = vrot.slane %v12909_v44, 1  ;;  %v4232_v63 = vadd.f32 %v4034_v23, %v3583_v33 }
 0x2dc   : > { %v4358_v8 = vsel %vm3944_vm4, %v4355_v22, %v12956_v58  ;;  %v4554_v20 = vmax.f32 %v3905_v24, %v4353_v11  ;;  %v4608_v51 = vadd.f32 %v4230_v0, %v10677_v16  ;;  %v12961_v56 = vrot.slane %v12960_v49, 1 }
 0x2dd   : > { %v2064_v30 = vsel %vm1889_vm2, %v12959_v12, %v12958_v19  ;;  %v4556_v34 = vmax.f32 %v3907_v38, %v4358_v8  ;;  %v2645_v35 = vmax.f32 %v12917_v59, %v12962_v1  ;;  %v12963_v33 = vrot.slane %v12957_v25, 2 }
 0x2de   : > { %v2069_v47 = vsel %vm1889_vm2, %v2066_v2, %v12961_v56  ;;  %v4672_v22 = vmax.f32 %v10679_v18, %v4554_v20  ;;  %v2211_v32 = vadd.f32 %v10873_v39, %v2064_v30  ;;  %v4640_v57 = vadd.f32 %v4608_v51, %v4232_v63  ;;  %v12965_v2 = vld [vmem:[#allocation138_spill] sm:$0xff] }
 0x2df   : > { %v2213_v44 = vadd.f32 %v10852_v4, %v2069_v47  ;;  %v2821_v16 = vsel %vm283_vm1, %v2818_v48, %v12963_v33  ;;  %v12964_v27 = vrot.slane %v12960_v49, 2  ;;  %v12966_v54 = vrot.slane %v12965_v2, 2 }
 0x2e0   : > { %v12967_v45 = vrot.slane %v12913_v52, 2  ;;  %v4704_v42 = vmax.f32 %v4672_v22, %v4556_v34  ;;  %v2968_v50 = vadd.f32 %v2821_v16, %v2211_v32  ;;  %v12969_v37 = vrot.slane %v12968_v28, 2  ;;  %v6205_v22 = vld [vmem:[#allocation7 + $0x3a0] sm:$0xf] }
 0x2e1   : > { %v2826_v18 = vsel %vm283_vm1, %v2823_v9, %v12964_v27  ;;  %v12970_v36 = vrot.slane %v12917_v59, 2  ;;  %v4736_v6 = vmul.f32 0.06666667, %v4640_v57  ;;  %v12972_v38 = vmax.f32 %v12913_v52, %v12971_v15  ;;  %v5978_v15 = vpop.f32.mrb[6].mxu0 }
 0x2e2   : > { %v3145_v14 = vsel %vm283_vm1, %v12967_v45, %v12966_v54  ;;  %v2970_v24 = vadd.f32 %v2826_v18, %v2213_v44  ;;  %v12973_v13 = vrot.slane %v12957_v25, 3  ;;  %v12974_v11 = vrot.slane %v12960_v49, 3 }
 0x2e3   : > { %v3150_v48 = vsel %vm283_vm1, %v12970_v36, %v12969_v37  ;;  %v3292_v9 = vmax.f32 %v12972_v38, %v3145_v14  ;;  %v12975_v8 = vrot.slane %v12965_v2, 3  ;;  %v12976_v20 = vrot.slane %v12913_v52, 3 }
 0x2e4   : > { %v3294_v0 = vmax.f32 %v2645_v35, %v3150_v48  ;;  %v3470_v7 = vsel %vm3295_vm3, %v3467_v61, %v12973_v13  ;;  %v3475_v23 = vsel %vm3295_vm3, %v3472_v43, %v12974_v11  ;;  %v12977_v12 = vrot.slane %v12968_v28, 3  ;;  %v11074_v61 = vld [vmem:[%s11661_s2] ss:$0 sm:$0xff] }
 0x2e5   : > { %v3617_v58 = vadd.f32 %v3470_v7, %v2968_v50  ;;  %v3794_v19 = vsel %vm3295_vm3, %v12976_v20, %v12975_v8  ;;  %v12978_v30 = vrot.slane %v12917_v59, 3  ;;  %v4768_v34 = vadd.f32 %v4736_v6, %v4704_v42 }
 0x2e6   : > { %v3619_v43 = vadd.f32 %v3475_v23, %v2970_v24  ;;  %v3941_v51 = vmax.f32 %v3292_v9, %v3794_v19  ;;  %v12979_v56 = vrot.slane %v12957_v25, 4  ;;  %v4123_v32 = vrot.slane %v6205_v22, 4  ;;  %v4987_v9 = vpop.f32.mrb[7].mxu0 }
 0x2e7   : > { %v3799_v63 = vsel %vm3295_vm3, %v12978_v30, %v12977_v12  ;;  %v12980_v44 = vrot.slane %v12965_v2, 4  ;;  %v12981_v1 = vrot.slane %v12913_v52, 4  ;;  %v12982_v57 = vrot.slane %v12968_v28, 4  ;;  %5989 = vmatmul.mubr.msk.f32.gmra.mrb[14].mxu0 %vm4794_vm5, %v4768_v34 }
 0x2e8   : > { %v3943_v49 = vmax.f32 %v3294_v0, %v3799_v63  ;;  %v4119_v47 = vsel %vm3944_vm4, %v4116_v53, %v12979_v56  ;;  %v12983_v33 = vrot.slane %v12917_v59, 4  ;;  %v11094_v53 = vadd.f32 %v10174_v10, %v11074_v61 }
 0x2e9   : > { %v4443_v35 = vsel %vm3944_vm4, %v12981_v1, %v12980_v44  ;;  %v4266_v25 = vadd.f32 %v4119_v47, %v3617_v58  ;;  %v12984_v18 = vrot.slane %v10852_v4, 4  ;;  %v11101_v2 = vadd.f32 %v10176_v3, %v11074_v61 }
 0x2ea   : > { %v4448_v16 = vsel %vm3944_vm4, %v12983_v33, %v12982_v57  ;;  %v4590_v39 = vmax.f32 %v3941_v51, %v4443_v35  ;;  %v11107_v14 = vadd.f32 %v11074_v61, %v10182_v46  ;;  %v11111_v10 = vadd.f32 %v11074_v61, %v10184_v55 }
 0x2eb   : > { %v4592_v27 = vmax.f32 %v3943_v49, %v4448_v16  ;;  %v4124_v52 = vsel %vm3944_vm4, %v12984_v18, %v4123_v32  ;;  %v4624_v54 = vadd.f32 %v4266_v25, %v10766_v40  ;;  %v5168_v4 = vsel %vm5116_vm6, %v11101_v2, 0.0 }
 0x2ec   : > { %v4268_v59 = vadd.f32 %v4124_v52, %v3619_v43  ;;  %v4688_v45 = vmax.f32 %v10753_v31, %v4590_v39  ;;  %v5120_v3 = vsel %vm5116_vm6, %v11094_v53, 0.0  ;;  %5169 = vadd.xlane.f32.xlu1 %v5168_v4  ;;  %v11119_v31 = vadd.f32 %v10314_v26, %v11074_v61 }
 0x2ed   : > { %5121 = vadd.xlane.f32.xlu0 %v5120_v3  ;;  %v11123_v46 = vadd.f32 %v11074_v61, %v10328_v62  ;;  %v5165_v40 = vsel %vm5116_vm6, %v11111_v10, 0.0  ;;  %v5117_v24 = vsel %vm5116_vm6, %v11107_v14, 0.0  ;;  %v11136_v62 = vadd.f32 %v10391_v17, %v11074_v61 }
 0x2ee   : > { %v4656_v42 = vadd.f32 %v4624_v54, %v4268_v59  ;;  %v4720_v50 = vmax.f32 %v4688_v45, %v4592_v27  ;;  %v5126_v37 = vsel %vm5116_vm6, %v11119_v31, 0.0  ;;  %v11140_v36 = vadd.f32 %v11074_v61, %v10408_v21 }
 0x2ef   : > { %v5123_v26 = vsel %vm5116_vm6, %v11123_v46, 0.0  ;;  %v11144_v48 = vadd.f32 %v10849_v41, %v11074_v61  ;;  %v11148_v6 = vadd.f32 %v11074_v61, %v10855_v29  ;;  %v5174_v38 = vsel %vm5116_vm6, %v11136_v62, 0.0 }
 0x2f0   : > { %v4752_v55 = vmul.f32 0.06666667, %v4656_v42  ;;  %5118 = vadd.xlane.f32.xlu1 %v5117_v24  ;;  %v5171_v17 = vsel %vm5116_vm6, %v11140_v36, 0.0  ;;  %v11160_v29 = vadd.f32 %v10913_v5, %v11074_v61  ;;  %v11164_v0 = vadd.f32 %v11074_v61, %v10921_v60  ;;  %v6002_v5 = vpop.f32.mrb[6].mxu1 }
 0x2f1   : > { %5166 = vadd.xlane.f32.xlu0 %v5165_v40  ;;  %v5132_v21 = vsel %vm5116_vm6, %v11144_v48, 0.0  ;;  %v5129_v41 = vsel %vm5116_vm6, %v11148_v6, 0.0  ;;  %v11167_v13 = vadd.f32 %v5978_v15, %v11074_v61  ;;  %v11170_v7 = vadd.f32 %v11074_v61, %v4987_v9  ;;  %v5067_v58 = vpop.f32.mrb[7].mxu1 }
 0x2f2   : > { %v4784_v28 = vadd.f32 %v4752_v55, %v4720_v50  ;;  %v5180_v11 = vsel %vm5116_vm6, %v11160_v29, 0.0  ;;  %v5177_v23 = vsel %vm5116_vm6, %v11164_v0, 0.0  ;;  %v11181_v20 = vadd.f32 %v6002_v5, %v11074_v61 }
 0x2f3   : > { %v5138_v60 = vsel %vm5116_vm6, %v11167_v13, 0.0  ;;  %v5135_v8 = vsel %vm5116_vm6, %v11170_v7, 0.0  ;;  %v11184_v19 = vadd.f32 %v11074_v61, %v5067_v58 }
 0x2f4   : > { %6013 = vmatmul.mubr.msk.f32.gmra.mrb[14].mxu1 %vm4794_vm5, %v4784_v28  ;;  %5127 = vadd.xlane.f32.xlu1 %v5126_v37  ;;  %v5186_v12 = vsel %vm5116_vm6, %v11181_v20, 0.0 }
 0x2f5   : > { %5124 = vadd.xlane.f32.xlu0 %v5123_v26  ;;  %v5183_v30 = vsel %vm5116_vm6, %v11184_v19, 0.0 }
 0x2f8   : > { %5175 = vadd.xlane.f32.xlu1 %v5174_v38 }
 0x2f9   : > { %5172 = vadd.xlane.f32.xlu0 %v5171_v17 }
 0x2fa   : > { %v5981_v63 = vpop.f32.mrb[8].mxu0 }
 0x2fb   : > { %v11191_v34 = vadd.f32 %v5981_v63, %v11074_v61  ;;  %v4997_v43 = vpop.f32.mrb[9].mxu0 }
 0x2fc   : > { %5133 = vadd.xlane.f32.xlu1 %v5132_v21  ;;  %v11194_v51 = vadd.f32 %v11074_v61, %v4997_v43 }
 0x2fd   : > { %5130 = vadd.xlane.f32.xlu0 %v5129_v41  ;;  %v5144_v49 = vsel %vm5116_vm6, %v11191_v34, 0.0 }
 0x2fe   : > { %v5141_v56 = vsel %vm5116_vm6, %v11194_v51, 0.0 }
 0x300   : > { %5181 = vadd.xlane.f32.xlu1 %v5180_v11 }
 0x301   : > { %5178 = vadd.xlane.f32.xlu0 %v5177_v23 }
 0x304   : > { %5139 = vadd.xlane.f32.xlu1 %v5138_v60 }
 0x305   : > { %5136 = vadd.xlane.f32.xlu0 %v5135_v8 }
 0x308   : > { %5187 = vadd.xlane.f32.xlu1 %v5186_v12 }
 0x309   : > { %5184 = vadd.xlane.f32.xlu0 %v5183_v30 }
 0x30b   : > { %v6005_v47 = vpop.f32.mrb[8].mxu1 }
 0x30c   : > { %5145 = vadd.xlane.f32.xlu1 %v5144_v49  ;;  %v5077_v22 = vpop.f32.mrb[9].mxu1  ;;  %v11201_v32 = vadd.f32 %v6005_v47, %v11074_v61 }
 0x30d   : > { %5142 = vadd.xlane.f32.xlu0 %v5141_v56  ;;  %v11204_v44 = vadd.f32 %v11074_v61, %v5077_v22 }
 0x30e   : > { %v5192_v1 = vsel %vm5116_vm6, %v11201_v32, 0.0 }
 0x30f   : > { %v5189_v35 = vsel %vm5116_vm6, %v11204_v44, 0.0 }
 0x310   : > { %5193 = vadd.xlane.f32.xlu1 %v5192_v1 }
 0x311   : > { %5190 = vadd.xlane.f32.xlu0 %v5189_v35 }
 0x33c   : > { %v5984_v57 = vpop.f32.mrb[10].mxu0 }
 0x33d   : > { %v11211_v33 = vadd.f32 %v5984_v57, %v11074_v61  ;;  %v5007_v16 = vpop.f32.mrb[11].mxu0 }
 0x33e   : > { %v11214_v25 = vadd.f32 %v11074_v61, %v5007_v16 }
 0x33f   : > { %v5150_v39 = vsel %vm5116_vm6, %v11211_v33, 0.0 }
 0x340   : > { %5151 = vadd.xlane.f32.xlu1 %v5150_v39  ;;  %v5147_v27 = vsel %vm5116_vm6, %v11214_v25, 0.0 }
 0x341   : > { %5148 = vadd.xlane.f32.xlu0 %v5147_v27 }
 0x34a   : > { %v6008_v18 = vpop.f32.mrb[10].mxu1 }
 0x34b   : > { %v11221_v52 = vadd.f32 %v6008_v18, %v11074_v61  ;;  %v5087_v59 = vpop.f32.mrb[11].mxu1 }
 0x34c   : > { %v11224_v54 = vadd.f32 %v11074_v61, %v5087_v59 }
 0x34d   : > { %v5198_v45 = vsel %vm5116_vm6, %v11221_v52, 0.0 }
 0x34e   : > { %5199 = vadd.xlane.f32.xlu1 %v5198_v45  ;;  %v5195_v4 = vsel %vm5116_vm6, %v11224_v54, 0.0 }
 0x34f   : > { %5196 = vadd.xlane.f32.xlu0 %v5195_v4 }
 0x379   : > { %v5170_v9 = vpop.xlane.xlu1 %5169 }
 0x37a   : > { %v5122_v21 = vpop.xlane.xlu0 %5121  ;;  %v5231_v57 = vmul.f32 0.03125, %v5170_v9 }
 0x37b   : > { %v5987_v3 = vpop.f32.mrb[12].mxu0  ;;  %v5215_v63 = vmul.f32 0.03125, %v5122_v21 }
 0x37c   : > { %v11231_v42 = vadd.f32 %v5987_v3, %v11074_v61  ;;  %v5017_v50 = vpop.f32.mrb[13].mxu0 }
 0x37d   : > { %v11234_v55 = vadd.f32 %v11074_v61, %v5017_v50  ;;  %v5119_v41 = vpop.xlane.xlu1 %5118  ;;  %v11261_v22 = vsub.f32 %v11094_v53, %v5215_v63 }
 0x37e   : > { %v5156_v40 = vsel %vm5116_vm6, %v11231_v42, 0.0  ;;  %v5167_v11 = vpop.xlane.xlu0 %5166  ;;  %v5214_v49 = vmul.f32 0.03125, %v5119_v41 }
 0x37f   : > { %5157 = vadd.xlane.f32.xlu1 %v5156_v40  ;;  %v5153_v24 = vsel %vm5116_vm6, %v11234_v55, 0.0  ;;  %v5230_v27 = vmul.f32 0.03125, %v5167_v11  ;;  %v5279_v45 = vmul.f32 %v11261_v22, %v11261_v22  ;;  %v11279_v40 = vsub.f32 %v11101_v2, %v5231_v57 }
 0x380   : > { %5154 = vadd.xlane.f32.xlu0 %v5153_v24  ;;  %v11264_v1 = vsub.f32 %v11107_v14, %v5214_v49 }
 0x381   : > { %v5128_v23 = vpop.xlane.xlu1 %5127  ;;  %v5295_v11 = vmul.f32 %v11279_v40, %v11279_v40 }
 0x382   : > { %v5125_v5 = vpop.xlane.xlu0 %5124  ;;  %v5217_v4 = vmul.f32 0.03125, %v5128_v23  ;;  %v5278_v53 = vmul.f32 %v11264_v1, %v11264_v1 }
 0x383   : > { %v5216_v14 = vmul.f32 0.03125, %v5125_v5 }
 0x384   : > { %v5310_v21 = vsel %vm5116_vm6, %v5278_v53, 0.0 }
 0x385   : > { %v5176_v56 = vpop.xlane.xlu1 %5175  ;;  %v11292_v2 = vsub.f32 %v11123_v46, %v5216_v14 }
 0x386   : > { %v5173_v47 = vpop.xlane.xlu0 %5172 }
 0x387   : > { %v5232_v41 = vmul.f32 0.03125, %v5173_v47 }
 0x388   : > { %v6011_v28 = vpop.f32.mrb[12].mxu1 }
 0x389   : > { %v11241_v37 = vadd.f32 %v6011_v28, %v11074_v61  ;;  %v5097_v26 = vpop.f32.mrb[13].mxu1  ;;  %v5134_v35 = vpop.xlane.xlu1 %5133  ;;  %v11284_v28 = vsub.f32 %v11111_v10, %v5230_v27  ;;  %v11304_v46 = vsub.f32 %v11140_v36, %v5232_v41 }
 0x38a   : > { %v11244_v15 = vadd.f32 %v11074_v61, %v5097_v26  ;;  %v5131_v16 = vpop.xlane.xlu0 %5130 }
 0x38b   : > { %v5204_v38 = vsel %vm5116_vm6, %v11241_v37, 0.0  ;;  %v5294_v10 = vmul.f32 %v11284_v28, %v11284_v28  ;;  %v5218_v63 = vmul.f32 0.03125, %v5131_v16  ;;  %v5296_v16 = vmul.f32 %v11304_v46, %v11304_v46 }
 0x38c   : > { %5205 = vadd.xlane.f32.xlu1 %v5204_v38  ;;  %v5201_v17 = vsel %vm5116_vm6, %v11244_v15, 0.0  ;;  %v11288_v38 = vsub.f32 %v11119_v31, %v5217_v4 }
 0x38d   : > { %5202 = vadd.xlane.f32.xlu0 %v5201_v17  ;;  %v5182_v26 = vpop.xlane.xlu1 %5181  ;;  %v5233_v17 = vmul.f32 0.03125, %v5176_v56  ;;  %v5358_v49 = vsel %vm5116_vm6, %v5294_v10, 0.0  ;;  %v11318_v57 = vsub.f32 %v11148_v6, %v5218_v63  ;;  %v5364_v6 = vsel %vm5116_vm6, %v5296_v16, 0.0 }
 0x38e   : > { %v5179_v9 = vpop.xlane.xlu0 %5178  ;;  %v5281_v5 = vmul.f32 %v11288_v38, %v11288_v38  ;;  %v5235_v36 = vmul.f32 0.03125, %v5182_v26 }
 0x38f   : > { %v11299_v31 = vsub.f32 %v11136_v62, %v5233_v17 }
 0x390   : > { %v5319_v62 = vsel %vm5116_vm6, %v5281_v5, 0.0  ;;  %v11324_v4 = vsub.f32 %v11160_v29, %v5235_v36 }
 0x391   : > { %v5140_v23 = vpop.xlane.xlu1 %5139  ;;  %v5297_v56 = vmul.f32 %v11299_v31, %v11299_v31 }
 0x392   : > { %v5221_v53 = vmul.f32 0.03125, %v5140_v23  ;;  %v5299_v29 = vmul.f32 %v11324_v4, %v11324_v4 }
 0x394   : > { %v11338_v17 = vsub.f32 %v11167_v13, %v5221_v53  ;;  %v5373_v23 = vsel %vm5116_vm6, %v5299_v29, 0.0 }
 0x395   : > { %v5188_v27 = vpop.xlane.xlu1 %5187 }
 0x396   : > { %v5285_v13 = vmul.f32 %v11338_v17, %v11338_v17 }
 0x399   : > { %v5146_v26 = vpop.xlane.xlu1 %5145 }
 0x3ba   : > { %v5990_v58 = vpop.f32.mrb[14].mxu0 }
 0x3bb   : > { %v11251_v60 = vadd.f32 %v5990_v58, %v11074_v61  ;;  %v5027_v8 = vpop.f32.mrb[15].mxu0  ;;  %v5219_v58 = vmul.f32 0.03125, %v5134_v35 }
 0x3bc   : > { %v11254_v12 = vadd.f32 %v11074_v61, %v5027_v8  ;;  %v5137_v8 = vpop.xlane.xlu0 %5136 }
 0x3bd   : > { %v5162_v30 = vsel %vm5116_vm6, %v11251_v60, 0.0  ;;  %v11314_v47 = vsub.f32 %v11144_v48, %v5219_v58  ;;  %v5223_v58 = vmul.f32 0.03125, %v5146_v26 }
 0x3be   : > { %5163 = vadd.xlane.f32.xlu1 %v5162_v30  ;;  %v5159_v43 = vsel %vm5116_vm6, %v11254_v12, 0.0  ;;  %v5280_v30 = vmul.f32 %v11292_v2, %v11292_v2 }
 0x3bf   : > { %5160 = vadd.xlane.f32.xlu0 %v5159_v43  ;;  %v5361_v43 = vsel %vm5116_vm6, %v5295_v11, 0.0  ;;  %v5283_v48 = vmul.f32 %v11314_v47, %v11314_v47 }
 0x3c0   : > { %v5316_v35 = vsel %vm5116_vm6, %v5280_v30, 0.0 }
 0x3c7   : > { %v6014_v39 = vpop.f32.mrb[14].mxu1 }
 0x3c8   : > { %v11267_v18 = vadd.f32 %v6014_v39, %v11074_v61  ;;  %v5107_v59 = vpop.f32.mrb[15].mxu1  ;;  %v5234_v39 = vmul.f32 0.03125, %v5179_v9  ;;  %v5237_v9 = vmul.f32 0.03125, %v5188_v27 }
 0x3c9   : > { %v11272_v3 = vadd.f32 %v11074_v61, %v5107_v59  ;;  %v5313_v61 = vsel %vm5116_vm6, %v5279_v45, 0.0  ;;  %v5185_v59 = vpop.xlane.xlu0 %5184  ;;  %v5367_v45 = vsel %vm5116_vm6, %v5297_v56, 0.0 }
 0x3ca   : > { %v5210_v50 = vsel %vm5116_vm6, %v11267_v18, 0.0  ;;  %v11330_v14 = vsub.f32 %v11164_v0, %v5234_v39  ;;  %v5236_v10 = vmul.f32 0.03125, %v5185_v59  ;;  %v11348_v5 = vsub.f32 %v11181_v20, %v5237_v9 }
 0x3cb   : > { %5211 = vadd.xlane.f32.xlu1 %v5210_v50  ;;  %v5207_v24 = vsel %vm5116_vm6, %v11272_v3, 0.0  ;;  %v5282_v50 = vmul.f32 %v11318_v57, %v11318_v57  ;;  %v5331_v20 = vsel %vm5116_vm6, %v5285_v13, 0.0 }
 0x3cc   : > { %5208 = vadd.xlane.f32.xlu0 %v5207_v24  ;;  %v5220_v24 = vmul.f32 0.03125, %v5137_v8  ;;  %v5298_v11 = vmul.f32 %v11330_v14, %v11330_v14  ;;  %v5301_v56 = vmul.f32 %v11348_v5, %v11348_v5 }
 0x3cd   : > { %v5322_v0 = vsel %vm5116_vm6, %v5282_v50, 0.0 }
 0x3ce   : > { %v11342_v41 = vsub.f32 %v11170_v7, %v5220_v24  ;;  %v5370_v8 = vsel %vm5116_vm6, %v5298_v11, 0.0  ;;  %v11354_v7 = vsub.f32 %v11184_v19, %v5236_v10  ;;  %v5379_v27 = vsel %vm5116_vm6, %v5301_v56, 0.0 }
 0x3cf   : > { %5314 = vadd.xlane.f32.xlu1 %v5313_v61  ;;  %v5325_v61 = vsel %vm5116_vm6, %v5283_v48, 0.0 }
 0x3d0   : > { %5311 = vadd.xlane.f32.xlu0 %v5310_v21  ;;  %v5143_v21 = vpop.xlane.xlu0 %5142  ;;  %v5284_v63 = vmul.f32 %v11342_v41, %v11342_v41  ;;  %v5300_v39 = vmul.f32 %v11354_v7, %v11354_v7 }
 0x3d1   : > { %v5222_v30 = vmul.f32 0.03125, %v5143_v21 }
 0x3d3   : > { %5362 = vadd.xlane.f32.xlu1 %v5361_v43  ;;  %v5194_v43 = vpop.xlane.xlu1 %5193  ;;  %v11365_v19 = vsub.f32 %v11194_v51, %v5222_v30  ;;  %v5376_v51 = vsel %vm5116_vm6, %v5300_v39, 0.0 }
 0x3d4   : > { %5359 = vadd.xlane.f32.xlu0 %v5358_v49  ;;  %v5191_v49 = vpop.xlane.xlu0 %5190  ;;  %v5239_v36 = vmul.f32 0.03125, %v5194_v43 }
 0x3d5   : > { %v5238_v16 = vmul.f32 0.03125, %v5191_v49  ;;  %v5286_v48 = vmul.f32 %v11365_v19, %v11365_v19 }
 0x3d7   : > { %5320 = vadd.xlane.f32.xlu1 %v5319_v62  ;;  %v11360_v62 = vsub.f32 %v11191_v34, %v5223_v58  ;;  %v11372_v34 = vsub.f32 %v11201_v32, %v5239_v36  ;;  %v5334_v32 = vsel %vm5116_vm6, %v5286_v48, 0.0  ;;  %v5152_v26 = vpop.xlane.xlu1 %5151 }
 0x3d8   : > { %5317 = vadd.xlane.f32.xlu0 %v5316_v35  ;;  %v5328_v35 = vsel %vm5116_vm6, %v5284_v63, 0.0  ;;  %v5149_v29 = vpop.xlane.xlu0 %5148 }
 0x3d9   : > { %v5287_v59 = vmul.f32 %v11360_v62, %v11360_v62  ;;  %v5224_v9 = vmul.f32 0.03125, %v5149_v29 }
 0x3db   : > { %5368 = vadd.xlane.f32.xlu1 %v5367_v45  ;;  %v11377_v45 = vsub.f32 %v11204_v44, %v5238_v16  ;;  %v5337_v53 = vsel %vm5116_vm6, %v5287_v59, 0.0  ;;  %v5200_v58 = vpop.xlane.xlu1 %5199 }
 0x3dc   : > { %5365 = vadd.xlane.f32.xlu0 %v5364_v6  ;;  %v5303_v6 = vmul.f32 %v11372_v34, %v11372_v34  ;;  %v5197_v30 = vpop.xlane.xlu0 %5196 }
 0x3dd   : > { %v5302_v50 = vmul.f32 %v11377_v45, %v11377_v45 }
 0x3de   : > { %v5385_v44 = vsel %vm5116_vm6, %v5303_v6, 0.0 }
 0x3df   : > { %5326 = vadd.xlane.f32.xlu1 %v5325_v61  ;;  %v5382_v24 = vsel %vm5116_vm6, %v5302_v50, 0.0  ;;  %v5225_v61 = vmul.f32 0.03125, %v5152_v26 }
 0x3e0   : > { %5323 = vadd.xlane.f32.xlu0 %v5322_v0  ;;  %v11394_v0 = vsub.f32 %v11214_v25, %v5224_v9 }
 0x3e1   : > { %v11391_v21 = vsub.f32 %v11211_v33, %v5225_v61  ;;  %v5240_v33 = vmul.f32 0.03125, %v5197_v30 }
 0x3e2   : > { %v5288_v10 = vmul.f32 %v11394_v0, %v11394_v0 }
 0x3e3   : > { %5374 = vadd.xlane.f32.xlu1 %v5373_v23  ;;  %v5289_v11 = vmul.f32 %v11391_v21, %v11391_v21  ;;  %v11406_v25 = vsub.f32 %v11224_v54, %v5240_v33 }
 0x3e4   : > { %5371 = vadd.xlane.f32.xlu0 %v5370_v8  ;;  %v5340_v13 = vsel %vm5116_vm6, %v5288_v10, 0.0  ;;  %v5241_v8 = vmul.f32 0.03125, %v5200_v58 }
 0x3e5   : > { %v5343_v23 = vsel %vm5116_vm6, %v5289_v11, 0.0  ;;  %v5304_v49 = vmul.f32 %v11406_v25, %v11406_v25 }
 0x3e6   : > { %v11403_v63 = vsub.f32 %v11221_v52, %v5241_v8 }
 0x3e7   : > { %5332 = vadd.xlane.f32.xlu1 %v5331_v20  ;;  %v5388_v56 = vsel %vm5116_vm6, %v5304_v49, 0.0 }
 0x3e8   : > { %5329 = vadd.xlane.f32.xlu0 %v5328_v35  ;;  %v5305_v43 = vmul.f32 %v11403_v63, %v11403_v63 }
 0x3ea   : > { %v5391_v20 = vsel %vm5116_vm6, %v5305_v43, 0.0 }
 0x3eb   : > { %5380 = vadd.xlane.f32.xlu1 %v5379_v27 }
 0x3ec   : > { %5377 = vadd.xlane.f32.xlu0 %v5376_v51 }
 0x3ef   : > { %5338 = vadd.xlane.f32.xlu1 %v5337_v53 }
 0x3f0   : > { %5335 = vadd.xlane.f32.xlu0 %v5334_v32 }
 0x3f3   : > { %5386 = vadd.xlane.f32.xlu1 %v5385_v44 }
 0x3f4   : > { %5383 = vadd.xlane.f32.xlu0 %v5382_v24 }
 0x3f7   : > { %5344 = vadd.xlane.f32.xlu1 %v5343_v23 }
 0x3f8   : > { %5341 = vadd.xlane.f32.xlu0 %v5340_v13 }
 0x3fb   : > { %5392 = vadd.xlane.f32.xlu1 %v5391_v20 }
 0x3fc   : > { %5389 = vadd.xlane.f32.xlu0 %v5388_v56 }
 0x40c   : > { %v5158_v36 = vpop.xlane.xlu1 %5157 }
 0x40d   : > { %v5227_v35 = vmul.f32 0.03125, %v5158_v36  ;;  %v5155_v16 = vpop.xlane.xlu0 %5154 }
 0x40e   : > { %v5226_v52 = vmul.f32 0.03125, %v5155_v16 }
 0x40f   : > { %v11415_v39 = vsub.f32 %v11231_v42, %v5227_v35 }
 0x410   : > { %v11418_v54 = vsub.f32 %v11234_v55, %v5226_v52 }
 0x411   : > { %v5291_v27 = vmul.f32 %v11415_v39, %v11415_v39 }
 0x412   : > { %v5290_v59 = vmul.f32 %v11418_v54, %v11418_v54 }
 0x413   : > { %v5349_v51 = vsel %vm5116_vm6, %v5291_v27, 0.0 }
 0x414   : > { %5350 = vadd.xlane.f32.xlu1 %v5349_v51  ;;  %v5346_v48 = vsel %vm5116_vm6, %v5290_v59, 0.0 }
 0x415   : > { %5347 = vadd.xlane.f32.xlu0 %v5346_v48 }
 0x419   : > { %v5206_v53 = vpop.xlane.xlu1 %5205 }
 0x41a   : > { %v5243_v6 = vmul.f32 0.03125, %v5206_v53  ;;  %v5203_v32 = vpop.xlane.xlu0 %5202 }
 0x41b   : > { %v5242_v42 = vmul.f32 0.03125, %v5203_v32 }
 0x41c   : > { %v11427_v50 = vsub.f32 %v11241_v37, %v5243_v6 }
 0x41d   : > { %v11430_v55 = vsub.f32 %v11244_v15, %v5242_v42 }
 0x41e   : > { %v5307_v44 = vmul.f32 %v11427_v50, %v11427_v50 }
 0x41f   : > { %v5306_v24 = vmul.f32 %v11430_v55, %v11430_v55 }
 0x420   : > { %v5397_v26 = vsel %vm5116_vm6, %v5307_v44, 0.0 }
 0x421   : > { %5398 = vadd.xlane.f32.xlu1 %v5397_v26  ;;  %v5394_v61 = vsel %vm5116_vm6, %v5306_v24, 0.0 }
 0x422   : > { %5395 = vadd.xlane.f32.xlu0 %v5394_v61 }
 0x44b   : > { %v5164_v29 = vpop.xlane.xlu1 %5163 }
 0x44c   : > { %v5229_v9 = vmul.f32 0.03125, %v5164_v29  ;;  %v5161_v11 = vpop.xlane.xlu0 %5160 }
 0x44d   : > { %v5228_v37 = vmul.f32 0.03125, %v5161_v11 }
 0x44e   : > { %v11439_v10 = vsub.f32 %v11251_v60, %v5229_v9  ;;  %v11469_v9 = vld [vmem:[%s11662_s3] ss:$0 sm:$0xff] }
 0x44f   : > { %v11442_v15 = vsub.f32 %v11254_v12, %v5228_v37 }
 0x450   : > { %v5293_v23 = vmul.f32 %v11439_v10, %v11439_v10 }
 0x451   : > { %v5292_v13 = vmul.f32 %v11442_v15, %v11442_v15 }
 0x452   : > { %v5355_v58 = vsel %vm5116_vm6, %v5293_v23, 0.0 }
 0x453   : > { %5356 = vadd.xlane.f32.xlu1 %v5355_v58  ;;  %v5352_v8 = vsel %vm5116_vm6, %v5292_v13, 0.0  ;;  %v11476_v13 = vld [vmem:[%s11663_s4] ss:$0 sm:$0xff] }
 0x454   : > { %5353 = vadd.xlane.f32.xlu0 %v5352_v8 }
 0x458   : > { %v5212_v30 = vpop.xlane.xlu1 %5211 }
 0x459   : > { %v5245_v33 = vmul.f32 0.03125, %v5212_v30  ;;  %v5209_v43 = vpop.xlane.xlu0 %5208 }
 0x45a   : > { %v5244_v60 = vmul.f32 0.03125, %v5209_v43 }
 0x45b   : > { %v11451_v49 = vsub.f32 %v11267_v18, %v5245_v33 }
 0x45c   : > { %v11454_v12 = vsub.f32 %v11272_v3, %v5244_v60  ;;  %v5315_v20 = vpop.xlane.xlu1 %5314 }
 0x45d   : > { %v5309_v56 = vmul.f32 %v11451_v49, %v11451_v49  ;;  %v5407_v36 = vmul.f32 0.03125, %v5315_v20  ;;  %v5312_v35 = vpop.xlane.xlu0 %5311 }
 0x45e   : > { %v5308_v16 = vmul.f32 %v11454_v12, %v11454_v12  ;;  %v5406_v52 = vmul.f32 0.03125, %v5312_v35 }
 0x45f   : > { %v5403_v27 = vsel %vm5116_vm6, %v5309_v56, 0.0  ;;  %v5439_v59 = vadd.f32 1e-05, %v5407_v36 }
 0x460   : > { %5404 = vadd.xlane.f32.xlu1 %v5403_v27  ;;  %v5400_v18 = vsel %vm5116_vm6, %v5308_v16, 0.0  ;;  %v5438_v51 = vadd.f32 1e-05, %v5406_v52  ;;  %v5363_v48 = vpop.xlane.xlu1 %5362 }
 0x461   : > { %5401 = vadd.xlane.f32.xlu0 %v5400_v18  ;;  %6032 = vrsqrt.f32 %v5439_v59  ;;  %v5360_v3 = vpop.xlane.xlu0 %5359  ;;  %v5423_v27 = vmul.f32 0.03125, %v5363_v48 }
 0x462   : > { %6034 = vrsqrt.f32 %v5438_v51  ;;  %v5422_v51 = vmul.f32 0.03125, %v5360_v3 }
 0x464   : > { %v5321_v53 = vpop.xlane.xlu1 %5320 }
 0x465   : > { %v5409_v6 = vmul.f32 0.03125, %v5321_v53  ;;  %v5318_v32 = vpop.xlane.xlu0 %5317 }
 0x466   : > { %v5408_v42 = vmul.f32 0.03125, %v5318_v32 }
 0x467   : > { %v5441_v44 = vadd.f32 1e-05, %v5409_v6 }
 0x468   : > { %v5440_v24 = vadd.f32 1e-05, %v5408_v42  ;;  %v11462_v26 = vpop.xlane.xlu1 %5368 }
 0x469   : > { %6036 = vrsqrt.f32 %v5441_v44  ;;  %v11464_v61 = vpop.xlane.xlu0 %5365 }
 0x46a   : > { %6038 = vrsqrt.f32 %v5440_v24 }
 0x46b   : > { %v6033_v29 = vpop.eup %6032 }
 0x46c   : > { %v6035_v11 = vpop.eup %6034  ;;  %v5503_v37 = vmul.f32 %v6033_v29, %v11261_v22  ;;  %v5327_v23 = vpop.xlane.xlu1 %5326 }
 0x46d   : > { %v5502_v58 = vmul.f32 %v6035_v11, %v11264_v1  ;;  %v5411_v8 = vmul.f32 0.03125, %v5327_v23  ;;  %v5324_v30 = vpop.xlane.xlu0 %5323  ;;  %v5455_v11 = vadd.f32 1e-05, %v5423_v27 }
 0x46e   : > { %v5542_v33 = vmul.f32 %v11469_v9, %v5503_v37  ;;  %v5410_v43 = vmul.f32 0.03125, %v5324_v30 }
 0x46f   : > { %v5541_v22 = vmul.f32 %v11469_v9, %v5502_v58  ;;  %v5443_v60 = vadd.f32 1e-05, %v5411_v8 }
 0x470   : > { %v5581_v20 = vadd.f32 %v11476_v13, %v5542_v33  ;;  %v5442_v56 = vadd.f32 1e-05, %v5410_v43  ;;  %v11487_v36 = vpop.xlane.xlu1 %5374 }
 0x471   : > { %v5580_v1 = vadd.f32 %v11476_v13, %v5541_v22  ;;  %6040 = vrsqrt.f32 %v5443_v60  ;;  %v11490_v35 = vpop.xlane.xlu0 %5371 }
 0x472   : > { %5613 = vst.msk [vmem:[%s11483_s11 + $0x8] sm:$0xff] %vm5116_vm6, %v5581_v20  ;;  %6042 = vrsqrt.f32 %v5442_v56 }
 0x473   : > { %v6037_v16 = vpop.eup %6036  ;;  %5612 = vst.msk [vmem:[%s11483_s11] sm:$0xff] %vm5116_vm6, %v5580_v1 }
 0x474   : > { %v6039_v52 = vpop.eup %6038  ;;  %v5505_v59 = vmul.f32 %v6037_v16, %v11288_v38  ;;  %v5333_v18 = vpop.xlane.xlu1 %5332  ;;  %v5454_v38 = vadd.f32 1e-05, %v5422_v51 }
 0x475   : > { %v5504_v53 = vmul.f32 %v6039_v52, %v11292_v2  ;;  %v5413_v6 = vmul.f32 0.03125, %v5333_v18  ;;  %v5330_v32 = vpop.xlane.xlu0 %5329 }
 0x476   : > { %v5544_v42 = vmul.f32 %v11469_v9, %v5505_v59  ;;  %v5412_v44 = vmul.f32 0.03125, %v5330_v32 }
 0x477   : > { %v5543_v24 = vmul.f32 %v11469_v9, %v5504_v53  ;;  %v5445_v29 = vadd.f32 1e-05, %v5413_v6  ;;  %v5424_v53 = vmul.f32 0.03125, %v11464_v61 }
 0x478   : > { %v5583_v37 = vadd.f32 %v11476_v13, %v5544_v42  ;;  %v5444_v48 = vadd.f32 1e-05, %v5412_v44  ;;  %v11501_v23 = vpop.xlane.xlu1 %5380 }
 0x479   : > { %v5582_v3 = vadd.f32 %v11476_v13, %v5543_v24  ;;  %6044 = vrsqrt.f32 %v5445_v29  ;;  %v11504_v2 = vpop.xlane.xlu0 %5377 }
 0x47a   : > { %5615 = vst.msk [vmem:[%s11483_s11 + $0x18] sm:$0xff] %vm5116_vm6, %v5583_v37  ;;  %6046 = vrsqrt.f32 %v5444_v48  ;;  %v5456_v48 = vadd.f32 1e-05, %v5424_v53 }
 0x47b   : > { %v6041_v58 = vpop.eup %6040  ;;  %5614 = vst.msk [vmem:[%s11483_s11 + $0x10] sm:$0xff] %vm5116_vm6, %v5582_v3  ;;  %6048 = vrsqrt.f32 %v5455_v11 }
 0x47c   : > { %v6043_v8 = vpop.eup %6042  ;;  %v5507_v30 = vmul.f32 %v6041_v58, %v11314_v47  ;;  %v5339_v33 = vpop.xlane.xlu1 %5338  ;;  %6050 = vrsqrt.f32 %v5454_v38  ;;  %v5425_v47 = vmul.f32 0.03125, %v11462_v26 }
 0x47d   : > { %v5506_v43 = vmul.f32 %v6043_v8, %v11318_v57  ;;  %v5415_v22 = vmul.f32 0.03125, %v5339_v33  ;;  %v5336_v60 = vpop.xlane.xlu0 %5335 }
 0x47e   : > { %v5546_v20 = vmul.f32 %v11469_v9, %v5507_v30  ;;  %v5414_v56 = vmul.f32 0.03125, %v5336_v60  ;;  %v5457_v26 = vadd.f32 1e-05, %v5425_v47 }
 0x47f   : > { %v5545_v1 = vmul.f32 %v11469_v9, %v5506_v43  ;;  %v5447_v16 = vadd.f32 1e-05, %v5415_v22 }
 0x480   : > { %v5585_v52 = vadd.f32 %v11476_v13, %v5546_v20  ;;  %v5446_v27 = vadd.f32 1e-05, %v5414_v56  ;;  %v5387_v59 = vpop.xlane.xlu1 %5386 }
 0x481   : > { %v5584_v18 = vadd.f32 %v11476_v13, %v5545_v1  ;;  %6052 = vrsqrt.f32 %v5447_v16  ;;  %v5431_v57 = vmul.f32 0.03125, %v5387_v59  ;;  %v5384_v51 = vpop.xlane.xlu0 %5383 }
 0x482   : > { %5617 = vst.msk [vmem:[%s11483_s11 + $0x28] sm:$0xff] %vm5116_vm6, %v5585_v52  ;;  %6054 = vrsqrt.f32 %v5446_v27  ;;  %v5430_v6 = vmul.f32 0.03125, %v5384_v51 }
 0x483   : > { %v6045_v32 = vpop.eup %6044  ;;  %5616 = vst.msk [vmem:[%s11483_s11 + $0x20] sm:$0xff] %vm5116_vm6, %v5584_v18  ;;  %v5463_v42 = vadd.f32 1e-05, %v5431_v57 }
 0x484   : > { %v6047_v44 = vpop.eup %6046  ;;  %v5509_v24 = vmul.f32 %v6045_v32, %v11338_v17  ;;  %v5462_v29 = vadd.f32 1e-05, %v5430_v6  ;;  %v5345_v30 = vpop.xlane.xlu1 %5344 }
 0x485   : > { %v5508_v11 = vmul.f32 %v6047_v44, %v11342_v41  ;;  %6056 = vrsqrt.f32 %v5463_v42  ;;  %v6049_v37 = vpop.eup %6048  ;;  %v5417_v33 = vmul.f32 0.03125, %v5345_v30  ;;  %v5342_v43 = vpop.xlane.xlu0 %5341 }
 0x486   : > { %v5548_v61 = vmul.f32 %v11469_v9, %v5509_v24  ;;  %6058 = vrsqrt.f32 %v5462_v29  ;;  %v6051_v38 = vpop.eup %6050  ;;  %v5519_v8 = vmul.f32 %v6049_v37, %v11279_v40  ;;  %v5416_v60 = vmul.f32 0.03125, %v5342_v43 }
 0x487   : > { %v5547_v3 = vmul.f32 %v11469_v9, %v5508_v11  ;;  %6060 = vrsqrt.f32 %v5457_v26  ;;  %v5518_v41 = vmul.f32 %v6051_v38, %v11284_v28  ;;  %v5449_v1 = vadd.f32 1e-05, %v5417_v33 }
 0x488   : > { %v5587_v58 = vadd.f32 %v11476_v13, %v5548_v61  ;;  %6062 = vrsqrt.f32 %v5456_v48  ;;  %v5558_v40 = vmul.f32 %v11469_v9, %v5519_v8  ;;  %v5448_v52 = vadd.f32 1e-05, %v5416_v60  ;;  %v5393_v44 = vpop.xlane.xlu1 %5392 }
 0x489   : > { %v5586_v17 = vadd.f32 %v11476_v13, %v5547_v3  ;;  %v5557_v28 = vmul.f32 %v11469_v9, %v5518_v41  ;;  %6064 = vrsqrt.f32 %v5449_v1  ;;  %v5433_v29 = vmul.f32 0.03125, %v5393_v44  ;;  %v5390_v26 = vpop.xlane.xlu0 %5389 }
 0x48a   : > { %5619 = vst.msk [vmem:[%s11483_s11 + $0x38] sm:$0xff] %vm5116_vm6, %v5587_v58  ;;  %6066 = vrsqrt.f32 %v5448_v52  ;;  %v5432_v37 = vmul.f32 0.03125, %v5390_v26 }
 0x48b   : > { %v6053_v22 = vpop.eup %6052  ;;  %5618 = vst.msk [vmem:[%s11483_s11 + $0x30] sm:$0xff] %vm5116_vm6, %v5586_v17  ;;  %v5596_v6 = vadd.f32 %v11476_v13, %v5557_v28  ;;  %v5465_v61 = vadd.f32 1e-05, %v5433_v29 }
 0x48c   : > { %v6055_v20 = vpop.eup %6054  ;;  %v5511_v56 = vmul.f32 %v6053_v22, %v11360_v62  ;;  %v5464_v3 = vadd.f32 1e-05, %v5432_v37 }
 0x48d   : > { %v5510_v16 = vmul.f32 %v6055_v20, %v11365_v19  ;;  %v5597_v19 = vadd.f32 %v11476_v13, %v5558_v40  ;;  %5628 = vst.msk [vmem:[%s11483_s11 + $0x80] sm:$0xff] %vm5116_vm6, %v5596_v6  ;;  %6068 = vrsqrt.f32 %v5465_v61 }
 0x48e   : > { %v5550_v27 = vmul.f32 %v11469_v9, %v5511_v56  ;;  %6070 = vrsqrt.f32 %v5464_v3 }
 0x48f   : > { %v6057_v59 = vpop.eup %6056  ;;  %v5549_v47 = vmul.f32 %v11469_v9, %v5510_v16  ;;  %5629 = vst.msk [vmem:[%s11483_s11 + $0x88] sm:$0xff] %vm5116_vm6, %v5597_v19 }
 0x490   : > { %v6059_v62 = vpop.eup %6058  ;;  %v5589_v18 = vadd.f32 %v11476_v13, %v5550_v27  ;;  %v5527_v57 = vmul.f32 %v6057_v59, %v11372_v34  ;;  %v5427_v27 = vmul.f32 0.03125, %v11487_v36  ;;  %v5426_v59 = vmul.f32 0.03125, %v11490_v35 }
 0x491   : > { %v5588_v51 = vadd.f32 %v11476_v13, %v5549_v47  ;;  %v5526_v53 = vmul.f32 %v6059_v62, %v11377_v45  ;;  %v6061_v42 = vpop.eup %6060 }
 0x492   : > { %5621 = vst.msk [vmem:[%s11483_s11 + $0x48] sm:$0xff] %vm5116_vm6, %v5589_v18  ;;  %v5566_v32 = vmul.f32 %v11469_v9, %v5527_v57  ;;  %v6063_v24 = vpop.eup %6062  ;;  %v5521_v48 = vmul.f32 %v6061_v42, %v11299_v31  ;;  %v5459_v47 = vadd.f32 1e-05, %v5427_v27 }
 0x493   : > { %5620 = vst.msk [vmem:[%s11483_s11 + $0x40] sm:$0xff] %vm5116_vm6, %v5588_v51  ;;  %v5565_v34 = vmul.f32 %v11469_v9, %v5526_v53  ;;  %v5520_v38 = vmul.f32 %v6063_v24, %v11304_v46  ;;  %v6065_v58 = vpop.eup %6064 }
 0x494   : > { %v5605_v45 = vadd.f32 %v11476_v13, %v5566_v32  ;;  %v6067_v8 = vpop.eup %6066  ;;  %v5513_v17 = vmul.f32 %v6065_v58, %v11391_v21  ;;  %v5560_v31 = vmul.f32 %v11469_v9, %v5521_v48  ;;  %6072 = vrsqrt.f32 %v5459_v47 }
 0x495   : > { %v5604_v11 = vadd.f32 %v11476_v13, %v5565_v34  ;;  %v5512_v30 = vmul.f32 %v6067_v8, %v11394_v0  ;;  %v5559_v41 = vmul.f32 %v11469_v9, %v5520_v38 }
 0x496   : > { %5637 = vst.msk [vmem:[%s11483_s11 + $0xc8] sm:$0xff] %vm5116_vm6, %v5605_v45  ;;  %v5552_v46 = vmul.f32 %v11469_v9, %v5513_v17  ;;  %v5599_v22 = vadd.f32 %v11476_v13, %v5560_v31 }
 0x497   : > { %5636 = vst.msk [vmem:[%s11483_s11 + $0xc0] sm:$0xff] %vm5116_vm6, %v5604_v11  ;;  %v5551_v33 = vmul.f32 %v11469_v9, %v5512_v30  ;;  %v5598_v21 = vadd.f32 %v11476_v13, %v5559_v41  ;;  %v6069_v0 = vpop.eup %6068 }
 0x498   : > { %v5591_v43 = vadd.f32 %v11476_v13, %v5552_v46  ;;  %5631 = vst.msk [vmem:[%s11483_s11 + $0x98] sm:$0xff] %vm5116_vm6, %v5599_v22  ;;  %v6071_v20 = vpop.eup %6070  ;;  %v5529_v56 = vmul.f32 %v6069_v0, %v11403_v63  ;;  %v5458_v63 = vadd.f32 1e-05, %v5426_v59  ;;  %v5428_v22 = vmul.f32 0.03125, %v11504_v2 }
 0x499   : > { %v5590_v60 = vadd.f32 %v11476_v13, %v5551_v33  ;;  %5630 = vst.msk [vmem:[%s11483_s11 + $0x90] sm:$0xff] %vm5116_vm6, %v5598_v21  ;;  %v5528_v1 = vmul.f32 %v6071_v20, %v11406_v25 }
 0x49a   : > { %5623 = vst.msk [vmem:[%s11483_s11 + $0x58] sm:$0xff] %vm5116_vm6, %v5591_v43  ;;  %v5568_v40 = vmul.f32 %v11469_v9, %v5529_v56  ;;  %6074 = vrsqrt.f32 %v5458_v63  ;;  %v5429_v43 = vmul.f32 0.03125, %v11501_v23 }
 0x49b   : > { %5622 = vst.msk [vmem:[%s11483_s11 + $0x50] sm:$0xff] %vm5116_vm6, %v5590_v60  ;;  %v5567_v16 = vmul.f32 %v11469_v9, %v5528_v1 }
 0x49c   : > { %v5607_v52 = vadd.f32 %v11476_v13, %v5568_v40  ;;  %v5461_v60 = vadd.f32 1e-05, %v5429_v43 }
 0x49d   : > { %v5606_v28 = vadd.f32 %v11476_v13, %v5567_v16 }
 0x49e   : > { %5639 = vst.msk [vmem:[%s11483_s11 + $0xd8] sm:$0xff] %vm5116_vm6, %v5607_v52  ;;  %v6073_v53 = vpop.eup %6072 }
 0x49f   : > { %5638 = vst.msk [vmem:[%s11483_s11 + $0xd0] sm:$0xff] %vm5116_vm6, %v5606_v28  ;;  %v5523_v35 = vmul.f32 %v6073_v53, %v11324_v4 }
 0x4a1   : > { %v5351_v25 = vpop.xlane.xlu1 %5350  ;;  %v5562_v37 = vmul.f32 %v11469_v9, %v5523_v35 }
 0x4a2   : > { %v5419_v62 = vmul.f32 0.03125, %v5351_v25  ;;  %v5348_v18 = vpop.xlane.xlu0 %5347 }
 0x4a3   : > { %v5418_v57 = vmul.f32 0.03125, %v5348_v18  ;;  %v5601_v3 = vadd.f32 %v11476_v13, %v5562_v37 }
 0x4a4   : > { %v5451_v19 = vadd.f32 1e-05, %v5419_v62  ;;  %v6075_v32 = vpop.eup %6074 }
 0x4a5   : > { %v5450_v51 = vadd.f32 1e-05, %v5418_v57  ;;  %v5522_v24 = vmul.f32 %v6075_v32, %v11330_v14  ;;  %5633 = vst.msk [vmem:[%s11483_s11 + $0xa8] sm:$0xff] %vm5116_vm6, %v5601_v3 }
 0x4a6   : > { %6076 = vrsqrt.f32 %v5451_v19 }
 0x4a7   : > { %6078 = vrsqrt.f32 %v5450_v51  ;;  %v5561_v4 = vmul.f32 %v11469_v9, %v5522_v24 }
 0x4ae   : > { %v5399_v6 = vpop.xlane.xlu1 %5398 }
 0x4af   : > { %v5435_v42 = vmul.f32 0.03125, %v5399_v6  ;;  %v5396_v34 = vpop.xlane.xlu0 %5395 }
 0x4b0   : > { %v5434_v36 = vmul.f32 0.03125, %v5396_v34  ;;  %v6077_v29 = vpop.eup %6076 }
 0x4b1   : > { %v5467_v44 = vadd.f32 1e-05, %v5435_v42  ;;  %v6079_v26 = vpop.eup %6078  ;;  %v5515_v11 = vmul.f32 %v6077_v29, %v11415_v39  ;;  %v5600_v39 = vadd.f32 %v11476_v13, %v5561_v4 }
 0x4b2   : > { %v5466_v45 = vadd.f32 1e-05, %v5434_v36  ;;  %v5514_v48 = vmul.f32 %v6079_v26, %v11418_v54 }
 0x4b3   : > { %6080 = vrsqrt.f32 %v5467_v44  ;;  %v5554_v61 = vmul.f32 %v11469_v9, %v5515_v11  ;;  %5632 = vst.msk [vmem:[%s11483_s11 + $0xa0] sm:$0xff] %vm5116_vm6, %v5600_v39 }
 0x4b4   : > { %6082 = vrsqrt.f32 %v5466_v45  ;;  %v5553_v14 = vmul.f32 %v11469_v9, %v5514_v48 }
 0x4b5   : > { %v5593_v38 = vadd.f32 %v11476_v13, %v5554_v61  ;;  %6084 = vrsqrt.f32 %v5461_v60 }
 0x4b6   : > { %v5592_v58 = vadd.f32 %v11476_v13, %v5553_v14 }
 0x4b7   : > { %5625 = vst.msk [vmem:[%s11483_s11 + $0x68] sm:$0xff] %vm5116_vm6, %v5593_v38 }
 0x4b8   : > { %5624 = vst.msk [vmem:[%s11483_s11 + $0x60] sm:$0xff] %vm5116_vm6, %v5592_v58 }
 0x4bd   : > { %v6081_v54 = vpop.eup %6080 }
 0x4be   : > { %v6083_v8 = vpop.eup %6082  ;;  %v5531_v17 = vmul.f32 %v6081_v54, %v11427_v50  ;;  %v5460_v50 = vadd.f32 1e-05, %v5428_v22 }
 0x4bf   : > { %v5530_v31 = vmul.f32 %v6083_v8, %v11430_v55  ;;  %v6085_v40 = vpop.eup %6084 }
 0x4c0   : > { %v5570_v30 = vmul.f32 %v11469_v9, %v5531_v17  ;;  %6086 = vrsqrt.f32 %v5460_v50  ;;  %v5525_v2 = vmul.f32 %v6085_v40, %v11348_v5 }
 0x4c1   : > { %v5569_v41 = vmul.f32 %v11469_v9, %v5530_v31 }
 0x4c2   : > { %v5609_v46 = vadd.f32 %v11476_v13, %v5570_v30  ;;  %v5564_v57 = vmul.f32 %v11469_v9, %v5525_v2 }
 0x4c3   : > { %v5608_v33 = vadd.f32 %v11476_v13, %v5569_v41 }
 0x4c4   : > { %5641 = vst.msk [vmem:[%s11483_s11 + $0xe8] sm:$0xff] %vm5116_vm6, %v5609_v46  ;;  %v5603_v6 = vadd.f32 %v11476_v13, %v5564_v57 }
 0x4c5   : > { %5640 = vst.msk [vmem:[%s11483_s11 + $0xe0] sm:$0xff] %vm5116_vm6, %v5608_v33 }
 0x4c6   : > { %5635 = vst.msk [vmem:[%s11483_s11 + $0xb8] sm:$0xff] %vm5116_vm6, %v5603_v6 }
 0x4ca   : > { %v6087_v52 = vpop.eup %6086 }
 0x4cb   : > { %v5524_v47 = vmul.f32 %v6087_v52, %v11354_v7 }
 0x4cd   : > { %v5563_v5 = vmul.f32 %v11469_v9, %v5524_v47 }
 0x4e0   : > { %v5357_v55 = vpop.xlane.xlu1 %5356 }
 0x4e1   : > { %v5421_v21 = vmul.f32 0.03125, %v5357_v55  ;;  %v5354_v0 = vpop.xlane.xlu0 %5353 }
 0x4e2   : > { %v5420_v20 = vmul.f32 0.03125, %v5354_v0 }
 0x4e3   : > { %v5453_v56 = vadd.f32 1e-05, %v5421_v21 }
 0x4e4   : > { %v5452_v1 = vadd.f32 1e-05, %v5420_v20 }
 0x4e5   : > { %6088 = vrsqrt.f32 %v5453_v56 }
 0x4e6   : > { %6090 = vrsqrt.f32 %v5452_v1 }
 0x4ed   : > { %v5405_v16 = vpop.xlane.xlu1 %5404 }
 0x4ee   : > { %v5437_v28 = vmul.f32 0.03125, %v5405_v16  ;;  %v5402_v27 = vpop.xlane.xlu0 %5401 }
 0x4ef   : > { %v5436_v23 = vmul.f32 0.03125, %v5402_v27  ;;  %v6089_v25 = vpop.eup %6088 }
 0x4f0   : > { %v5469_v59 = vadd.f32 1e-05, %v5437_v28  ;;  %v6091_v62 = vpop.eup %6090  ;;  %v5517_v18 = vmul.f32 %v6089_v25, %v11439_v10  ;;  %v5602_v10 = vadd.f32 %v11476_v13, %v5563_v5 }
 0x4f1   : > { %v5468_v63 = vadd.f32 1e-05, %v5436_v23  ;;  %v5516_v19 = vmul.f32 %v6091_v62, %v11442_v15 }
 0x4f2   : > { %6092 = vrsqrt.f32 %v5469_v59  ;;  %v5556_v51 = vmul.f32 %v11469_v9, %v5517_v18  ;;  %5634 = vst.msk [vmem:[%s11483_s11 + $0xb0] sm:$0xff] %vm5116_vm6, %v5602_v10 }
 0x4f3   : > { %6094 = vrsqrt.f32 %v5468_v63  ;;  %v5555_v7 = vmul.f32 %v11469_v9, %v5516_v19 }
 0x4f4   : > { %v5595_v53 = vadd.f32 %v11476_v13, %v5556_v51 }
 0x4f5   : > { %v5594_v32 = vadd.f32 %v11476_v13, %v5555_v7 }
 0x4f6   : > { %5627 = vst.msk [vmem:[%s11483_s11 + $0x78] sm:$0xff] %vm5116_vm6, %v5595_v53 }
 0x4f7   : > { %5626 = vst.msk [vmem:[%s11483_s11 + $0x70] sm:$0xff] %vm5116_vm6, %v5594_v32 }
 0x4fc   : > { %v6093_v15 = vpop.eup %6092 }
 0x4fd   : > { %v6095_v42 = vpop.eup %6094  ;;  %v5533_v34 = vmul.f32 %v6093_v15, %v11451_v49 }
 0x4fe   : > { %v5532_v36 = vmul.f32 %v6095_v42, %v11454_v12 }
 0x4ff   : > { %v5572_v35 = vmul.f32 %v11469_v9, %v5533_v34 }
 0x500   : > { %v5571_v44 = vmul.f32 %v11469_v9, %v5532_v36 }
 0x501   : > { %v5611_v24 = vadd.f32 %v11476_v13, %v5572_v35 }
 0x502   : > { %v5610_v45 = vadd.f32 %v11476_v13, %v5571_v44 }
 0x503   : > { %5643 = vst.msk [vmem:[%s11483_s11 + $0xf8] sm:$0xff] %vm5116_vm6, %v5611_v24 }
 0x504   : > { %5642 = vst.msk [vmem:[%s11483_s11 + $0xf0] sm:$0xff] %vm5116_vm6, %v5610_v45 }
 0x505 PF: > { %s18_s26 = sadd.s32 1, %s6212_s26  }
 0x506   : > { %p15_p4 = scmp.ge.s32.totalorder %s18_s26, 4  }
 0x508   :  { %17 = sbr.rel (!%p15_p4) target bundleno = 3 (0x3), region = 300 }

</bundles_post_ra>
